<compile_context>
chip_gen: v7x
topology: tpu7x:2x2x1
jax: 0.10.0
libtpu: 0.0.40
codegen_flags: <defaults>
</compile_context>

<pallas_src>
import functools

import jax
import jax.numpy as jnp
import numpy as np
from jax.experimental import pallas as pl
from jax.experimental.pallas import tpu as pltpu


# ---------------------------------------------------------------------------
# Fused kernel: one batch sample per grid step.
# ---------------------------------------------------------------------------
def _a2c_fused_kernel(cols1_ref, w1_ref, b1_ref, w2_ref, b2_ref, w3_ref, b3_ref,
                      wfc1_ref, bfc1_ref, wh_ref, bh_ref, out_ref,
                      *, h1, h2, h3, scale):
    """h1: conv1 output H=W (15); h2: conv2 output (14); h3: conv3 output (7).

    cols1_ref block: (1, h1*h1, cin*k*k).  Row order of the im2col matrix:
    for each conv1 output row r: its ceil(h1/2) EVEN columns, then its ODD
    columns.  Therefore a1 (conv1 output) inherits that parity-major layout.
    """
    ne = (h1 + 1) // 2          # number of even columns per conv1 row
    hw = h2 // 2                # columns per parity of a conv2 row (= h3)

    # ---- conv1: single GEMM; /255 fused into the epilogue -----------------
    a1 = jnp.dot(cols1_ref[0], w1_ref[...], preferred_element_type=jnp.float32)
    a1 = jnp.maximum(a1 * scale + b1_ref[...], 0.0)        # (h1*h1, c1)

    def ev(r, lo, hi):          # conv1 row r, even columns [lo, hi)
        base = r * h1
        return a1[base + lo: base + hi, :]

    def od(r, lo, hi):          # conv1 row r, odd columns [lo, hi)
        base = r * h1 + ne
        return a1[base + lo: base + hi, :]

    # ---- conv2 (k=2, stride 1): per output row, even / odd column halves --
    w2 = w2_ref[...]            # (4*c1, c2)  rows stacked (i=0,j=0),(0,1),(1,0),(1,1)
    b2 = b2_ref[...]
    out2_even, out2_odd = [], []
    for y in range(h2):
        # even output columns x = 2X:  sources (y+i, 2X) and (y+i, 2X+1)
        pe = jnp.concatenate([ev(y, 0, hw), od(y, 0, hw),
                              ev(y + 1, 0, hw), od(y + 1, 0, hw)], axis=1)
        out2_even.append(jnp.maximum(
            jnp.dot(pe, w2, preferred_element_type=jnp.float32) + b2, 0.0))
        # odd output columns x = 2X+1: sources (y+i, 2X+1) and (y+i, 2X+2)
        po = jnp.concatenate([od(y, 0, hw), ev(y, 1, hw + 1),
                              od(y + 1, 0, hw), ev(y + 1, 1, hw + 1)], axis=1)
        out2_odd.append(jnp.maximum(
            jnp.dot(po, w2, preferred_element_type=jnp.float32) + b2, 0.0))

    # ---- conv3 (k=2, stride 2): parity split makes it contiguous ----------
    w3 = w3_ref[...]            # (4*c2, c3)  same (i, j) row order as w2
    b3 = b3_ref[...]
    pieces = []                 # 49 channel vectors, order (Y, X)
    for Y in range(h3):
        p3 = jnp.concatenate([out2_even[2 * Y], out2_odd[2 * Y],
                              out2_even[2 * Y + 1], out2_odd[2 * Y + 1]], axis=1)
        r3 = jnp.maximum(
            jnp.dot(p3, w3, preferred_element_type=jnp.float32) + b3, 0.0)  # (h3, c3)
        for X in range(h3):
            pieces.append(r3[X:X + 1, :])                  # (1, c3)

    # ---- flatten (channel-minor) + fc1 + fused actor/critic heads ---------
    flat = jnp.concatenate(pieces, axis=1)                 # (1, h3*h3*c3)
    hid = jnp.maximum(
        jnp.dot(flat, wfc1_ref[...], preferred_element_type=jnp.float32)
        + bfc1_ref[...], 0.0)                              # (1, fc1_dim)
    out_ref[0] = (jnp.dot(hid, wh_ref[...], preferred_element_type=jnp.float32)
                  + bh_ref[...])                           # (1, head_pad)


# ---------------------------------------------------------------------------
# Plain-JAX layout prep: im2col of the RAW input, parity-major column order.
# ---------------------------------------------------------------------------
def _build_conv1_cols(x, k):
    """cols[n, r*oh + p, ci*k*k + i*k + j] = x[n, ci, r+i, c+j] where position p
    enumerates, for conv1 output row r, its even columns then its odd columns."""
    n, cin, h, w = x.shape
    oh, ow = h - k + 1, w - k + 1
    xf = x.astype(jnp.float32)
    patches = jnp.stack([xf[:, :, i:i + oh, j:j + ow]
                         for i in range(k) for j in range(k)], axis=-1)  # (n,cin,oh,ow,k*k)
    pm = jnp.concatenate([patches[:, :, :, 0::2, :],
                          patches[:, :, :, 1::2, :]], axis=3)            # parity-major cols
    cols = pm.transpose(0, 2, 3, 1, 4).reshape(n, oh * ow, cin * k * k)
    return cols, oh


# ---------------------------------------------------------------------------
# One-time weight re-layout (done once, outside the hot path).
# ---------------------------------------------------------------------------
def prepare_params(p):
    c1, cin, k, _ = p["conv1_w"].shape
    c2 = p["conv2_w"].shape[0]
    c3 = p["conv3_w"].shape[0]
    fcd, kfc = p["fc1_w"].shape
    na, nc = p["actor_w"].shape[0], p["critic_w"].shape[0]
    hsp = kfc // c3                       # spatial positions after conv3 (49)
    head = na + nc
    hpad = ((head + 7) // 8) * 8          # lane-pad the fused head output

    w1 = p["conv1_w"].reshape(c1, cin * k * k).T.astype(jnp.float32)        # (cin*k*k, c1)
    w2cat = jnp.concatenate([p["conv2_w"][:, :, i, j].T
                             for i in range(k) for j in range(k)], axis=0)  # (4*c1, c2)
    w3cat = jnp.concatenate([p["conv3_w"][:, :, i, j].T
                             for i in range(k) for j in range(k)], axis=0)  # (4*c2, c3)
    # Permute fc1 K-axis from NCHW-flat (co*49+pos) to channel-minor (pos*c3+co).
    wfc1 = p["fc1_w"].reshape(fcd, c3, hsp).transpose(2, 1, 0).reshape(kfc, fcd)
    whead = jnp.concatenate([p["actor_w"].T, p["critic_w"].T,
                             jnp.zeros((fcd, hpad - head), jnp.float32)], axis=1)
    bhead = jnp.concatenate([p["actor_b"], p["critic_b"],
                             jnp.zeros((hpad - head,), jnp.float32)])[None, :]
    return {
        "w1": w1.astype(jnp.float32), "b1": p["conv1_b"][None, :].astype(jnp.float32),
        "w2cat": w2cat.astype(jnp.float32), "b2": p["conv2_b"][None, :].astype(jnp.float32),
        "w3cat": w3cat.astype(jnp.float32), "b3": p["conv3_b"][None, :].astype(jnp.float32),
        "wfc1": wfc1.astype(jnp.float32), "bfc1": p["fc1_b"][None, :].astype(jnp.float32),
        "whead": whead.astype(jnp.float32), "bhead": bhead.astype(jnp.float32),
    }


# ---------------------------------------------------------------------------
# Forward wrapper (single pallas_call).
# ---------------------------------------------------------------------------
def make_a2c_forward(kernel_size, strides, out_actor_dim, out_critic_dim):
    assert kernel_size == 2 and tuple(strides) == (1, 1, 2), \
        "fused kernel is specialized to the A2C geometry k=2, strides (1,1,2)"

    @jax.jit
    def fwd(prepped, x):
        n = x.shape[0]
        cols1, h1 = _build_conv1_cols(x, kernel_size)      # (n, h1*h1, cin*k*k)
        h2 = h1 - 1                                        # conv2 output H=W
        h3 = (h2 - 2) // 2 + 1                             # conv3 output H=W
        kc = cols1.shape[2]
        c1 = prepped["w1"].shape[1]
        c2 = prepped["w2cat"].shape[1]
        c3 = prepped["w3cat"].shape[1]
        fcd = prepped["wfc1"].shape[1]
        hpad = prepped["whead"].shape[1]
        assert h3 * h3 * c3 == prepped["wfc1"].shape[0]

        kern = functools.partial(_a2c_fused_kernel,
                                 h1=h1, h2=h2, h3=h3, scale=1.0 / 255.0)

        out = pl.pallas_call(
            kern,
            out_shape=jax.ShapeDtypeStruct((n, 1, hpad), jnp.float32),
            grid=(n,),
            in_specs=[
                pl.BlockSpec((1, h1 * h1, kc), lambda b: (b, 0, 0)),   # per-sample cols
                pl.BlockSpec((kc, c1), lambda b: (0, 0)),              # resident weights
                pl.BlockSpec((1, c1), lambda b: (0, 0)),
                pl.BlockSpec((4 * c1, c2), lambda b: (0, 0)),
                pl.BlockSpec((1, c2), lambda b: (0, 0)),
                pl.BlockSpec((4 * c2, c3), lambda b: (0, 0)),
                pl.BlockSpec((1, c3), lambda b: (0, 0)),
                pl.BlockSpec((h3 * h3 * c3, fcd), lambda b: (0, 0)),
                pl.BlockSpec((1, fcd), lambda b: (0, 0)),
                pl.BlockSpec((fcd, hpad), lambda b: (0, 0)),
                pl.BlockSpec((1, hpad), lambda b: (0, 0)),
            ],
            out_specs=pl.BlockSpec((1, 1, hpad), lambda b: (b, 0, 0)),
            compiler_params=pltpu.CompilerParams(
                dimension_semantics=("parallel",)),
        )(cols1, prepped["w1"], prepped["b1"], prepped["w2cat"], prepped["b2"],
          prepped["w3cat"], prepped["b3"], prepped["wfc1"], prepped["bfc1"],
          prepped["whead"], prepped["bhead"])

        out = out.reshape(n, hpad)
        actor = out[:, :out_actor_dim]
        critic = out[:, out_actor_dim:out_actor_dim + out_critic_dim]
        return actor, critic

    return fwd


# ---------------------------------------------------------------------------
# Parameters (torch layout) + pure-JAX reference.
# ---------------------------------------------------------------------------
def init_params(key, input_shape, layer1, k1, layer2, k2, layer3, k3,
                fc1_dim, out_actor_dim, out_critic_dim):
    ks = jax.random.split(key, 10)
    s = 0.05
    return {
        "conv1_w": jax.random.normal(ks[0], (layer1, input_shape, k1, k1), jnp.float32) * s,
        "conv1_b": jax.random.normal(ks[1], (layer1,), jnp.float32) * s,
        "conv2_w": jax.random.normal(ks[2], (layer2, layer1, k2, k2), jnp.float32) * s,
        "conv2_b": jax.random.normal(ks[3], (layer2,), jnp.float32) * s,
        "conv3_w": jax.random.normal(ks[4], (layer3, layer2, k3, k3), jnp.float32) * s,
        "conv3_b": jax.random.normal(ks[5], (layer3,), jnp.float32) * s,
        "fc1_w": jax.random.normal(ks[6], (fc1_dim, 64 * 7 * 7), jnp.float32) * s,
        "fc1_b": jax.random.normal(ks[7], (fc1_dim,), jnp.float32) * s,
        "actor_w": jax.random.normal(ks[8], (out_actor_dim, fc1_dim), jnp.float32) * s,
        "actor_b": jnp.zeros((out_actor_dim,), jnp.float32),
        "critic_w": jax.random.normal(ks[9], (out_critic_dim, fc1_dim), jnp.float32) * s,
        "critic_b": jnp.zeros((out_critic_dim,), jnp.float32),
    }


def a2c_reference(params, x, strides):
    s1, s2, s3 = strides
    fx = x.astype(jnp.float32) / 255.0

    def conv(h, w, b, stride):
        out = jax.lax.conv_general_dilated(
            h, w, window_strides=(stride, stride), padding="VALID",
            dimension_numbers=("NCHW", "OIHW", "NCHW"))
        return jnp.maximum(out + b[None, :, None, None], 0.0)

    h = conv(fx, params["conv1_w"], params["conv1_b"], s1)
    h = conv(h, params["conv2_w"], params["conv2_b"], s2)
    h = conv(h, params["conv3_w"], params["conv3_b"], s3)
    flat = h.reshape(h.shape[0], -1)
    hid = jnp.maximum(flat @ params["fc1_w"].T + params["fc1_b"], 0.0)
    actor = hid @ params["actor_w"].T + params["actor_b"]
    critic = hid @ params["critic_w"].T + params["critic_b"]
    return actor, critic


if __name__ == "__main__":
    # Config consistent with fc1 in_features = 64*7*7:
    # 16x16 input -> conv1(k2,s1) 15x15 -> conv2(k2,s1) 14x14 -> conv3(k2,s2) 7x7, 64 ch.
    input_shape, layer1, k1, s1 = 4, 8, 2, 1
    layer2, k2, s2 = 16, 2, 1
    layer3, k3, s3 = 64, 2, 2
    fc1_dim, out_actor_dim, out_critic_dim = 32, 6, 1

    key = jax.random.PRNGKey(0)
    kp, kx = jax.random.split(key)
    params = init_params(kp, input_shape, layer1, k1, layer2, k2, layer3, k3,
                         fc1_dim, out_actor_dim, out_critic_dim)
    prepped = prepare_params(params)

    x = jax.random.randint(kx, (2, input_shape, 16, 16), 0, 256, dtype=jnp.int32)
    x = x.astype(jnp.uint8)

    fwd = make_a2c_forward(k1, (s1, s2, s3), out_actor_dim, out_critic_dim)
    actor, critic = fwd(prepped, x)
    jax.block_until_ready((actor, critic))

    actor_ref, critic_ref = a2c_reference(params, x, (s1, s2, s3))
    np.testing.assert_allclose(np.asarray(actor), np.asarray(actor_ref), rtol=1e-4, atol=1e-4)
    np.testing.assert_allclose(np.asarray(critic), np.asarray(critic_ref), rtol=1e-4, atol=1e-4)

    assert actor.shape == (2, out_actor_dim) and critic.shape == (2, out_critic_dim)
    print("KERNEL_OK")
</pallas_src>

<mosaic_0001>
module attributes {stable_mosaic.version = 11 : i64} {
  func.func @_a2c_fused_kernel(%arg0: i32, %arg1: memref<1x225x16xf32, #tpu.memory_space<vmem>>, %arg2: memref<16x8xf32, #tpu.memory_space<vmem>>, %arg3: memref<1x8xf32, #tpu.memory_space<vmem>>, %arg4: memref<32x16xf32, #tpu.memory_space<vmem>>, %arg5: memref<1x16xf32, #tpu.memory_space<vmem>>, %arg6: memref<64x64xf32, #tpu.memory_space<vmem>>, %arg7: memref<1x64xf32, #tpu.memory_space<vmem>>, %arg8: memref<3136x32xf32, #tpu.memory_space<vmem>>, %arg9: memref<1x32xf32, #tpu.memory_space<vmem>>, %arg10: memref<32x8xf32, #tpu.memory_space<vmem>>, %arg11: memref<1x8xf32, #tpu.memory_space<vmem>>, %arg12: memref<1x1x8xf32, #tpu.memory_space<vmem>>) attributes {dimension_semantics = [#tpu.dimension_semantics<parallel>], iteration_bounds = array<i64: 2>, scalar_prefetch = 0 : i64, scratch_operands = 0 : i64, tpu.core_type = #tpu.core_type<tc>, window_params = [{transform_indices = @transform_0, window_bounds = array<i64: 1, 225, 16>}, {pipeline_mode = #tpu.pipeline_mode<synchronous>, transform_indices = @transform_1, window_bounds = array<i64: 16, 8>}, {pipeline_mode = #tpu.pipeline_mode<synchronous>, transform_indices = @transform_2, window_bounds = array<i64: 1, 8>}, {pipeline_mode = #tpu.pipeline_mode<synchronous>, transform_indices = @transform_3, window_bounds = array<i64: 32, 16>}, {pipeline_mode = #tpu.pipeline_mode<synchronous>, transform_indices = @transform_4, window_bounds = array<i64: 1, 16>}, {pipeline_mode = #tpu.pipeline_mode<synchronous>, transform_indices = @transform_5, window_bounds = array<i64: 64, 64>}, {pipeline_mode = #tpu.pipeline_mode<synchronous>, transform_indices = @transform_6, window_bounds = array<i64: 1, 64>}, {pipeline_mode = #tpu.pipeline_mode<synchronous>, transform_indices = @transform_7, window_bounds = array<i64: 3136, 32>}, {pipeline_mode = #tpu.pipeline_mode<synchronous>, transform_indices = @transform_8, window_bounds = array<i64: 1, 32>}, {pipeline_mode = #tpu.pipeline_mode<synchronous>, transform_indices = @transform_9, window_bounds = array<i64: 32, 8>}, {pipeline_mode = #tpu.pipeline_mode<synchronous>, transform_indices = @transform_10, window_bounds = array<i64: 1, 8>}, {transform_indices = @transform_11, window_bounds = array<i64: 1, 1, 8>}]} {
    %c0 = arith.constant 0 : index
    %c0_0 = arith.constant 0 : index
    %c0_1 = arith.constant 0 : index
    %0 = vector.load %arg1[%c0, %c0_0, %c0_1] : memref<1x225x16xf32, #tpu.memory_space<vmem>>, vector<1x225x16xf32>
    %1 = vector.shape_cast %0 : vector<1x225x16xf32> to vector<225x16xf32>
    %c0_2 = arith.constant 0 : index
    %c0_3 = arith.constant 0 : index
    %2 = vector.load %arg2[%c0_2, %c0_3] : memref<16x8xf32, #tpu.memory_space<vmem>>, vector<16x8xf32>
    %cst = arith.constant dense<0.000000e+00> : vector<225x8xf32>
    %3 = tpu.matmul %1, %2, %cst {dimension_numbers = #tpu.dot_dimension_numbers<[1], [0], [0], [1], [0, 0, 1, 1], [], []>} : vector<225x16xf32>, vector<16x8xf32>, vector<225x8xf32> -> vector<225x8xf32>
    %cst_4 = arith.constant 0.00392156886 : f32
    %4 = vector.broadcast %cst_4 : f32 to vector<225x8xf32>
    %5 = arith.mulf %3, %4 : vector<225x8xf32>
    %c0_5 = arith.constant 0 : index
    %c0_6 = arith.constant 0 : index
    %6 = vector.load %arg3[%c0_5, %c0_6] : memref<1x8xf32, #tpu.memory_space<vmem>>, vector<1x8xf32>
    %7 = vector.broadcast %6 : vector<1x8xf32> to vector<225x8xf32>
    %8 = arith.addf %5, %7 : vector<225x8xf32>
    %cst_7 = arith.constant 0.000000e+00 : f32
    %9 = vector.broadcast %cst_7 : f32 to vector<225x8xf32>
    %10 = arith.maximumf %8, %9 : vector<225x8xf32>
    %c0_8 = arith.constant 0 : index
    %c0_9 = arith.constant 0 : index
    %11 = vector.load %arg4[%c0_8, %c0_9] : memref<32x16xf32, #tpu.memory_space<vmem>>, vector<32x16xf32>
    %c0_10 = arith.constant 0 : index
    %c0_11 = arith.constant 0 : index
    %12 = vector.load %arg5[%c0_10, %c0_11] : memref<1x16xf32, #tpu.memory_space<vmem>>, vector<1x16xf32>
    %13 = vector.extract_strided_slice %10 {offsets = [0, 0], sizes = [7, 8], strides = [1, 1]} : vector<225x8xf32> to vector<7x8xf32>
    %14 = vector.extract_strided_slice %10 {offsets = [8, 0], sizes = [7, 8], strides = [1, 1]} : vector<225x8xf32> to vector<7x8xf32>
    %15 = vector.extract_strided_slice %10 {offsets = [15, 0], sizes = [7, 8], strides = [1, 1]} : vector<225x8xf32> to vector<7x8xf32>
    %16 = vector.extract_strided_slice %10 {offsets = [23, 0], sizes = [7, 8], strides = [1, 1]} : vector<225x8xf32> to vector<7x8xf32>
    %17 = tpu.concatenate %13, %14, %15, %16 in 1 : vector<7x8xf32>, vector<7x8xf32>, vector<7x8xf32>, vector<7x8xf32> -> vector<7x32xf32>
    %cst_12 = arith.constant dense<0.000000e+00> : vector<7x16xf32>
    %18 = tpu.matmul %17, %11, %cst_12 {dimension_numbers = #tpu.dot_dimension_numbers<[1], [0], [0], [1], [0, 0, 1, 1], [], []>} : vector<7x32xf32>, vector<32x16xf32>, vector<7x16xf32> -> vector<7x16xf32>
    %19 = vector.broadcast %12 : vector<1x16xf32> to vector<7x16xf32>
    %20 = arith.addf %18, %19 : vector<7x16xf32>
    %cst_13 = arith.constant 0.000000e+00 : f32
    %21 = vector.broadcast %cst_13 : f32 to vector<7x16xf32>
    %22 = arith.maximumf %20, %21 : vector<7x16xf32>
    %23 = vector.extract_strided_slice %10 {offsets = [8, 0], sizes = [7, 8], strides = [1, 1]} : vector<225x8xf32> to vector<7x8xf32>
    %24 = vector.extract_strided_slice %10 {offsets = [1, 0], sizes = [7, 8], strides = [1, 1]} : vector<225x8xf32> to vector<7x8xf32>
    %25 = vector.extract_strided_slice %10 {offsets = [23, 0], sizes = [7, 8], strides = [1, 1]} : vector<225x8xf32> to vector<7x8xf32>
    %26 = vector.extract_strided_slice %10 {offsets = [16, 0], sizes = [7, 8], strides = [1, 1]} : vector<225x8xf32> to vector<7x8xf32>
    %27 = tpu.concatenate %23, %24, %25, %26 in 1 : vector<7x8xf32>, vector<7x8xf32>, vector<7x8xf32>, vector<7x8xf32> -> vector<7x32xf32>
    %cst_14 = arith.constant dense<0.000000e+00> : vector<7x16xf32>
    %28 = tpu.matmul %27, %11, %cst_14 {dimension_numbers = #tpu.dot_dimension_numbers<[1], [0], [0], [1], [0, 0, 1, 1], [], []>} : vector<7x32xf32>, vector<32x16xf32>, vector<7x16xf32> -> vector<7x16xf32>
    %29 = vector.broadcast %12 : vector<1x16xf32> to vector<7x16xf32>
    %30 = arith.addf %28, %29 : vector<7x16xf32>
    %cst_15 = arith.constant 0.000000e+00 : f32
    %31 = vector.broadcast %cst_15 : f32 to vector<7x16xf32>
    %32 = arith.maximumf %30, %31 : vector<7x16xf32>
    %33 = vector.extract_strided_slice %10 {offsets = [15, 0], sizes = [7, 8], strides = [1, 1]} : vector<225x8xf32> to vector<7x8xf32>
    %34 = vector.extract_strided_slice %10 {offsets = [23, 0], sizes = [7, 8], strides = [1, 1]} : vector<225x8xf32> to vector<7x8xf32>
    %35 = vector.extract_strided_slice %10 {offsets = [30, 0], sizes = [7, 8], strides = [1, 1]} : vector<225x8xf32> to vector<7x8xf32>
    %36 = vector.extract_strided_slice %10 {offsets = [38, 0], sizes = [7, 8], strides = [1, 1]} : vector<225x8xf32> to vector<7x8xf32>
    %37 = tpu.concatenate %33, %34, %35, %36 in 1 : vector<7x8xf32>, vector<7x8xf32>, vector<7x8xf32>, vector<7x8xf32> -> vector<7x32xf32>
    %cst_16 = arith.constant dense<0.000000e+00> : vector<7x16xf32>
    %38 = tpu.matmul %37, %11, %cst_16 {dimension_numbers = #tpu.dot_dimension_numbers<[1], [0], [0], [1], [0, 0, 1, 1], [], []>} : vector<7x32xf32>, vector<32x16xf32>, vector<7x16xf32> -> vector<7x16xf32>
    %39 = vector.broadcast %12 : vector<1x16xf32> to vector<7x16xf32>
    %40 = arith.addf %38, %39 : vector<7x16xf32>
    %cst_17 = arith.constant 0.000000e+00 : f32
    %41 = vector.broadcast %cst_17 : f32 to vector<7x16xf32>
    %42 = arith.maximumf %40, %41 : vector<7x16xf32>
    %43 = vector.extract_strided_slice %10 {offsets = [23, 0], sizes = [7, 8], strides = [1, 1]} : vector<225x8xf32> to vector<7x8xf32>
    %44 = vector.extract_strided_slice %10 {offsets = [16, 0], sizes = [7, 8], strides = [1, 1]} : vector<225x8xf32> to vector<7x8xf32>
    %45 = vector.extract_strided_slice %10 {offsets = [38, 0], sizes = [7, 8], strides = [1, 1]} : vector<225x8xf32> to vector<7x8xf32>
    %46 = vector.extract_strided_slice %10 {offsets = [31, 0], sizes = [7, 8], strides = [1, 1]} : vector<225x8xf32> to vector<7x8xf32>
    %47 = tpu.concatenate %43, %44, %45, %46 in 1 : vector<7x8xf32>, vector<7x8xf32>, vector<7x8xf32>, vector<7x8xf32> -> vector<7x32xf32>
    %cst_18 = arith.constant dense<0.000000e+00> : vector<7x16xf32>
    %48 = tpu.matmul %47, %11, %cst_18 {dimension_numbers = #tpu.dot_dimension_numbers<[1], [0], [0], [1], [0, 0, 1, 1], [], []>} : vector<7x32xf32>, vector<32x16xf32>, vector<7x16xf32> -> vector<7x16xf32>
    %49 = vector.broadcast %12 : vector<1x16xf32> to vector<7x16xf32>
    %50 = arith.addf %48, %49 : vector<7x16xf32>
    %cst_19 = arith.constant 0.000000e+00 : f32
    %51 = vector.broadcast %cst_19 : f32 to vector<7x16xf32>
    %52 = arith.maximumf %50, %51 : vector<7x16xf32>
    %53 = vector.extract_strided_slice %10 {offsets = [30, 0], sizes = [7, 8], strides = [1, 1]} : vector<225x8xf32> to vector<7x8xf32>
    %54 = vector.extract_strided_slice %10 {offsets = [38, 0], sizes = [7, 8], strides = [1, 1]} : vector<225x8xf32> to vector<7x8xf32>
    %55 = vector.extract_strided_slice %10 {offsets = [45, 0], sizes = [7, 8], strides = [1, 1]} : vector<225x8xf32> to vector<7x8xf32>
    %56 = vector.extract_strided_slice %10 {offsets = [53, 0], sizes = [7, 8], strides = [1, 1]} : vector<225x8xf32> to vector<7x8xf32>
    %57 = tpu.concatenate %53, %54, %55, %56 in 1 : vector<7x8xf32>, vector<7x8xf32>, vector<7x8xf32>, vector<7x8xf32> -> vector<7x32xf32>
    %cst_20 = arith.constant dense<0.000000e+00> : vector<7x16xf32>
    %58 = tpu.matmul %57, %11, %cst_20 {dimension_numbers = #tpu.dot_dimension_numbers<[1], [0], [0], [1], [0, 0, 1, 1], [], []>} : vector<7x32xf32>, vector<32x16xf32>, vector<7x16xf32> -> vector<7x16xf32>
    %59 = vector.broadcast %12 : vector<1x16xf32> to vector<7x16xf32>
    %60 = arith.addf %58, %59 : vector<7x16xf32>
    %cst_21 = arith.constant 0.000000e+00 : f32
    %61 = vector.broadcast %cst_21 : f32 to vector<7x16xf32>
    %62 = arith.maximumf %60, %61 : vector<7x16xf32>
    %63 = vector.extract_strided_slice %10 {offsets = [38, 0], sizes = [7, 8], strides = [1, 1]} : vector<225x8xf32> to vector<7x8xf32>
    %64 = vector.extract_strided_slice %10 {offsets = [31, 0], sizes = [7, 8], strides = [1, 1]} : vector<225x8xf32> to vector<7x8xf32>
    %65 = vector.extract_strided_slice %10 {offsets = [53, 0], sizes = [7, 8], strides = [1, 1]} : vector<225x8xf32> to vector<7x8xf32>
    %66 = vector.extract_strided_slice %10 {offsets = [46, 0], sizes = [7, 8], strides = [1, 1]} : vector<225x8xf32> to vector<7x8xf32>
    %67 = tpu.concatenate %63, %64, %65, %66 in 1 : vector<7x8xf32>, vector<7x8xf32>, vector<7x8xf32>, vector<7x8xf32> -> vector<7x32xf32>
    %cst_22 = arith.constant dense<0.000000e+00> : vector<7x16xf32>
    %68 = tpu.matmul %67, %11, %cst_22 {dimension_numbers = #tpu.dot_dimension_numbers<[1], [0], [0], [1], [0, 0, 1, 1], [], []>} : vector<7x32xf32>, vector<32x16xf32>, vector<7x16xf32> -> vector<7x16xf32>
    %69 = vector.broadcast %12 : vector<1x16xf32> to vector<7x16xf32>
    %70 = arith.addf %68, %69 : vector<7x16xf32>
    %cst_23 = arith.constant 0.000000e+00 : f32
    %71 = vector.broadcast %cst_23 : f32 to vector<7x16xf32>
    %72 = arith.maximumf %70, %71 : vector<7x16xf32>
    %73 = vector.extract_strided_slice %10 {offsets = [45, 0], sizes = [7, 8], strides = [1, 1]} : vector<225x8xf32> to vector<7x8xf32>
    %74 = vector.extract_strided_slice %10 {offsets = [53, 0], sizes = [7, 8], strides = [1, 1]} : vector<225x8xf32> to vector<7x8xf32>
    %75 = vector.extract_strided_slice %10 {offsets = [60, 0], sizes = [7, 8], strides = [1, 1]} : vector<225x8xf32> to vector<7x8xf32>
    %76 = vector.extract_strided_slice %10 {offsets = [68, 0], sizes = [7, 8], strides = [1, 1]} : vector<225x8xf32> to vector<7x8xf32>
    %77 = tpu.concatenate %73, %74, %75, %76 in 1 : vector<7x8xf32>, vector<7x8xf32>, vector<7x8xf32>, vector<7x8xf32> -> vector<7x32xf32>
    %cst_24 = arith.constant dense<0.000000e+00> : vector<7x16xf32>
    %78 = tpu.matmul %77, %11, %cst_24 {dimension_numbers = #tpu.dot_dimension_numbers<[1], [0], [0], [1], [0, 0, 1, 1], [], []>} : vector<7x32xf32>, vector<32x16xf32>, vector<7x16xf32> -> vector<7x16xf32>
    %79 = vector.broadcast %12 : vector<1x16xf32> to vector<7x16xf32>
    %80 = arith.addf %78, %79 : vector<7x16xf32>
    %cst_25 = arith.constant 0.000000e+00 : f32
    %81 = vector.broadcast %cst_25 : f32 to vector<7x16xf32>
    %82 = arith.maximumf %80, %81 : vector<7x16xf32>
    %83 = vector.extract_strided_slice %10 {offsets = [53, 0], sizes = [7, 8], strides = [1, 1]} : vector<225x8xf32> to vector<7x8xf32>
    %84 = vector.extract_strided_slice %10 {offsets = [46, 0], sizes = [7, 8], strides = [1, 1]} : vector<225x8xf32> to vector<7x8xf32>
    %85 = vector.extract_strided_slice %10 {offsets = [68, 0], sizes = [7, 8], strides = [1, 1]} : vector<225x8xf32> to vector<7x8xf32>
    %86 = vector.extract_strided_slice %10 {offsets = [61, 0], sizes = [7, 8], strides = [1, 1]} : vector<225x8xf32> to vector<7x8xf32>
    %87 = tpu.concatenate %83, %84, %85, %86 in 1 : vector<7x8xf32>, vector<7x8xf32>, vector<7x8xf32>, vector<7x8xf32> -> vector<7x32xf32>
    %cst_26 = arith.constant dense<0.000000e+00> : vector<7x16xf32>
    %88 = tpu.matmul %87, %11, %cst_26 {dimension_numbers = #tpu.dot_dimension_numbers<[1], [0], [0], [1], [0, 0, 1, 1], [], []>} : vector<7x32xf32>, vector<32x16xf32>, vector<7x16xf32> -> vector<7x16xf32>
    %89 = vector.broadcast %12 : vector<1x16xf32> to vector<7x16xf32>
    %90 = arith.addf %88, %89 : vector<7x16xf32>
    %cst_27 = arith.constant 0.000000e+00 : f32
    %91 = vector.broadcast %cst_27 : f32 to vector<7x16xf32>
    %92 = arith.maximumf %90, %91 : vector<7x16xf32>
    %93 = vector.extract_strided_slice %10 {offsets = [60, 0], sizes = [7, 8], strides = [1, 1]} : vector<225x8xf32> to vector<7x8xf32>
    %94 = vector.extract_strided_slice %10 {offsets = [68, 0], sizes = [7, 8], strides = [1, 1]} : vector<225x8xf32> to vector<7x8xf32>
    %95 = vector.extract_strided_slice %10 {offsets = [75, 0], sizes = [7, 8], strides = [1, 1]} : vector<225x8xf32> to vector<7x8xf32>
    %96 = vector.extract_strided_slice %10 {offsets = [83, 0], sizes = [7, 8], strides = [1, 1]} : vector<225x8xf32> to vector<7x8xf32>
    %97 = tpu.concatenate %93, %94, %95, %96 in 1 : vector<7x8xf32>, vector<7x8xf32>, vector<7x8xf32>, vector<7x8xf32> -> vector<7x32xf32>
    %cst_28 = arith.constant dense<0.000000e+00> : vector<7x16xf32>
    %98 = tpu.matmul %97, %11, %cst_28 {dimension_numbers = #tpu.dot_dimension_numbers<[1], [0], [0], [1], [0, 0, 1, 1], [], []>} : vector<7x32xf32>, vector<32x16xf32>, vector<7x16xf32> -> vector<7x16xf32>
    %99 = vector.broadcast %12 : vector<1x16xf32> to vector<7x16xf32>
    %100 = arith.addf %98, %99 : vector<7x16xf32>
    %cst_29 = arith.constant 0.000000e+00 : f32
    %101 = vector.broadcast %cst_29 : f32 to vector<7x16xf32>
    %102 = arith.maximumf %100, %101 : vector<7x16xf32>
    %103 = vector.extract_strided_slice %10 {offsets = [68, 0], sizes = [7, 8], strides = [1, 1]} : vector<225x8xf32> to vector<7x8xf32>
    %104 = vector.extract_strided_slice %10 {offsets = [61, 0], sizes = [7, 8], strides = [1, 1]} : vector<225x8xf32> to vector<7x8xf32>
    %105 = vector.extract_strided_slice %10 {offsets = [83, 0], sizes = [7, 8], strides = [1, 1]} : vector<225x8xf32> to vector<7x8xf32>
    %106 = vector.extract_strided_slice %10 {offsets = [76, 0], sizes = [7, 8], strides = [1, 1]} : vector<225x8xf32> to vector<7x8xf32>
    %107 = tpu.concatenate %103, %104, %105, %106 in 1 : vector<7x8xf32>, vector<7x8xf32>, vector<7x8xf32>, vector<7x8xf32> -> vector<7x32xf32>
    %cst_30 = arith.constant dense<0.000000e+00> : vector<7x16xf32>
    %108 = tpu.matmul %107, %11, %cst_30 {dimension_numbers = #tpu.dot_dimension_numbers<[1], [0], [0], [1], [0, 0, 1, 1], [], []>} : vector<7x32xf32>, vector<32x16xf32>, vector<7x16xf32> -> vector<7x16xf32>
    %109 = vector.broadcast %12 : vector<1x16xf32> to vector<7x16xf32>
    %110 = arith.addf %108, %109 : vector<7x16xf32>
    %cst_31 = arith.constant 0.000000e+00 : f32
    %111 = vector.broadcast %cst_31 : f32 to vector<7x16xf32>
    %112 = arith.maximumf %110, %111 : vector<7x16xf32>
    %113 = vector.extract_strided_slice %10 {offsets = [75, 0], sizes = [7, 8], strides = [1, 1]} : vector<225x8xf32> to vector<7x8xf32>
    %114 = vector.extract_strided_slice %10 {offsets = [83, 0], sizes = [7, 8], strides = [1, 1]} : vector<225x8xf32> to vector<7x8xf32>
    %115 = vector.extract_strided_slice %10 {offsets = [90, 0], sizes = [7, 8], strides = [1, 1]} : vector<225x8xf32> to vector<7x8xf32>
    %116 = vector.extract_strided_slice %10 {offsets = [98, 0], sizes = [7, 8], strides = [1, 1]} : vector<225x8xf32> to vector<7x8xf32>
    %117 = tpu.concatenate %113, %114, %115, %116 in 1 : vector<7x8xf32>, vector<7x8xf32>, vector<7x8xf32>, vector<7x8xf32> -> vector<7x32xf32>
    %cst_32 = arith.constant dense<0.000000e+00> : vector<7x16xf32>
    %118 = tpu.matmul %117, %11, %cst_32 {dimension_numbers = #tpu.dot_dimension_numbers<[1], [0], [0], [1], [0, 0, 1, 1], [], []>} : vector<7x32xf32>, vector<32x16xf32>, vector<7x16xf32> -> vector<7x16xf32>
    %119 = vector.broadcast %12 : vector<1x16xf32> to vector<7x16xf32>
    %120 = arith.addf %118, %119 : vector<7x16xf32>
    %cst_33 = arith.constant 0.000000e+00 : f32
    %121 = vector.broadcast %cst_33 : f32 to vector<7x16xf32>
    %122 = arith.maximumf %120, %121 : vector<7x16xf32>
    %123 = vector.extract_strided_slice %10 {offsets = [83, 0], sizes = [7, 8], strides = [1, 1]} : vector<225x8xf32> to vector<7x8xf32>
    %124 = vector.extract_strided_slice %10 {offsets = [76, 0], sizes = [7, 8], strides = [1, 1]} : vector<225x8xf32> to vector<7x8xf32>
    %125 = vector.extract_strided_slice %10 {offsets = [98, 0], sizes = [7, 8], strides = [1, 1]} : vector<225x8xf32> to vector<7x8xf32>
    %126 = vector.extract_strided_slice %10 {offsets = [91, 0], sizes = [7, 8], strides = [1, 1]} : vector<225x8xf32> to vector<7x8xf32>
    %127 = tpu.concatenate %123, %124, %125, %126 in 1 : vector<7x8xf32>, vector<7x8xf32>, vector<7x8xf32>, vector<7x8xf32> -> vector<7x32xf32>
    %cst_34 = arith.constant dense<0.000000e+00> : vector<7x16xf32>
    %128 = tpu.matmul %127, %11, %cst_34 {dimension_numbers = #tpu.dot_dimension_numbers<[1], [0], [0], [1], [0, 0, 1, 1], [], []>} : vector<7x32xf32>, vector<32x16xf32>, vector<7x16xf32> -> vector<7x16xf32>
    %129 = vector.broadcast %12 : vector<1x16xf32> to vector<7x16xf32>
    %130 = arith.addf %128, %129 : vector<7x16xf32>
    %cst_35 = arith.constant 0.000000e+00 : f32
    %131 = vector.broadcast %cst_35 : f32 to vector<7x16xf32>
    %132 = arith.maximumf %130, %131 : vector<7x16xf32>
    %133 = vector.extract_strided_slice %10 {offsets = [90, 0], sizes = [7, 8], strides = [1, 1]} : vector<225x8xf32> to vector<7x8xf32>
    %134 = vector.extract_strided_slice %10 {offsets = [98, 0], sizes = [7, 8], strides = [1, 1]} : vector<225x8xf32> to vector<7x8xf32>
    %135 = vector.extract_strided_slice %10 {offsets = [105, 0], sizes = [7, 8], strides = [1, 1]} : vector<225x8xf32> to vector<7x8xf32>
    %136 = vector.extract_strided_slice %10 {offsets = [113, 0], sizes = [7, 8], strides = [1, 1]} : vector<225x8xf32> to vector<7x8xf32>
    %137 = tpu.concatenate %133, %134, %135, %136 in 1 : vector<7x8xf32>, vector<7x8xf32>, vector<7x8xf32>, vector<7x8xf32> -> vector<7x32xf32>
    %cst_36 = arith.constant dense<0.000000e+00> : vector<7x16xf32>
    %138 = tpu.matmul %137, %11, %cst_36 {dimension_numbers = #tpu.dot_dimension_numbers<[1], [0], [0], [1], [0, 0, 1, 1], [], []>} : vector<7x32xf32>, vector<32x16xf32>, vector<7x16xf32> -> vector<7x16xf32>
    %139 = vector.broadcast %12 : vector<1x16xf32> to vector<7x16xf32>
    %140 = arith.addf %138, %139 : vector<7x16xf32>
    %cst_37 = arith.constant 0.000000e+00 : f32
    %141 = vector.broadcast %cst_37 : f32 to vector<7x16xf32>
    %142 = arith.maximumf %140, %141 : vector<7x16xf32>
    %143 = vector.extract_strided_slice %10 {offsets = [98, 0], sizes = [7, 8], strides = [1, 1]} : vector<225x8xf32> to vector<7x8xf32>
    %144 = vector.extract_strided_slice %10 {offsets = [91, 0], sizes = [7, 8], strides = [1, 1]} : vector<225x8xf32> to vector<7x8xf32>
    %145 = vector.extract_strided_slice %10 {offsets = [113, 0], sizes = [7, 8], strides = [1, 1]} : vector<225x8xf32> to vector<7x8xf32>
    %146 = vector.extract_strided_slice %10 {offsets = [106, 0], sizes = [7, 8], strides = [1, 1]} : vector<225x8xf32> to vector<7x8xf32>
    %147 = tpu.concatenate %143, %144, %145, %146 in 1 : vector<7x8xf32>, vector<7x8xf32>, vector<7x8xf32>, vector<7x8xf32> -> vector<7x32xf32>
    %cst_38 = arith.constant dense<0.000000e+00> : vector<7x16xf32>
    %148 = tpu.matmul %147, %11, %cst_38 {dimension_numbers = #tpu.dot_dimension_numbers<[1], [0], [0], [1], [0, 0, 1, 1], [], []>} : vector<7x32xf32>, vector<32x16xf32>, vector<7x16xf32> -> vector<7x16xf32>
    %149 = vector.broadcast %12 : vector<1x16xf32> to vector<7x16xf32>
    %150 = arith.addf %148, %149 : vector<7x16xf32>
    %cst_39 = arith.constant 0.000000e+00 : f32
    %151 = vector.broadcast %cst_39 : f32 to vector<7x16xf32>
    %152 = arith.maximumf %150, %151 : vector<7x16xf32>
    %153 = vector.extract_strided_slice %10 {offsets = [105, 0], sizes = [7, 8], strides = [1, 1]} : vector<225x8xf32> to vector<7x8xf32>
    %154 = vector.extract_strided_slice %10 {offsets = [113, 0], sizes = [7, 8], strides = [1, 1]} : vector<225x8xf32> to vector<7x8xf32>
    %155 = vector.extract_strided_slice %10 {offsets = [120, 0], sizes = [7, 8], strides = [1, 1]} : vector<225x8xf32> to vector<7x8xf32>
    %156 = vector.extract_strided_slice %10 {offsets = [128, 0], sizes = [7, 8], strides = [1, 1]} : vector<225x8xf32> to vector<7x8xf32>
    %157 = tpu.concatenate %153, %154, %155, %156 in 1 : vector<7x8xf32>, vector<7x8xf32>, vector<7x8xf32>, vector<7x8xf32> -> vector<7x32xf32>
    %cst_40 = arith.constant dense<0.000000e+00> : vector<7x16xf32>
    %158 = tpu.matmul %157, %11, %cst_40 {dimension_numbers = #tpu.dot_dimension_numbers<[1], [0], [0], [1], [0, 0, 1, 1], [], []>} : vector<7x32xf32>, vector<32x16xf32>, vector<7x16xf32> -> vector<7x16xf32>
    %159 = vector.broadcast %12 : vector<1x16xf32> to vector<7x16xf32>
    %160 = arith.addf %158, %159 : vector<7x16xf32>
    %cst_41 = arith.constant 0.000000e+00 : f32
    %161 = vector.broadcast %cst_41 : f32 to vector<7x16xf32>
    %162 = arith.maximumf %160, %161 : vector<7x16xf32>
    %163 = vector.extract_strided_slice %10 {offsets = [113, 0], sizes = [7, 8], strides = [1, 1]} : vector<225x8xf32> to vector<7x8xf32>
    %164 = vector.extract_strided_slice %10 {offsets = [106, 0], sizes = [7, 8], strides = [1, 1]} : vector<225x8xf32> to vector<7x8xf32>
    %165 = vector.extract_strided_slice %10 {offsets = [128, 0], sizes = [7, 8], strides = [1, 1]} : vector<225x8xf32> to vector<7x8xf32>
    %166 = vector.extract_strided_slice %10 {offsets = [121, 0], sizes = [7, 8], strides = [1, 1]} : vector<225x8xf32> to vector<7x8xf32>
    %167 = tpu.concatenate %163, %164, %165, %166 in 1 : vector<7x8xf32>, vector<7x8xf32>, vector<7x8xf32>, vector<7x8xf32> -> vector<7x32xf32>
    %cst_42 = arith.constant dense<0.000000e+00> : vector<7x16xf32>
    %168 = tpu.matmul %167, %11, %cst_42 {dimension_numbers = #tpu.dot_dimension_numbers<[1], [0], [0], [1], [0, 0, 1, 1], [], []>} : vector<7x32xf32>, vector<32x16xf32>, vector<7x16xf32> -> vector<7x16xf32>
    %169 = vector.broadcast %12 : vector<1x16xf32> to vector<7x16xf32>
    %170 = arith.addf %168, %169 : vector<7x16xf32>
    %cst_43 = arith.constant 0.000000e+00 : f32
    %171 = vector.broadcast %cst_43 : f32 to vector<7x16xf32>
    %172 = arith.maximumf %170, %171 : vector<7x16xf32>
    %173 = vector.extract_strided_slice %10 {offsets = [120, 0], sizes = [7, 8], strides = [1, 1]} : vector<225x8xf32> to vector<7x8xf32>
    %174 = vector.extract_strided_slice %10 {offsets = [128, 0], sizes = [7, 8], strides = [1, 1]} : vector<225x8xf32> to vector<7x8xf32>
    %175 = vector.extract_strided_slice %10 {offsets = [135, 0], sizes = [7, 8], strides = [1, 1]} : vector<225x8xf32> to vector<7x8xf32>
    %176 = vector.extract_strided_slice %10 {offsets = [143, 0], sizes = [7, 8], strides = [1, 1]} : vector<225x8xf32> to vector<7x8xf32>
    %177 = tpu.concatenate %173, %174, %175, %176 in 1 : vector<7x8xf32>, vector<7x8xf32>, vector<7x8xf32>, vector<7x8xf32> -> vector<7x32xf32>
    %cst_44 = arith.constant dense<0.000000e+00> : vector<7x16xf32>
    %178 = tpu.matmul %177, %11, %cst_44 {dimension_numbers = #tpu.dot_dimension_numbers<[1], [0], [0], [1], [0, 0, 1, 1], [], []>} : vector<7x32xf32>, vector<32x16xf32>, vector<7x16xf32> -> vector<7x16xf32>
    %179 = vector.broadcast %12 : vector<1x16xf32> to vector<7x16xf32>
    %180 = arith.addf %178, %179 : vector<7x16xf32>
    %cst_45 = arith.constant 0.000000e+00 : f32
    %181 = vector.broadcast %cst_45 : f32 to vector<7x16xf32>
    %182 = arith.maximumf %180, %181 : vector<7x16xf32>
    %183 = vector.extract_strided_slice %10 {offsets = [128, 0], sizes = [7, 8], strides = [1, 1]} : vector<225x8xf32> to vector<7x8xf32>
    %184 = vector.extract_strided_slice %10 {offsets = [121, 0], sizes = [7, 8], strides = [1, 1]} : vector<225x8xf32> to vector<7x8xf32>
    %185 = vector.extract_strided_slice %10 {offsets = [143, 0], sizes = [7, 8], strides = [1, 1]} : vector<225x8xf32> to vector<7x8xf32>
    %186 = vector.extract_strided_slice %10 {offsets = [136, 0], sizes = [7, 8], strides = [1, 1]} : vector<225x8xf32> to vector<7x8xf32>
    %187 = tpu.concatenate %183, %184, %185, %186 in 1 : vector<7x8xf32>, vector<7x8xf32>, vector<7x8xf32>, vector<7x8xf32> -> vector<7x32xf32>
    %cst_46 = arith.constant dense<0.000000e+00> : vector<7x16xf32>
    %188 = tpu.matmul %187, %11, %cst_46 {dimension_numbers = #tpu.dot_dimension_numbers<[1], [0], [0], [1], [0, 0, 1, 1], [], []>} : vector<7x32xf32>, vector<32x16xf32>, vector<7x16xf32> -> vector<7x16xf32>
    %189 = vector.broadcast %12 : vector<1x16xf32> to vector<7x16xf32>
    %190 = arith.addf %188, %189 : vector<7x16xf32>
    %cst_47 = arith.constant 0.000000e+00 : f32
    %191 = vector.broadcast %cst_47 : f32 to vector<7x16xf32>
    %192 = arith.maximumf %190, %191 : vector<7x16xf32>
    %193 = vector.extract_strided_slice %10 {offsets = [135, 0], sizes = [7, 8], strides = [1, 1]} : vector<225x8xf32> to vector<7x8xf32>
    %194 = vector.extract_strided_slice %10 {offsets = [143, 0], sizes = [7, 8], strides = [1, 1]} : vector<225x8xf32> to vector<7x8xf32>
    %195 = vector.extract_strided_slice %10 {offsets = [150, 0], sizes = [7, 8], strides = [1, 1]} : vector<225x8xf32> to vector<7x8xf32>
    %196 = vector.extract_strided_slice %10 {offsets = [158, 0], sizes = [7, 8], strides = [1, 1]} : vector<225x8xf32> to vector<7x8xf32>
    %197 = tpu.concatenate %193, %194, %195, %196 in 1 : vector<7x8xf32>, vector<7x8xf32>, vector<7x8xf32>, vector<7x8xf32> -> vector<7x32xf32>
    %cst_48 = arith.constant dense<0.000000e+00> : vector<7x16xf32>
    %198 = tpu.matmul %197, %11, %cst_48 {dimension_numbers = #tpu.dot_dimension_numbers<[1], [0], [0], [1], [0, 0, 1, 1], [], []>} : vector<7x32xf32>, vector<32x16xf32>, vector<7x16xf32> -> vector<7x16xf32>
    %199 = vector.broadcast %12 : vector<1x16xf32> to vector<7x16xf32>
    %200 = arith.addf %198, %199 : vector<7x16xf32>
    %cst_49 = arith.constant 0.000000e+00 : f32
    %201 = vector.broadcast %cst_49 : f32 to vector<7x16xf32>
    %202 = arith.maximumf %200, %201 : vector<7x16xf32>
    %203 = vector.extract_strided_slice %10 {offsets = [143, 0], sizes = [7, 8], strides = [1, 1]} : vector<225x8xf32> to vector<7x8xf32>
    %204 = vector.extract_strided_slice %10 {offsets = [136, 0], sizes = [7, 8], strides = [1, 1]} : vector<225x8xf32> to vector<7x8xf32>
    %205 = vector.extract_strided_slice %10 {offsets = [158, 0], sizes = [7, 8], strides = [1, 1]} : vector<225x8xf32> to vector<7x8xf32>
    %206 = vector.extract_strided_slice %10 {offsets = [151, 0], sizes = [7, 8], strides = [1, 1]} : vector<225x8xf32> to vector<7x8xf32>
    %207 = tpu.concatenate %203, %204, %205, %206 in 1 : vector<7x8xf32>, vector<7x8xf32>, vector<7x8xf32>, vector<7x8xf32> -> vector<7x32xf32>
    %cst_50 = arith.constant dense<0.000000e+00> : vector<7x16xf32>
    %208 = tpu.matmul %207, %11, %cst_50 {dimension_numbers = #tpu.dot_dimension_numbers<[1], [0], [0], [1], [0, 0, 1, 1], [], []>} : vector<7x32xf32>, vector<32x16xf32>, vector<7x16xf32> -> vector<7x16xf32>
    %209 = vector.broadcast %12 : vector<1x16xf32> to vector<7x16xf32>
    %210 = arith.addf %208, %209 : vector<7x16xf32>
    %cst_51 = arith.constant 0.000000e+00 : f32
    %211 = vector.broadcast %cst_51 : f32 to vector<7x16xf32>
    %212 = arith.maximumf %210, %211 : vector<7x16xf32>
    %213 = vector.extract_strided_slice %10 {offsets = [150, 0], sizes = [7, 8], strides = [1, 1]} : vector<225x8xf32> to vector<7x8xf32>
    %214 = vector.extract_strided_slice %10 {offsets = [158, 0], sizes = [7, 8], strides = [1, 1]} : vector<225x8xf32> to vector<7x8xf32>
    %215 = vector.extract_strided_slice %10 {offsets = [165, 0], sizes = [7, 8], strides = [1, 1]} : vector<225x8xf32> to vector<7x8xf32>
    %216 = vector.extract_strided_slice %10 {offsets = [173, 0], sizes = [7, 8], strides = [1, 1]} : vector<225x8xf32> to vector<7x8xf32>
    %217 = tpu.concatenate %213, %214, %215, %216 in 1 : vector<7x8xf32>, vector<7x8xf32>, vector<7x8xf32>, vector<7x8xf32> -> vector<7x32xf32>
    %cst_52 = arith.constant dense<0.000000e+00> : vector<7x16xf32>
    %218 = tpu.matmul %217, %11, %cst_52 {dimension_numbers = #tpu.dot_dimension_numbers<[1], [0], [0], [1], [0, 0, 1, 1], [], []>} : vector<7x32xf32>, vector<32x16xf32>, vector<7x16xf32> -> vector<7x16xf32>
    %219 = vector.broadcast %12 : vector<1x16xf32> to vector<7x16xf32>
    %220 = arith.addf %218, %219 : vector<7x16xf32>
    %cst_53 = arith.constant 0.000000e+00 : f32
    %221 = vector.broadcast %cst_53 : f32 to vector<7x16xf32>
    %222 = arith.maximumf %220, %221 : vector<7x16xf32>
    %223 = vector.extract_strided_slice %10 {offsets = [158, 0], sizes = [7, 8], strides = [1, 1]} : vector<225x8xf32> to vector<7x8xf32>
    %224 = vector.extract_strided_slice %10 {offsets = [151, 0], sizes = [7, 8], strides = [1, 1]} : vector<225x8xf32> to vector<7x8xf32>
    %225 = vector.extract_strided_slice %10 {offsets = [173, 0], sizes = [7, 8], strides = [1, 1]} : vector<225x8xf32> to vector<7x8xf32>
    %226 = vector.extract_strided_slice %10 {offsets = [166, 0], sizes = [7, 8], strides = [1, 1]} : vector<225x8xf32> to vector<7x8xf32>
    %227 = tpu.concatenate %223, %224, %225, %226 in 1 : vector<7x8xf32>, vector<7x8xf32>, vector<7x8xf32>, vector<7x8xf32> -> vector<7x32xf32>
    %cst_54 = arith.constant dense<0.000000e+00> : vector<7x16xf32>
    %228 = tpu.matmul %227, %11, %cst_54 {dimension_numbers = #tpu.dot_dimension_numbers<[1], [0], [0], [1], [0, 0, 1, 1], [], []>} : vector<7x32xf32>, vector<32x16xf32>, vector<7x16xf32> -> vector<7x16xf32>
    %229 = vector.broadcast %12 : vector<1x16xf32> to vector<7x16xf32>
    %230 = arith.addf %228, %229 : vector<7x16xf32>
    %cst_55 = arith.constant 0.000000e+00 : f32
    %231 = vector.broadcast %cst_55 : f32 to vector<7x16xf32>
    %232 = arith.maximumf %230, %231 : vector<7x16xf32>
    %233 = vector.extract_strided_slice %10 {offsets = [165, 0], sizes = [7, 8], strides = [1, 1]} : vector<225x8xf32> to vector<7x8xf32>
    %234 = vector.extract_strided_slice %10 {offsets = [173, 0], sizes = [7, 8], strides = [1, 1]} : vector<225x8xf32> to vector<7x8xf32>
    %235 = vector.extract_strided_slice %10 {offsets = [180, 0], sizes = [7, 8], strides = [1, 1]} : vector<225x8xf32> to vector<7x8xf32>
    %236 = vector.extract_strided_slice %10 {offsets = [188, 0], sizes = [7, 8], strides = [1, 1]} : vector<225x8xf32> to vector<7x8xf32>
    %237 = tpu.concatenate %233, %234, %235, %236 in 1 : vector<7x8xf32>, vector<7x8xf32>, vector<7x8xf32>, vector<7x8xf32> -> vector<7x32xf32>
    %cst_56 = arith.constant dense<0.000000e+00> : vector<7x16xf32>
    %238 = tpu.matmul %237, %11, %cst_56 {dimension_numbers = #tpu.dot_dimension_numbers<[1], [0], [0], [1], [0, 0, 1, 1], [], []>} : vector<7x32xf32>, vector<32x16xf32>, vector<7x16xf32> -> vector<7x16xf32>
    %239 = vector.broadcast %12 : vector<1x16xf32> to vector<7x16xf32>
    %240 = arith.addf %238, %239 : vector<7x16xf32>
    %cst_57 = arith.constant 0.000000e+00 : f32
    %241 = vector.broadcast %cst_57 : f32 to vector<7x16xf32>
    %242 = arith.maximumf %240, %241 : vector<7x16xf32>
    %243 = vector.extract_strided_slice %10 {offsets = [173, 0], sizes = [7, 8], strides = [1, 1]} : vector<225x8xf32> to vector<7x8xf32>
    %244 = vector.extract_strided_slice %10 {offsets = [166, 0], sizes = [7, 8], strides = [1, 1]} : vector<225x8xf32> to vector<7x8xf32>
    %245 = vector.extract_strided_slice %10 {offsets = [188, 0], sizes = [7, 8], strides = [1, 1]} : vector<225x8xf32> to vector<7x8xf32>
    %246 = vector.extract_strided_slice %10 {offsets = [181, 0], sizes = [7, 8], strides = [1, 1]} : vector<225x8xf32> to vector<7x8xf32>
    %247 = tpu.concatenate %243, %244, %245, %246 in 1 : vector<7x8xf32>, vector<7x8xf32>, vector<7x8xf32>, vector<7x8xf32> -> vector<7x32xf32>
    %cst_58 = arith.constant dense<0.000000e+00> : vector<7x16xf32>
    %248 = tpu.matmul %247, %11, %cst_58 {dimension_numbers = #tpu.dot_dimension_numbers<[1], [0], [0], [1], [0, 0, 1, 1], [], []>} : vector<7x32xf32>, vector<32x16xf32>, vector<7x16xf32> -> vector<7x16xf32>
    %249 = vector.broadcast %12 : vector<1x16xf32> to vector<7x16xf32>
    %250 = arith.addf %248, %249 : vector<7x16xf32>
    %cst_59 = arith.constant 0.000000e+00 : f32
    %251 = vector.broadcast %cst_59 : f32 to vector<7x16xf32>
    %252 = arith.maximumf %250, %251 : vector<7x16xf32>
    %253 = vector.extract_strided_slice %10 {offsets = [180, 0], sizes = [7, 8], strides = [1, 1]} : vector<225x8xf32> to vector<7x8xf32>
    %254 = vector.extract_strided_slice %10 {offsets = [188, 0], sizes = [7, 8], strides = [1, 1]} : vector<225x8xf32> to vector<7x8xf32>
    %255 = vector.extract_strided_slice %10 {offsets = [195, 0], sizes = [7, 8], strides = [1, 1]} : vector<225x8xf32> to vector<7x8xf32>
    %256 = vector.extract_strided_slice %10 {offsets = [203, 0], sizes = [7, 8], strides = [1, 1]} : vector<225x8xf32> to vector<7x8xf32>
    %257 = tpu.concatenate %253, %254, %255, %256 in 1 : vector<7x8xf32>, vector<7x8xf32>, vector<7x8xf32>, vector<7x8xf32> -> vector<7x32xf32>
    %cst_60 = arith.constant dense<0.000000e+00> : vector<7x16xf32>
    %258 = tpu.matmul %257, %11, %cst_60 {dimension_numbers = #tpu.dot_dimension_numbers<[1], [0], [0], [1], [0, 0, 1, 1], [], []>} : vector<7x32xf32>, vector<32x16xf32>, vector<7x16xf32> -> vector<7x16xf32>
    %259 = vector.broadcast %12 : vector<1x16xf32> to vector<7x16xf32>
    %260 = arith.addf %258, %259 : vector<7x16xf32>
    %cst_61 = arith.constant 0.000000e+00 : f32
    %261 = vector.broadcast %cst_61 : f32 to vector<7x16xf32>
    %262 = arith.maximumf %260, %261 : vector<7x16xf32>
    %263 = vector.extract_strided_slice %10 {offsets = [188, 0], sizes = [7, 8], strides = [1, 1]} : vector<225x8xf32> to vector<7x8xf32>
    %264 = vector.extract_strided_slice %10 {offsets = [181, 0], sizes = [7, 8], strides = [1, 1]} : vector<225x8xf32> to vector<7x8xf32>
    %265 = vector.extract_strided_slice %10 {offsets = [203, 0], sizes = [7, 8], strides = [1, 1]} : vector<225x8xf32> to vector<7x8xf32>
    %266 = vector.extract_strided_slice %10 {offsets = [196, 0], sizes = [7, 8], strides = [1, 1]} : vector<225x8xf32> to vector<7x8xf32>
    %267 = tpu.concatenate %263, %264, %265, %266 in 1 : vector<7x8xf32>, vector<7x8xf32>, vector<7x8xf32>, vector<7x8xf32> -> vector<7x32xf32>
    %cst_62 = arith.constant dense<0.000000e+00> : vector<7x16xf32>
    %268 = tpu.matmul %267, %11, %cst_62 {dimension_numbers = #tpu.dot_dimension_numbers<[1], [0], [0], [1], [0, 0, 1, 1], [], []>} : vector<7x32xf32>, vector<32x16xf32>, vector<7x16xf32> -> vector<7x16xf32>
    %269 = vector.broadcast %12 : vector<1x16xf32> to vector<7x16xf32>
    %270 = arith.addf %268, %269 : vector<7x16xf32>
    %cst_63 = arith.constant 0.000000e+00 : f32
    %271 = vector.broadcast %cst_63 : f32 to vector<7x16xf32>
    %272 = arith.maximumf %270, %271 : vector<7x16xf32>
    %273 = vector.extract_strided_slice %10 {offsets = [195, 0], sizes = [7, 8], strides = [1, 1]} : vector<225x8xf32> to vector<7x8xf32>
    %274 = vector.extract_strided_slice %10 {offsets = [203, 0], sizes = [7, 8], strides = [1, 1]} : vector<225x8xf32> to vector<7x8xf32>
    %275 = vector.extract_strided_slice %10 {offsets = [210, 0], sizes = [7, 8], strides = [1, 1]} : vector<225x8xf32> to vector<7x8xf32>
    %276 = vector.extract_strided_slice %10 {offsets = [218, 0], sizes = [7, 8], strides = [1, 1]} : vector<225x8xf32> to vector<7x8xf32>
    %277 = tpu.concatenate %273, %274, %275, %276 in 1 : vector<7x8xf32>, vector<7x8xf32>, vector<7x8xf32>, vector<7x8xf32> -> vector<7x32xf32>
    %cst_64 = arith.constant dense<0.000000e+00> : vector<7x16xf32>
    %278 = tpu.matmul %277, %11, %cst_64 {dimension_numbers = #tpu.dot_dimension_numbers<[1], [0], [0], [1], [0, 0, 1, 1], [], []>} : vector<7x32xf32>, vector<32x16xf32>, vector<7x16xf32> -> vector<7x16xf32>
    %279 = vector.broadcast %12 : vector<1x16xf32> to vector<7x16xf32>
    %280 = arith.addf %278, %279 : vector<7x16xf32>
    %cst_65 = arith.constant 0.000000e+00 : f32
    %281 = vector.broadcast %cst_65 : f32 to vector<7x16xf32>
    %282 = arith.maximumf %280, %281 : vector<7x16xf32>
    %283 = vector.extract_strided_slice %10 {offsets = [203, 0], sizes = [7, 8], strides = [1, 1]} : vector<225x8xf32> to vector<7x8xf32>
    %284 = vector.extract_strided_slice %10 {offsets = [196, 0], sizes = [7, 8], strides = [1, 1]} : vector<225x8xf32> to vector<7x8xf32>
    %285 = vector.extract_strided_slice %10 {offsets = [218, 0], sizes = [7, 8], strides = [1, 1]} : vector<225x8xf32> to vector<7x8xf32>
    %286 = vector.extract_strided_slice %10 {offsets = [211, 0], sizes = [7, 8], strides = [1, 1]} : vector<225x8xf32> to vector<7x8xf32>
    %287 = tpu.concatenate %283, %284, %285, %286 in 1 : vector<7x8xf32>, vector<7x8xf32>, vector<7x8xf32>, vector<7x8xf32> -> vector<7x32xf32>
    %cst_66 = arith.constant dense<0.000000e+00> : vector<7x16xf32>
    %288 = tpu.matmul %287, %11, %cst_66 {dimension_numbers = #tpu.dot_dimension_numbers<[1], [0], [0], [1], [0, 0, 1, 1], [], []>} : vector<7x32xf32>, vector<32x16xf32>, vector<7x16xf32> -> vector<7x16xf32>
    %289 = vector.broadcast %12 : vector<1x16xf32> to vector<7x16xf32>
    %290 = arith.addf %288, %289 : vector<7x16xf32>
    %cst_67 = arith.constant 0.000000e+00 : f32
    %291 = vector.broadcast %cst_67 : f32 to vector<7x16xf32>
    %292 = arith.maximumf %290, %291 : vector<7x16xf32>
    %c0_68 = arith.constant 0 : index
    %c0_69 = arith.constant 0 : index
    %293 = vector.load %arg6[%c0_68, %c0_69] : memref<64x64xf32, #tpu.memory_space<vmem>>, vector<64x64xf32>
    %c0_70 = arith.constant 0 : index
    %c0_71 = arith.constant 0 : index
    %294 = vector.load %arg7[%c0_70, %c0_71] : memref<1x64xf32, #tpu.memory_space<vmem>>, vector<1x64xf32>
    %295 = tpu.concatenate %22, %32, %42, %52 in 1 : vector<7x16xf32>, vector<7x16xf32>, vector<7x16xf32>, vector<7x16xf32> -> vector<7x64xf32>
    %cst_72 = arith.constant dense<0.000000e+00> : vector<7x64xf32>
    %296 = tpu.matmul %295, %293, %cst_72 {dimension_numbers = #tpu.dot_dimension_numbers<[1], [0], [0], [1], [0, 0, 1, 1], [], []>} : vector<7x64xf32>, vector<64x64xf32>, vector<7x64xf32> -> vector<7x64xf32>
    %297 = vector.broadcast %294 : vector<1x64xf32> to vector<7x64xf32>
    %298 = arith.addf %296, %297 : vector<7x64xf32>
    %cst_73 = arith.constant 0.000000e+00 : f32
    %299 = vector.broadcast %cst_73 : f32 to vector<7x64xf32>
    %300 = arith.maximumf %298, %299 : vector<7x64xf32>
    %301 = vector.extract_strided_slice %300 {offsets = [0, 0], sizes = [1, 64], strides = [1, 1]} : vector<7x64xf32> to vector<1x64xf32>
    %302 = vector.extract_strided_slice %300 {offsets = [1, 0], sizes = [1, 64], strides = [1, 1]} : vector<7x64xf32> to vector<1x64xf32>
    %303 = vector.extract_strided_slice %300 {offsets = [2, 0], sizes = [1, 64], strides = [1, 1]} : vector<7x64xf32> to vector<1x64xf32>
    %304 = vector.extract_strided_slice %300 {offsets = [3, 0], sizes = [1, 64], strides = [1, 1]} : vector<7x64xf32> to vector<1x64xf32>
    %305 = vector.extract_strided_slice %300 {offsets = [4, 0], sizes = [1, 64], strides = [1, 1]} : vector<7x64xf32> to vector<1x64xf32>
    %306 = vector.extract_strided_slice %300 {offsets = [5, 0], sizes = [1, 64], strides = [1, 1]} : vector<7x64xf32> to vector<1x64xf32>
    %307 = vector.extract_strided_slice %300 {offsets = [6, 0], sizes = [1, 64], strides = [1, 1]} : vector<7x64xf32> to vector<1x64xf32>
    %308 = tpu.concatenate %62, %72, %82, %92 in 1 : vector<7x16xf32>, vector<7x16xf32>, vector<7x16xf32>, vector<7x16xf32> -> vector<7x64xf32>
    %cst_74 = arith.constant dense<0.000000e+00> : vector<7x64xf32>
    %309 = tpu.matmul %308, %293, %cst_74 {dimension_numbers = #tpu.dot_dimension_numbers<[1], [0], [0], [1], [0, 0, 1, 1], [], []>} : vector<7x64xf32>, vector<64x64xf32>, vector<7x64xf32> -> vector<7x64xf32>
    %310 = vector.broadcast %294 : vector<1x64xf32> to vector<7x64xf32>
    %311 = arith.addf %309, %310 : vector<7x64xf32>
    %cst_75 = arith.constant 0.000000e+00 : f32
    %312 = vector.broadcast %cst_75 : f32 to vector<7x64xf32>
    %313 = arith.maximumf %311, %312 : vector<7x64xf32>
    %314 = vector.extract_strided_slice %313 {offsets = [0, 0], sizes = [1, 64], strides = [1, 1]} : vector<7x64xf32> to vector<1x64xf32>
    %315 = vector.extract_strided_slice %313 {offsets = [1, 0], sizes = [1, 64], strides = [1, 1]} : vector<7x64xf32> to vector<1x64xf32>
    %316 = vector.extract_strided_slice %313 {offsets = [2, 0], sizes = [1, 64], strides = [1, 1]} : vector<7x64xf32> to vector<1x64xf32>
    %317 = vector.extract_strided_slice %313 {offsets = [3, 0], sizes = [1, 64], strides = [1, 1]} : vector<7x64xf32> to vector<1x64xf32>
    %318 = vector.extract_strided_slice %313 {offsets = [4, 0], sizes = [1, 64], strides = [1, 1]} : vector<7x64xf32> to vector<1x64xf32>
    %319 = vector.extract_strided_slice %313 {offsets = [5, 0], sizes = [1, 64], strides = [1, 1]} : vector<7x64xf32> to vector<1x64xf32>
    %320 = vector.extract_strided_slice %313 {offsets = [6, 0], sizes = [1, 64], strides = [1, 1]} : vector<7x64xf32> to vector<1x64xf32>
    %321 = tpu.concatenate %102, %112, %122, %132 in 1 : vector<7x16xf32>, vector<7x16xf32>, vector<7x16xf32>, vector<7x16xf32> -> vector<7x64xf32>
    %cst_76 = arith.constant dense<0.000000e+00> : vector<7x64xf32>
    %322 = tpu.matmul %321, %293, %cst_76 {dimension_numbers = #tpu.dot_dimension_numbers<[1], [0], [0], [1], [0, 0, 1, 1], [], []>} : vector<7x64xf32>, vector<64x64xf32>, vector<7x64xf32> -> vector<7x64xf32>
    %323 = vector.broadcast %294 : vector<1x64xf32> to vector<7x64xf32>
    %324 = arith.addf %322, %323 : vector<7x64xf32>
    %cst_77 = arith.constant 0.000000e+00 : f32
    %325 = vector.broadcast %cst_77 : f32 to vector<7x64xf32>
    %326 = arith.maximumf %324, %325 : vector<7x64xf32>
    %327 = vector.extract_strided_slice %326 {offsets = [0, 0], sizes = [1, 64], strides = [1, 1]} : vector<7x64xf32> to vector<1x64xf32>
    %328 = vector.extract_strided_slice %326 {offsets = [1, 0], sizes = [1, 64], strides = [1, 1]} : vector<7x64xf32> to vector<1x64xf32>
    %329 = vector.extract_strided_slice %326 {offsets = [2, 0], sizes = [1, 64], strides = [1, 1]} : vector<7x64xf32> to vector<1x64xf32>
    %330 = vector.extract_strided_slice %326 {offsets = [3, 0], sizes = [1, 64], strides = [1, 1]} : vector<7x64xf32> to vector<1x64xf32>
    %331 = vector.extract_strided_slice %326 {offsets = [4, 0], sizes = [1, 64], strides = [1, 1]} : vector<7x64xf32> to vector<1x64xf32>
    %332 = vector.extract_strided_slice %326 {offsets = [5, 0], sizes = [1, 64], strides = [1, 1]} : vector<7x64xf32> to vector<1x64xf32>
    %333 = vector.extract_strided_slice %326 {offsets = [6, 0], sizes = [1, 64], strides = [1, 1]} : vector<7x64xf32> to vector<1x64xf32>
    %334 = tpu.concatenate %142, %152, %162, %172 in 1 : vector<7x16xf32>, vector<7x16xf32>, vector<7x16xf32>, vector<7x16xf32> -> vector<7x64xf32>
    %cst_78 = arith.constant dense<0.000000e+00> : vector<7x64xf32>
    %335 = tpu.matmul %334, %293, %cst_78 {dimension_numbers = #tpu.dot_dimension_numbers<[1], [0], [0], [1], [0, 0, 1, 1], [], []>} : vector<7x64xf32>, vector<64x64xf32>, vector<7x64xf32> -> vector<7x64xf32>
    %336 = vector.broadcast %294 : vector<1x64xf32> to vector<7x64xf32>
    %337 = arith.addf %335, %336 : vector<7x64xf32>
    %cst_79 = arith.constant 0.000000e+00 : f32
    %338 = vector.broadcast %cst_79 : f32 to vector<7x64xf32>
    %339 = arith.maximumf %337, %338 : vector<7x64xf32>
    %340 = vector.extract_strided_slice %339 {offsets = [0, 0], sizes = [1, 64], strides = [1, 1]} : vector<7x64xf32> to vector<1x64xf32>
    %341 = vector.extract_strided_slice %339 {offsets = [1, 0], sizes = [1, 64], strides = [1, 1]} : vector<7x64xf32> to vector<1x64xf32>
    %342 = vector.extract_strided_slice %339 {offsets = [2, 0], sizes = [1, 64], strides = [1, 1]} : vector<7x64xf32> to vector<1x64xf32>
    %343 = vector.extract_strided_slice %339 {offsets = [3, 0], sizes = [1, 64], strides = [1, 1]} : vector<7x64xf32> to vector<1x64xf32>
    %344 = vector.extract_strided_slice %339 {offsets = [4, 0], sizes = [1, 64], strides = [1, 1]} : vector<7x64xf32> to vector<1x64xf32>
    %345 = vector.extract_strided_slice %339 {offsets = [5, 0], sizes = [1, 64], strides = [1, 1]} : vector<7x64xf32> to vector<1x64xf32>
    %346 = vector.extract_strided_slice %339 {offsets = [6, 0], sizes = [1, 64], strides = [1, 1]} : vector<7x64xf32> to vector<1x64xf32>
    %347 = tpu.concatenate %182, %192, %202, %212 in 1 : vector<7x16xf32>, vector<7x16xf32>, vector<7x16xf32>, vector<7x16xf32> -> vector<7x64xf32>
    %cst_80 = arith.constant dense<0.000000e+00> : vector<7x64xf32>
    %348 = tpu.matmul %347, %293, %cst_80 {dimension_numbers = #tpu.dot_dimension_numbers<[1], [0], [0], [1], [0, 0, 1, 1], [], []>} : vector<7x64xf32>, vector<64x64xf32>, vector<7x64xf32> -> vector<7x64xf32>
    %349 = vector.broadcast %294 : vector<1x64xf32> to vector<7x64xf32>
    %350 = arith.addf %348, %349 : vector<7x64xf32>
    %cst_81 = arith.constant 0.000000e+00 : f32
    %351 = vector.broadcast %cst_81 : f32 to vector<7x64xf32>
    %352 = arith.maximumf %350, %351 : vector<7x64xf32>
    %353 = vector.extract_strided_slice %352 {offsets = [0, 0], sizes = [1, 64], strides = [1, 1]} : vector<7x64xf32> to vector<1x64xf32>
    %354 = vector.extract_strided_slice %352 {offsets = [1, 0], sizes = [1, 64], strides = [1, 1]} : vector<7x64xf32> to vector<1x64xf32>
    %355 = vector.extract_strided_slice %352 {offsets = [2, 0], sizes = [1, 64], strides = [1, 1]} : vector<7x64xf32> to vector<1x64xf32>
    %356 = vector.extract_strided_slice %352 {offsets = [3, 0], sizes = [1, 64], strides = [1, 1]} : vector<7x64xf32> to vector<1x64xf32>
    %357 = vector.extract_strided_slice %352 {offsets = [4, 0], sizes = [1, 64], strides = [1, 1]} : vector<7x64xf32> to vector<1x64xf32>
    %358 = vector.extract_strided_slice %352 {offsets = [5, 0], sizes = [1, 64], strides = [1, 1]} : vector<7x64xf32> to vector<1x64xf32>
    %359 = vector.extract_strided_slice %352 {offsets = [6, 0], sizes = [1, 64], strides = [1, 1]} : vector<7x64xf32> to vector<1x64xf32>
    %360 = tpu.concatenate %222, %232, %242, %252 in 1 : vector<7x16xf32>, vector<7x16xf32>, vector<7x16xf32>, vector<7x16xf32> -> vector<7x64xf32>
    %cst_82 = arith.constant dense<0.000000e+00> : vector<7x64xf32>
    %361 = tpu.matmul %360, %293, %cst_82 {dimension_numbers = #tpu.dot_dimension_numbers<[1], [0], [0], [1], [0, 0, 1, 1], [], []>} : vector<7x64xf32>, vector<64x64xf32>, vector<7x64xf32> -> vector<7x64xf32>
    %362 = vector.broadcast %294 : vector<1x64xf32> to vector<7x64xf32>
    %363 = arith.addf %361, %362 : vector<7x64xf32>
    %cst_83 = arith.constant 0.000000e+00 : f32
    %364 = vector.broadcast %cst_83 : f32 to vector<7x64xf32>
    %365 = arith.maximumf %363, %364 : vector<7x64xf32>
    %366 = vector.extract_strided_slice %365 {offsets = [0, 0], sizes = [1, 64], strides = [1, 1]} : vector<7x64xf32> to vector<1x64xf32>
    %367 = vector.extract_strided_slice %365 {offsets = [1, 0], sizes = [1, 64], strides = [1, 1]} : vector<7x64xf32> to vector<1x64xf32>
    %368 = vector.extract_strided_slice %365 {offsets = [2, 0], sizes = [1, 64], strides = [1, 1]} : vector<7x64xf32> to vector<1x64xf32>
    %369 = vector.extract_strided_slice %365 {offsets = [3, 0], sizes = [1, 64], strides = [1, 1]} : vector<7x64xf32> to vector<1x64xf32>
    %370 = vector.extract_strided_slice %365 {offsets = [4, 0], sizes = [1, 64], strides = [1, 1]} : vector<7x64xf32> to vector<1x64xf32>
    %371 = vector.extract_strided_slice %365 {offsets = [5, 0], sizes = [1, 64], strides = [1, 1]} : vector<7x64xf32> to vector<1x64xf32>
    %372 = vector.extract_strided_slice %365 {offsets = [6, 0], sizes = [1, 64], strides = [1, 1]} : vector<7x64xf32> to vector<1x64xf32>
    %373 = tpu.concatenate %262, %272, %282, %292 in 1 : vector<7x16xf32>, vector<7x16xf32>, vector<7x16xf32>, vector<7x16xf32> -> vector<7x64xf32>
    %cst_84 = arith.constant dense<0.000000e+00> : vector<7x64xf32>
    %374 = tpu.matmul %373, %293, %cst_84 {dimension_numbers = #tpu.dot_dimension_numbers<[1], [0], [0], [1], [0, 0, 1, 1], [], []>} : vector<7x64xf32>, vector<64x64xf32>, vector<7x64xf32> -> vector<7x64xf32>
    %375 = vector.broadcast %294 : vector<1x64xf32> to vector<7x64xf32>
    %376 = arith.addf %374, %375 : vector<7x64xf32>
    %cst_85 = arith.constant 0.000000e+00 : f32
    %377 = vector.broadcast %cst_85 : f32 to vector<7x64xf32>
    %378 = arith.maximumf %376, %377 : vector<7x64xf32>
    %379 = vector.extract_strided_slice %378 {offsets = [0, 0], sizes = [1, 64], strides = [1, 1]} : vector<7x64xf32> to vector<1x64xf32>
    %380 = vector.extract_strided_slice %378 {offsets = [1, 0], sizes = [1, 64], strides = [1, 1]} : vector<7x64xf32> to vector<1x64xf32>
    %381 = vector.extract_strided_slice %378 {offsets = [2, 0], sizes = [1, 64], strides = [1, 1]} : vector<7x64xf32> to vector<1x64xf32>
    %382 = vector.extract_strided_slice %378 {offsets = [3, 0], sizes = [1, 64], strides = [1, 1]} : vector<7x64xf32> to vector<1x64xf32>
    %383 = vector.extract_strided_slice %378 {offsets = [4, 0], sizes = [1, 64], strides = [1, 1]} : vector<7x64xf32> to vector<1x64xf32>
    %384 = vector.extract_strided_slice %378 {offsets = [5, 0], sizes = [1, 64], strides = [1, 1]} : vector<7x64xf32> to vector<1x64xf32>
    %385 = vector.extract_strided_slice %378 {offsets = [6, 0], sizes = [1, 64], strides = [1, 1]} : vector<7x64xf32> to vector<1x64xf32>
    %386 = tpu.concatenate %301, %302, %303, %304, %305, %306, %307, %314, %315, %316, %317, %318, %319, %320, %327, %328 in 1 : vector<1x64xf32>, vector<1x64xf32>, vector<1x64xf32>, vector<1x64xf32>, vector<1x64xf32>, vector<1x64xf32>, vector<1x64xf32>, vector<1x64xf32>, vector<1x64xf32>, vector<1x64xf32>, vector<1x64xf32>, vector<1x64xf32>, vector<1x64xf32>, vector<1x64xf32>, vector<1x64xf32>, vector<1x64xf32> -> vector<1x1024xf32>
    %387 = tpu.concatenate %329, %330, %331, %332, %333, %340, %341, %342, %343, %344, %345, %346, %353, %354, %355, %356 in 1 : vector<1x64xf32>, vector<1x64xf32>, vector<1x64xf32>, vector<1x64xf32>, vector<1x64xf32>, vector<1x64xf32>, vector<1x64xf32>, vector<1x64xf32>, vector<1x64xf32>, vector<1x64xf32>, vector<1x64xf32>, vector<1x64xf32>, vector<1x64xf32>, vector<1x64xf32>, vector<1x64xf32>, vector<1x64xf32> -> vector<1x1024xf32>
    %388 = tpu.concatenate %357, %358, %359, %366, %367, %368, %369, %370, %371, %372, %379, %380, %381, %382, %383, %384 in 1 : vector<1x64xf32>, vector<1x64xf32>, vector<1x64xf32>, vector<1x64xf32>, vector<1x64xf32>, vector<1x64xf32>, vector<1x64xf32>, vector<1x64xf32>, vector<1x64xf32>, vector<1x64xf32>, vector<1x64xf32>, vector<1x64xf32>, vector<1x64xf32>, vector<1x64xf32>, vector<1x64xf32>, vector<1x64xf32> -> vector<1x1024xf32>
    %389 = tpu.concatenate %386, %387, %388, %385 in 1 : vector<1x1024xf32>, vector<1x1024xf32>, vector<1x1024xf32>, vector<1x64xf32> -> vector<1x3136xf32>
    %c0_86 = arith.constant 0 : index
    %c0_87 = arith.constant 0 : index
    %390 = vector.load %arg8[%c0_86, %c0_87] : memref<3136x32xf32, #tpu.memory_space<vmem>>, vector<3136x32xf32>
    %cst_88 = arith.constant dense<0.000000e+00> : vector<1x32xf32>
    %391 = tpu.matmul %389, %390, %cst_88 {dimension_numbers = #tpu.dot_dimension_numbers<[1], [0], [0], [1], [0, 0, 1, 1], [], []>} : vector<1x3136xf32>, vector<3136x32xf32>, vector<1x32xf32> -> vector<1x32xf32>
    %c0_89 = arith.constant 0 : index
    %c0_90 = arith.constant 0 : index
    %392 = vector.load %arg9[%c0_89, %c0_90] : memref<1x32xf32, #tpu.memory_space<vmem>>, vector<1x32xf32>
    %393 = arith.addf %391, %392 : vector<1x32xf32>
    %cst_91 = arith.constant 0.000000e+00 : f32
    %394 = vector.broadcast %cst_91 : f32 to vector<1x32xf32>
    %395 = arith.maximumf %393, %394 : vector<1x32xf32>
    %c0_92 = arith.constant 0 : index
    %c0_93 = arith.constant 0 : index
    %396 = vector.load %arg10[%c0_92, %c0_93] : memref<32x8xf32, #tpu.memory_space<vmem>>, vector<32x8xf32>
    %cst_94 = arith.constant dense<0.000000e+00> : vector<1x8xf32>
    %397 = tpu.matmul %395, %396, %cst_94 {dimension_numbers = #tpu.dot_dimension_numbers<[1], [0], [0], [1], [0, 0, 1, 1], [], []>} : vector<1x32xf32>, vector<32x8xf32>, vector<1x8xf32> -> vector<1x8xf32>
    %c0_95 = arith.constant 0 : index
    %c0_96 = arith.constant 0 : index
    %398 = vector.load %arg11[%c0_95, %c0_96] : memref<1x8xf32, #tpu.memory_space<vmem>>, vector<1x8xf32>
    %399 = arith.addf %397, %398 : vector<1x8xf32>
    %c0_97 = arith.constant 0 : index
    %c0_98 = arith.constant 0 : index
    %c0_99 = arith.constant 0 : index
    %400 = vector.load %arg12[%c0_97, %c0_98, %c0_99] : memref<1x1x8xf32, #tpu.memory_space<vmem>>, vector<1x1x8xf32>
    %401 = vector.shape_cast %400 : vector<1x1x8xf32> to vector<1x8xf32>
    %402 = vector.shape_cast %399 : vector<1x8xf32> to vector<1x1x8xf32>
    tpu.vector_store %arg12[%c0_97, %c0_98, %c0_99], %402 {strides = array<i32>} : memref<1x1x8xf32, #tpu.memory_space<vmem>>, vector<1x1x8xf32>,
    return
  }
  func.func @transform_0(%arg0: i32) -> (i32, i32, i32) {
    %c0_i32 = arith.constant 0 : i32
    %c0_i32_0 = arith.constant 0 : i32
    %c0_i32_1 = arith.constant 0 : i32
    return %arg0, %c0_i32, %c0_i32_0 : i32, i32, i32
  }
  func.func @transform_1(%arg0: i32) -> (i32, i32) {
    %c0_i32 = arith.constant 0 : i32
    %c0_i32_0 = arith.constant 0 : i32
    %c0_i32_1 = arith.constant 0 : i32
    return %c0_i32, %c0_i32_0 : i32, i32
  }
  func.func @transform_2(%arg0: i32) -> (i32, i32) {
    %c0_i32 = arith.constant 0 : i32
    %c0_i32_0 = arith.constant 0 : i32
    %c0_i32_1 = arith.constant 0 : i32
    return %c0_i32, %c0_i32_0 : i32, i32
  }
  func.func @transform_3(%arg0: i32) -> (i32, i32) {
    %c0_i32 = arith.constant 0 : i32
    %c0_i32_0 = arith.constant 0 : i32
    %c0_i32_1 = arith.constant 0 : i32
    return %c0_i32, %c0_i32_0 : i32, i32
  }
  func.func @transform_4(%arg0: i32) -> (i32, i32) {
    %c0_i32 = arith.constant 0 : i32
    %c0_i32_0 = arith.constant 0 : i32
    %c0_i32_1 = arith.constant 0 : i32
    return %c0_i32, %c0_i32_0 : i32, i32
  }
  func.func @transform_5(%arg0: i32) -> (i32, i32) {
    %c0_i32 = arith.constant 0 : i32
    %c0_i32_0 = arith.constant 0 : i32
    %c0_i32_1 = arith.constant 0 : i32
    return %c0_i32, %c0_i32_0 : i32, i32
  }
  func.func @transform_6(%arg0: i32) -> (i32, i32) {
    %c0_i32 = arith.constant 0 : i32
    %c0_i32_0 = arith.constant 0 : i32
    %c0_i32_1 = arith.constant 0 : i32
    return %c0_i32, %c0_i32_0 : i32, i32
  }
  func.func @transform_7(%arg0: i32) -> (i32, i32) {
    %c0_i32 = arith.constant 0 : i32
    %c0_i32_0 = arith.constant 0 : i32
    %c0_i32_1 = arith.constant 0 : i32
    return %c0_i32, %c0_i32_0 : i32, i32
  }
  func.func @transform_8(%arg0: i32) -> (i32, i32) {
    %c0_i32 = arith.constant 0 : i32
    %c0_i32_0 = arith.constant 0 : i32
    %c0_i32_1 = arith.constant 0 : i32
    return %c0_i32, %c0_i32_0 : i32, i32
  }
  func.func @transform_9(%arg0: i32) -> (i32, i32) {
    %c0_i32 = arith.constant 0 : i32
    %c0_i32_0 = arith.constant 0 : i32
    %c0_i32_1 = arith.constant 0 : i32
    return %c0_i32, %c0_i32_0 : i32, i32
  }
  func.func @transform_10(%arg0: i32) -> (i32, i32) {
    %c0_i32 = arith.constant 0 : i32
    %c0_i32_0 = arith.constant 0 : i32
    %c0_i32_1 = arith.constant 0 : i32
    return %c0_i32, %c0_i32_0 : i32, i32
  }
  func.func @transform_11(%arg0: i32) -> (i32, i32, i32) {
    %c0_i32 = arith.constant 0 : i32
    %c0_i32_0 = arith.constant 0 : i32
    %c0_i32_1 = arith.constant 0 : i32
    return %arg0, %c0_i32, %c0_i32_0 : i32, i32, i32
  }
}

</mosaic_0001>

<bundles_post_ra>
// kernel: fwd.1
= control target key start
LH: loop header
LB: loop body
LE: loop exit
PB: predicated region body
PF: predicated region fallthrough
CT: control target
= control target key end

     0   :  { %s8069_s17 = smov 0   ;;  %s10740_s0 = inlined_call_operand.vmem [shape: f32[2,225,16], index: 0, kind: input, shape index: {}]   ;;  %s10741_s1 = inlined_call_operand.vmem [shape: f32[16,8], index: 1, kind: input, shape index: {}]   ;;  %s10742_s2 = inlined_call_operand.vmem [shape: f32[1,8], index: 2, kind: input, shape index: {}]   ;;  %s10743_s3 = inlined_call_operand.vmem [shape: f32[32,16], index: 3, kind: input, shape index: {}]   ;;  %s10744_s4 = inlined_call_operand.vmem [shape: f32[1,16], index: 4, kind: input, shape index: {}]   ;;  %s10745_s5 = inlined_call_operand.vmem [shape: f32[64,64], index: 5, kind: input, shape index: {}]   ;;  %s10746_s6 = inlined_call_operand.vmem [shape: f32[1,64], index: 6, kind: input, shape index: {}]   ;;  %s10747_s7 = inlined_call_operand.vmem [shape: f32[3136,32], index: 7, kind: input, shape index: {}]   ;;  %s10748_s8 = inlined_call_operand.vmem [shape: f32[1,32], index: 8, kind: input, shape index: {}]   ;;  %s10749_s9 = inlined_call_operand.vmem [shape: f32[32,8], index: 9, kind: input, shape index: {}]   ;;  %s10750_s10 = inlined_call_operand.vmem [shape: f32[1,8], index: 10, kind: input, shape index: {}]   ;;  %s10751_s11 = inlined_call_operand.vmem [shape: f32[2,1,8], index: 11, kind: output, shape index: {}]  }
   0x1 LB: > { %s5959_s18 = sadd.s32 4294967295, %s7998_s17   ;;  %p5963_p0 = scmp.ge.s32.totalorder %s7998_s17, 1  ;;  %s7998_s17 = sphi %s8069_s17, %s21_s17  }
   0x2   : > { %p337_p1 = scmp.lt.s32.totalorder %s7998_s17, 3 }
   0x4   : > { %p338_p2 = pnand %p5963_p0, %p337_p1 }
   0x5   : > { %v412_v0 = vld [vmem:[%s10741_s1] sm:$0xff] (!%p338_p2)  ;;  %v413_v1 = vld [vmem:[%s10741_s1 + $0x8] sm:$0xff] (!%p338_p2)  ;;  %p375_p3 = scmp.lt.s32.totalorder (!%p338_p2), %s5959_s18, 1  ;;  %v8000_v2 = vmov (!%p338_p2), 0.0|0.0   ;;  %vm8001_vm0 = vmmov (!%p338_p2), 0   ;;  %v8002_v4 = vmov (!%p338_p2), 0.0  }
   0x6   : > { %341 = sbr.rel (%p338_p2) target bundleno = 1770 (0x6ea), region = 64  ;;  %7266 = vmatprep.subr.bf16.mxu0 (!%p338_p2), %v8000_v2  ;;  %v7267_v3 = vpack.c.bf16 (!%p338_p2), %v413_v1, %v412_v0  ;;  %6708 = vmatprep.mubr.msk.f32.mxu0 (!%p338_p2), %vm8001_vm0, %v8002_v4  ;;  %vm414_vm1 = vcmask (!%p338_p2), 130048   ;;  %v8217_v35 = vld [vmem:[%s10742_s2] ss:$0 sm:$0xff] (!%p338_p2)  ;;  %v807_v41 = vld [vmem:[%s10743_s3 + $0x8] sm:$0xff] (!%p338_p2)  ;;  %v808_v49 = vld [vmem:[%s10743_s3 + $0x10] sm:$0xff] (!%p338_p2) }
   0x7   : > { %7269 = vmatprep.subr.bf16.mxu1 (!%p338_p2), %v8000_v2  ;;  %6803 = vmatprep.mubr.msk.f32.mxu1 (!%p338_p2), %vm8001_vm0, %v8002_v4  ;;  %v806_v40 = vld [vmem:[%s10743_s3] sm:$0xff] (!%p338_p2)  ;;  %v809_v50 = vld [vmem:[%s10743_s3 + $0x18] sm:$0xff] (!%p338_p2)  ;;  %s8003_s20 = smov (!%p338_p2), 8   ;;  %s8004_s21 = smov (!%p338_p2), 24   ;;  %vm816_vm2 = vcmask (!%p338_p2), 1040384   ;;  %vm1320_vm3 = vcmask (!%p338_p2), 1046528  }
   0x8   : > { %7268 = vmatpush3.bf16.msra.mxu0 (!%p338_p2), %v7267_v3  ;;  %v8229_v45 = vpack.c.bf16 (!%p338_p2), %v807_v41, %v806_v40  ;;  %v8247_v54 = vpack.c.bf16 (!%p338_p2), %v809_v50, %v808_v49  ;;  %s8005_s22 = smov (!%p338_p2), 16   ;;  %vm829_vm4 = vcmask (!%p338_p2), 64512   ;;  %vm832_vm5 = vcmask (!%p338_p2), 195584   ;;  %s8006_s27 = smov (!%p338_p2), 32  }
   0x9   : > { %7353 = vmatprep.subr.bf16.mxu0 (!%p338_p2), %v8000_v2  ;;  %vm840_vm6 = vcmask (!%p338_p2), 261120   ;;  %vm1243_vm7 = vcmask (!%p338_p2), 1041408   ;;  %vm1458_vm8 = vcmask (!%p338_p2), 1042432   ;;  %vm1672_vm9 = vcmask (!%p338_p2), 1043456   ;;  %s8007_s28 = smov (!%p338_p2), 48   ;;  %s8008_s29 = smov (!%p338_p2), 64  }
   0xa   : > { %7271 = vmatpush3.bf16.msra.mxu1 (!%p338_p2), %v8229_v45  ;;  %vm1886_vm10 = vcmask (!%p338_p2), 1044480   ;;  %vm2090_vm11 = vcmask (!%p338_p2), 1045504   ;;  %vm3712_vm12 = vcmask (!%p338_p2), 392192   ;;  %vm3720_vm13 = vcmask (!%p338_p2), 523264  }
   0xb   : > { %7272 = vmatprep.subr.bf16.mxu1 (!%p338_p2), %v8000_v2  ;;  %vm5910_vm14 = vcmask (!%p338_p2), 57344  }
   0xd   : > { %s10753_s18 = smov (!%p375_p3, %s5959_s18), 1 }
   0xe   : > { %s7923_s23 = smul.u32 232, %s10753_s18  ;;  %7274 = vmatpush3.bf16.msra.mxu1 %v8247_v54 }
   0xf   : > { %7275 = vmatprep.subr.bf16.mxu1 %v8000_v2 }
  0x10   : > { %s8096_s26 = scalar_lea.vmem %s10740_s0, %s7923_s23 }
  0x11   : > { %v383_v5 = vld [vmem:[%s8096_s26] sm:$0xff]  ;;  %v384_v6 = vld [vmem:[%s8096_s26 + $0x8] sm:$0xff]  ;;  %v385_v7 = vld [vmem:[%s8096_s26 + $0x10] sm:$0xff] }
  0x12   : > { %6709 = vmatmul.mubr.msk.f32.vlgmr.msra.gmra.mrb[0].mxu0 %vm414_vm1, %v383_v5  ;;  %v386_v8 = vld [vmem:[%s8096_s26 + $0x18] sm:$0xff]  ;;  %v387_v9 = vld [vmem:[%s8096_s26 + $0x20] sm:$0xff]  ;;  %v388_v10 = vld [vmem:[%s8096_s26 + $0x28] sm:$0xff] }
  0x13   : > { %6711 = vmatprep.mubr.msk.f32.mxu0 %vm8001_vm0, %v8002_v4  ;;  %v389_v11 = vld [vmem:[%s8096_s26 + $0x30] sm:$0xff]  ;;  %v390_v12 = vld [vmem:[%s8096_s26 + $0x38] sm:$0xff]  ;;  %v391_v13 = vld [vmem:[%s8096_s26 + $0x40] sm:$0xff]  ;;  %7355 = vmatpush3.bf16.msra.mxu0 %v8229_v45 }
  0x14   : > { %v392_v14 = vld [vmem:[%s8096_s26 + $0x48] sm:$0xff]  ;;  %v393_v15 = vld [vmem:[%s8096_s26 + $0x50] sm:$0xff]  ;;  %v394_v16 = vld [vmem:[%s8096_s26 + $0x58] sm:$0xff]  ;;  %7356 = vmatprep.subr.bf16.mxu0 %v8000_v2 }
  0x15   : > { %v395_v17 = vld [vmem:[%s8096_s26 + $0x60] sm:$0xff]  ;;  %v396_v18 = vld [vmem:[%s8096_s26 + $0x68] sm:$0xff]  ;;  %v397_v19 = vld [vmem:[%s8096_s26 + $0x70] sm:$0xff] }
  0x16   : > { %6712 = vmatmul.mubr.msk.f32.gmra.mrb[2].mxu0 %vm414_vm1, %v384_v6  ;;  %v398_v20 = vld [vmem:[%s8096_s26 + $0x78] sm:$0xff]  ;;  %v399_v21 = vld [vmem:[%s8096_s26 + $0x80] sm:$0xff]  ;;  %v400_v22 = vld [vmem:[%s8096_s26 + $0x88] sm:$0xff] }
  0x17   : > { %6714 = vmatprep.mubr.msk.f32.mxu0 %vm8001_vm0, %v8002_v4  ;;  %v401_v23 = vld [vmem:[%s8096_s26 + $0x90] sm:$0xff]  ;;  %v402_v24 = vld [vmem:[%s8096_s26 + $0x98] sm:$0xff]  ;;  %v403_v25 = vld [vmem:[%s8096_s26 + $0xa0] sm:$0xff]  ;;  %7358 = vmatpush3.bf16.msra.mxu0 %v8247_v54 }
  0x18   : > { %v404_v26 = vld [vmem:[%s8096_s26 + $0xa8] sm:$0xff]  ;;  %v405_v27 = vld [vmem:[%s8096_s26 + $0xb0] sm:$0xff]  ;;  %v406_v28 = vld [vmem:[%s8096_s26 + $0xb8] sm:$0xff]  ;;  %7365 = vmatprep.subr.bf16.mxu0 %v8000_v2 }
  0x19   : > { %v407_v29 = vld [vmem:[%s8096_s26 + $0xc0] sm:$0xff]  ;;  %v408_v30 = vld [vmem:[%s8096_s26 + $0xc8] sm:$0xff]  ;;  %v409_v31 = vld [vmem:[%s8096_s26 + $0xd0] sm:$0xff] }
  0x1a   : > { %6715 = vmatmul.mubr.msk.f32.gmra.mrb[4].mxu0 %vm414_vm1, %v385_v7  ;;  %v410_v32 = vld [vmem:[%s8096_s26 + $0xd8] sm:$0xff]  ;;  %v411_v33 = vld [vmem:[%s8096_s26 + $0xe0] sm:$0x1] }
  0x1b   : > { %6717 = vmatprep.mubr.msk.f32.mxu0 %vm8001_vm0, %v8002_v4 }
  0x1e   : > { %6718 = vmatmul.mubr.msk.f32.gmra.mrb[6].mxu0 %vm414_vm1, %v386_v8 }
  0x1f   : > { %6720 = vmatprep.mubr.msk.f32.mxu0 %vm8001_vm0, %v8002_v4 }
  0x22   : > { %6721 = vmatmul.mubr.msk.f32.gmra.mrb[8].mxu0 %vm414_vm1, %v387_v9 }
  0x23   : > { %6723 = vmatprep.mubr.msk.f32.mxu0 %vm8001_vm0, %v8002_v4 }
  0x26   : > { %6724 = vmatmul.mubr.msk.f32.gmra.mrb[10].mxu0 %vm414_vm1, %v388_v10 }
  0x27   : > { %6726 = vmatprep.mubr.msk.f32.mxu0 %vm8001_vm0, %v8002_v4 }
  0x2a   : > { %6727 = vmatmul.mubr.msk.f32.gmra.mrb[12].mxu0 %vm414_vm1, %v389_v11 }
  0x2b   : > { %6729 = vmatprep.mubr.msk.f32.mxu0 %vm8001_vm0, %v8002_v4 }
  0x2e   : > { %6730 = vmatmul.mubr.msk.f32.gmra.mrb[14].mxu0 %vm414_vm1, %v390_v12 }
  0x2f   : > { %6732 = vmatprep.mubr.msk.f32.mxu0 %vm8001_vm0, %v8002_v4 }
  0x32   : > { %6733 = vmatmul.mubr.msk.f32.gmra.mrb[16].mxu0 %vm414_vm1, %v391_v13 }
  0x33   : > { %6735 = vmatprep.mubr.msk.f32.mxu0 %vm8001_vm0, %v8002_v4 }
  0x36   : > { %6736 = vmatmul.mubr.msk.f32.gmra.mrb[18].mxu0 %vm414_vm1, %v392_v14 }
  0x37   : > { %6738 = vmatprep.mubr.msk.f32.mxu0 %vm8001_vm0, %v8002_v4 }
  0x3a   : > { %6739 = vmatmul.mubr.msk.f32.gmra.mrb[20].mxu0 %vm414_vm1, %v393_v15 }
  0x3b   : > { %6741 = vmatprep.mubr.msk.f32.mxu0 %vm8001_vm0, %v8002_v4 }
  0x3e   : > { %6742 = vmatmul.mubr.msk.f32.gmra.mrb[22].mxu0 %vm414_vm1, %v394_v16 }
  0x3f   : > { %6744 = vmatprep.mubr.msk.f32.mxu0 %vm8001_vm0, %v8002_v4 }
  0x42   : > { %6745 = vmatmul.mubr.msk.f32.gmra.mrb[24].mxu0 %vm414_vm1, %v395_v17 }
  0x43   : > { %6747 = vmatprep.mubr.msk.f32.mxu0 %vm8001_vm0, %v8002_v4 }
  0x46   : > { %6748 = vmatmul.mubr.msk.f32.gmra.mrb[26].mxu0 %vm414_vm1, %v396_v18 }
  0x47   : > { %6750 = vmatprep.mubr.msk.f32.mxu0 %vm8001_vm0, %v8002_v4 }
  0x4a   : > { %6751 = vmatmul.mubr.msk.f32.gmra.mrb[28].mxu0 %vm414_vm1, %v397_v19 }
  0x4b   : > { %6753 = vmatprep.mubr.msk.f32.mxu0 %vm8001_vm0, %v8002_v4 }
  0x4e   : > { %6754 = vmatmul.mubr.msk.f32.gmra.mrb[30].mxu0 %vm414_vm1, %v398_v20 }
  0x4f   : > { %6756 = vmatprep.mubr.msk.f32.mxu0 %vm8001_vm0, %v8002_v4 }
  0x52   : > { %6757 = vmatmul.mubr.msk.f32.gmra.mrb[32].mxu0 %vm414_vm1, %v399_v21 }
  0x53   : > { %6759 = vmatprep.mubr.msk.f32.mxu0 %vm8001_vm0, %v8002_v4 }
  0x56   : > { %6760 = vmatmul.mubr.msk.f32.gmra.mrb[34].mxu0 %vm414_vm1, %v400_v22 }
  0x57   : > { %6762 = vmatprep.mubr.msk.f32.mxu0 %vm8001_vm0, %v8002_v4 }
  0x5a   : > { %6763 = vmatmul.mubr.msk.f32.gmra.mrb[36].mxu0 %vm414_vm1, %v401_v23 }
  0x5b   : > { %6765 = vmatprep.mubr.msk.f32.mxu0 %vm8001_vm0, %v8002_v4 }
  0x5e   : > { %6766 = vmatmul.mubr.msk.f32.gmra.mrb[38].mxu0 %vm414_vm1, %v402_v24 }
  0x5f   : > { %6768 = vmatprep.mubr.msk.f32.mxu0 %vm8001_vm0, %v8002_v4 }
  0x62   : > { %6769 = vmatmul.mubr.msk.f32.gmra.mrb[40].mxu0 %vm414_vm1, %v403_v25 }
  0x63   : > { %6771 = vmatprep.mubr.msk.f32.mxu0 %vm8001_vm0, %v8002_v4 }
  0x66   : > { %6772 = vmatmul.mubr.msk.f32.gmra.mrb[42].mxu0 %vm414_vm1, %v404_v26 }
  0x67   : > { %6774 = vmatprep.mubr.msk.f32.mxu0 %vm8001_vm0, %v8002_v4 }
  0x6a   : > { %6775 = vmatmul.mubr.msk.f32.gmra.mrb[44].mxu0 %vm414_vm1, %v405_v27 }
  0x6b   : > { %6777 = vmatprep.mubr.msk.f32.mxu0 %vm8001_vm0, %v8002_v4 }
  0x6e   : > { %6778 = vmatmul.mubr.msk.f32.gmra.mrb[46].mxu0 %vm414_vm1, %v406_v28 }
  0x6f   : > { %6780 = vmatprep.mubr.msk.f32.mxu0 %vm8001_vm0, %v8002_v4 }
  0x72   : > { %6781 = vmatmul.mubr.msk.f32.gmra.mrb[48].mxu0 %vm414_vm1, %v407_v29 }
  0x73   : > { %6783 = vmatprep.mubr.msk.f32.mxu0 %vm8001_vm0, %v8002_v4 }
  0x76   : > { %6784 = vmatmul.mubr.msk.f32.gmra.mrb[50].mxu0 %vm414_vm1, %v408_v30 }
  0x77   : > { %6786 = vmatprep.mubr.msk.f32.mxu0 %vm8001_vm0, %v8002_v4 }
  0x7a   : > { %6787 = vmatmul.mubr.msk.f32.gmra.mrb[52].mxu0 %vm414_vm1, %v409_v31 }
  0x7b   : > { %6789 = vmatprep.mubr.msk.f32.mxu0 %vm8001_vm0, %v8002_v4 }
  0x7e   : > { %6790 = vmatmul.mubr.msk.f32.gmra.mrb[54].mxu0 %vm414_vm1, %v410_v32 }
  0x7f   : > { %6792 = vmatprep.mubr.msk.f32.mxu0 %vm8001_vm0, %v8002_v4 }
  0x82   : > { %6793 = vmatmul.mubr.msk.f32.gmra.mrb[56].mxu0 %vm414_vm1, %v411_v33 }
  0x83   : > { %6957 = vmatprep.mubr.msk.f32.mxu0 %vm8001_vm0, %v8002_v4 }
  0xe5   : > { %v568_v34 = vpop.f32.mrb[0].mxu0 }
  0xe6   : > { %v712_v36 = vmul.f32 0.003921569, %v568_v34  ;;  %v6710_v37 = vpop.f32.mrb[1].mxu0 }
  0xe8   : > { %v8220_v38 = vadd.f32 %v8217_v35, %v712_v36 }
  0xe9   : > { %v573_v39 = vpop.f32.mrb[2].mxu0 }
  0xea   : > { %v777_v42 = vmax.f32 %v8220_v38, 0.0  ;;  %v713_v43 = vmul.f32 0.003921569, %v573_v39  ;;  %v6713_v44 = vpop.f32.mrb[3].mxu0 }
  0xec   : > { %v749_v46 = vadd.f32 %v8217_v35, %v713_v43  ;;  %v916_v47 = vrot.slane %v777_v42, 1 }
  0xed   : > { %v578_v48 = vpop.f32.mrb[4].mxu0 }
  0xee   : > { %v8244_v51 = vmax.f32 %v749_v46, 0.0  ;;  %v714_v52 = vmul.f32 0.003921569, %v578_v48  ;;  %917 = vrot.lane.b32.xlu1 %v916_v47, %s8003_s20  ;;  %v6716_v53 = vpop.f32.mrb[5].mxu0 }
  0xf0   : > { %v750_v55 = vadd.f32 %v8217_v35, %v714_v52  ;;  %812 = vrot.lane.b32.xlu0 %v8244_v51, %s8003_s20  ;;  %v817_v3 = vrot.slane %v8244_v51, 7 }
  0xf1   : > { %v583_v56 = vpop.f32.mrb[6].mxu0 }
  0xf2   : > { %v8255_v57 = vmax.f32 %v750_v55, 0.0  ;;  %v715_v58 = vmul.f32 0.003921569, %v583_v56  ;;  %v6719_v59 = vpop.f32.mrb[7].mxu0 }
  0xf4   : > { %v751_v60 = vadd.f32 %v8217_v35, %v715_v58  ;;  %1003 = vrot.lane.b32.xlu0 %v8255_v57, %s8003_s20  ;;  %923 = vrot.lane.b32.xlu1 %v8255_v57, %s8004_s21  ;;  %v1111_v63 = vrot.slane %v8255_v57, 1  ;;  %v818_v1 = vrot.slane %v8255_v57, 7 }
  0xf5   : > { %v588_v61 = vpop.f32.mrb[8].mxu0 }
  0xf6   : > { %v8263_v62 = vmax.f32 %v751_v60, 0.0  ;;  %v6722_v0 = vpop.f32.mrb[9].mxu0  ;;  %v716_v6 = vmul.f32 0.003921569, %v588_v61  ;;  %v819_v8 = vsel %vm816_vm2, %v817_v3, %v818_v1 }
  0xf8   : > { %1112 = vrot.lane.b32.xlu0 %v1111_v63, %s8003_s20  ;;  %1005 = vrot.lane.b32.xlu1 %v8263_v62, %s8003_s20  ;;  %v824_v9 = vrot.slane %v8263_v62, 7  ;;  %v752_v11 = vadd.f32 %v8217_v35, %v716_v6  ;;  %v1321_v26 = vrot.slane %v8263_v62, 1 }
  0xf9   : > { %v593_v5 = vpop.f32.mrb[10].mxu0 }
  0xfa   : > { %v6725_v7 = vpop.f32.mrb[11].mxu0  ;;  %v825_v13 = vsel %vm816_vm2, %v818_v1, %v824_v9  ;;  %v8280_v15 = vmax.f32 %v752_v11, 0.0  ;;  %v717_v20 = vmul.f32 0.003921569, %v593_v5 }
  0xfc   : > { %820 = vrot.lane.b32.xlu0 %v819_v8, %s8005_s22  ;;  %1121 = vrot.lane.b32.xlu1 %v8263_v62, %s8004_s21  ;;  %v1010_v18 = vrot.slane %v8280_v15, 7  ;;  %v753_v23 = vadd.f32 %v8217_v35, %v717_v20  ;;  %v1322_v25 = vrot.slane %v8280_v15, 1 }
  0xfd   : > { %v598_v10 = vpop.f32.mrb[12].mxu0 }
  0xfe   : > { %v6728_v12 = vpop.f32.mrb[13].mxu0  ;;  %v1011_v24 = vsel %vm816_vm2, %v824_v9, %v1010_v18  ;;  %v8299_v29 = vmax.f32 %v753_v23, 0.0  ;;  %v1323_v30 = vsel %vm1320_vm3, %v1321_v26, %v1322_v25  ;;  %v718_v32 = vmul.f32 0.003921569, %v598_v10 }
 0x100   : > { %1012 = vrot.lane.b32.xlu0 %v824_v9, %s8005_s22  ;;  %826 = vrot.lane.b32.xlu1 %v825_v13, %s8004_s21  ;;  %v1019_v34 = vrot.slane %v8299_v29, 7  ;;  %v754_v37 = vadd.f32 %v8217_v35, %v718_v32  ;;  %v1535_v61 = vrot.slane %v8299_v29, 1 }
 0x101   : > { %v603_v14 = vpop.f32.mrb[14].mxu0 }
 0x102   : > { %v6731_v16 = vpop.f32.mrb[15].mxu0  ;;  %v1020_v40 = vsel %vm816_vm2, %v1010_v18, %v1019_v34  ;;  %v8319_v43 = vmax.f32 %v754_v37, 0.0  ;;  %v719_v46 = vmul.f32 0.003921569, %v603_v14 }
 0x104   : > { %920 = vrot.lane.b32.xlu0 %v825_v13, %s8005_s22  ;;  %1211 = vrot.lane.b32.xlu1 %v8280_v15, %s8003_s20  ;;  %v1536_v48 = vrot.slane %v8319_v43, 1  ;;  %v755_v50 = vadd.f32 %v8217_v35, %v719_v46  ;;  %v1218_v52 = vrot.slane %v8319_v43, 7 }
 0x105   : > { %v608_v17 = vpop.f32.mrb[16].mxu0 }
 0x106   : > { %v6734_v19 = vpop.f32.mrb[17].mxu0  ;;  %v8334_v56 = vmax.f32 %v755_v50, 0.0  ;;  %v1219_v58 = vsel %vm816_vm2, %v1019_v34, %v1218_v52  ;;  %v720_v1 = vmul.f32 0.003921569, %v608_v17  ;;  %v1537_v5 = vsel %vm1320_vm3, %v1535_v61, %v1536_v48 }
 0x108   : > { %1123 = vrot.lane.b32.xlu0 %v8280_v15, %s8004_s21  ;;  %1115 = vrot.lane.b32.xlu1 %v1010_v18, %s8005_s22  ;;  %v1227_v63 = vrot.slane %v8334_v56, 7  ;;  %v756_v8 = vadd.f32 %v8217_v35, %v720_v1  ;;  %v1749_v26 = vrot.slane %v8334_v56, 1 }
 0x109   : > { %v8289_v21 = vpop.f32.mrb[18].mxu0 }
 0x10a   : > { %v6737_v22 = vpop.f32.mrb[19].mxu0  ;;  %v1228_v6 = vsel %vm816_vm2, %v1218_v52, %v1227_v63  ;;  %v8360_v11 = vmax.f32 %v756_v8, 0.0  ;;  %v721_v13 = vmul.f32 0.003921569, %v8289_v21 }
 0x10c   : > { %1021 = vrot.lane.b32.xlu0 %v1010_v18, %s8004_s21  ;;  %1014 = vrot.lane.b32.xlu1 %v1011_v24, %s8005_s22  ;;  %v1750_v16 = vrot.slane %v8360_v11, 1  ;;  %v757_v18 = vadd.f32 %v8217_v35, %v721_v13  ;;  %v1433_v19 = vrot.slane %v8360_v11, 7 }
 0x10d   : > { %v8297_v27 = vpop.f32.mrb[20].mxu0 }
 0x10e   : > { %v6740_v28 = vpop.f32.mrb[21].mxu0  ;;  %v8376_v22 = vmax.f32 %v757_v18, 0.0  ;;  %v1434_v23 = vsel %vm816_vm2, %v1227_v63, %v1433_v19  ;;  %v722_v32 = vmul.f32 0.003921569, %v8297_v27 }
 0x110   : > { %1326 = vrot.lane.b32.xlu0 %v1322_v25, %s8003_s20  ;;  %1324 = vrot.lane.b32.xlu1 %v1323_v30, %s8003_s20  ;;  %v1442_v28 = vrot.slane %v8376_v22, 7 }
 0x111   : > { %v8304_v31 = vpop.f32.mrb[22].mxu0 }
 0x112   : > { %v6743_v33 = vpop.f32.mrb[23].mxu0  ;;  %v1443_v37 = vsel %vm816_vm2, %v1433_v19, %v1442_v28  ;;  %v723_v27 = vmul.f32 0.003921569, %v8304_v31 }
 0x114   : > { %1336 = vrot.lane.b32.xlu1 %v8299_v29, %s8004_s21  ;;  %1213 = vrot.lane.b32.xlu0 %v8299_v29, %s8003_s20 }
 0x115   : > { %v8311_v36 = vpop.f32.mrb[24].mxu0 }
 0x116   : > { %v6746_v39 = vpop.f32.mrb[25].mxu0  ;;  %v724_v61 = vmul.f32 0.003921569, %v8311_v36 }
 0x117   : > { %v758_v39 = vadd.f32 %v8217_v35, %v722_v32 }
 0x118   : > { %1220 = vrot.lane.b32.xlu1 %v1019_v34, %s8005_s22  ;;  %1117 = vrot.lane.b32.xlu0 %v1020_v40, %s8005_s22  ;;  %v1751_v34 = vsel %vm1320_vm3, %v1749_v26, %v1750_v16 }
 0x119   : > { %v8317_v41 = vpop.f32.mrb[26].mxu0 }
 0x11a   : > { %v6749_v44 = vpop.f32.mrb[27].mxu0 }
 0x11c   : > { %1023 = vrot.lane.b32.xlu1 %v1020_v40, %s8004_s21  ;;  %1338 = vrot.lane.b32.xlu0 %v8319_v43, %s8004_s21  ;;  %v8399_v40 = vmax.f32 %v758_v39, 0.0 }
 0x11d   : > { %v8324_v47 = vpop.f32.mrb[28].mxu0 }
 0x11e   : > { %v6752_v49 = vpop.f32.mrb[29].mxu0  ;;  %v1964_v46 = vrot.slane %v8399_v40, 1  ;;  %v1647_v50 = vrot.slane %v8399_v40, 7 }
 0x11f   : > { %v759_v49 = vadd.f32 %v8217_v35, %v723_v27 }
 0x120   : > { %1426 = vrot.lane.b32.xlu1 %v8319_v43, %s8003_s20  ;;  %1540 = vrot.lane.b32.xlu0 %v1536_v48, %s8003_s20 }
 0x121   : > { %v8332_v53 = vpop.f32.mrb[30].mxu0  ;;  %v8413_v31 = vmax.f32 %v759_v49, 0.0 }
 0x122   : > { %v6755_v55 = vpop.f32.mrb[31].mxu0 }
 0x123   : > { %v1963_v55 = vrot.slane %v8376_v22, 1 }
 0x124   : > { %1229 = vrot.lane.b32.xlu1 %v1218_v52, %s8004_s21  ;;  %1222 = vrot.lane.b32.xlu0 %v1219_v58, %s8005_s22  ;;  %v1656_v58 = vrot.slane %v8413_v31, 7 }
 0x125   : > { %v8339_v59 = vpop.f32.mrb[32].mxu0  ;;  %v1965_v1 = vsel %vm1320_vm3, %v1963_v55, %v1964_v46 }
 0x126   : > { %v6758_v60 = vpop.f32.mrb[33].mxu0 }
 0x128   : > { %1330 = vrot.lane.b32.xlu1 %v1218_v52, %s8005_s22  ;;  %1428 = vrot.lane.b32.xlu0 %v8334_v56, %s8003_s20  ;;  %v1648_v52 = vsel %vm816_vm2, %v1442_v28, %v1647_v50 }
 0x129   : > { %v8346_v0 = vpop.f32.mrb[34].mxu0 }
 0x12a   : > { %v6761_v3 = vpop.f32.mrb[35].mxu0 }
 0x12b   : > { %v1657_v3 = vsel %vm816_vm2, %v1647_v50, %v1656_v58 }
 0x12c   : > { %1538 = vrot.lane.b32.xlu1 %v1537_v5, %s8003_s20  ;;  %1231 = vrot.lane.b32.xlu0 %v1228_v6, %s8004_s21  ;;  %v760_v5 = vadd.f32 %v8217_v35, %v724_v61 }
 0x12d   : > { %v8352_v7 = vpop.f32.mrb[36].mxu0 }
 0x12e   : > { %v6764_v9 = vpop.f32.mrb[37].mxu0 }
 0x130   : > { %1550 = vrot.lane.b32.xlu1 %v8334_v56, %s8004_s21  ;;  %1332 = vrot.lane.b32.xlu0 %v1228_v6, %s8005_s22  ;;  %v8434_v6 = vmax.f32 %v760_v5, 0.0 }
 0x131   : > { %v8358_v10 = vpop.f32.mrb[38].mxu0 }
 0x132   : > { %v6767_v12 = vpop.f32.mrb[39].mxu0  ;;  %v1861_v18 = vrot.slane %v8434_v6, 7 }
 0x133   : > { %v725_v12 = vmul.f32 0.003921569, %v8317_v41 }
 0x134   : > { %1435 = vrot.lane.b32.xlu1 %v1227_v63, %s8005_s22  ;;  %1552 = vrot.lane.b32.xlu0 %v8360_v11, %s8004_s21  ;;  %v1862_v41 = vsel %vm816_vm2, %v1656_v58, %v1861_v18 }
 0x135   : > { %v8366_v14 = vpop.f32.mrb[40].mxu0 }
 0x136   : > { %v6770_v17 = vpop.f32.mrb[41].mxu0 }
 0x137   : > { %v2168_v17 = vrot.slane %v8434_v6, 1 }
 0x138   : > { %1640 = vrot.lane.b32.xlu1 %v8360_v11, %s8003_s20  ;;  %1754 = vrot.lane.b32.xlu0 %v1750_v16, %s8003_s20 }
 0x139   : > { %v8374_v20 = vpop.f32.mrb[42].mxu0 }
 0x13a   : > { %v6773_v21 = vpop.f32.mrb[43].mxu0 }
 0x13b   : > { %v761_v21 = vadd.f32 %v8217_v35, %v725_v12 }
 0x13c   : > { %1444 = vrot.lane.b32.xlu1 %v1433_v19, %s8004_s21  ;;  %1437 = vrot.lane.b32.xlu0 %v1434_v23, %s8005_s22 }
 0x13d   : > { %v8381_v24 = vpop.f32.mrb[44].mxu0  ;;  %v8457_v26 = vmax.f32 %v761_v21, 0.0 }
 0x13e   : > { %v6776_v25 = vpop.f32.mrb[45].mxu0 }
 0x13f   : > { %v1870_v38 = vrot.slane %v8457_v26, 7 }
 0x140   : > { %1544 = vrot.lane.b32.xlu1 %v1433_v19, %s8005_s22  ;;  %1642 = vrot.lane.b32.xlu0 %v8376_v22, %s8003_s20 }
 0x141   : > { %v8388_v30 = vpop.f32.mrb[46].mxu0 }
 0x142   : > { %v6779_v33 = vpop.f32.mrb[47].mxu0 }
 0x143   : > { %v2167_v33 = vrot.slane %v8413_v31, 1 }
 0x144   : > { %1752 = vrot.lane.b32.xlu1 %v1751_v34, %s8003_s20  ;;  %1446 = vrot.lane.b32.xlu0 %v1443_v37, %s8004_s21 }
 0x145   : > { %v8405_v44 = vpop.f32.mrb[48].mxu0  ;;  %v2169_v49 = vsel %vm1320_vm3, %v2167_v33, %v2168_v17 }
 0x146   : > { %v6782_v48 = vpop.f32.mrb[49].mxu0 }
 0x148   : > { %1764 = vrot.lane.b32.xlu1 %v8376_v22, %s8004_s21  ;;  %1546 = vrot.lane.b32.xlu0 %v1443_v37, %s8005_s22  ;;  %v726_v37 = vmul.f32 0.003921569, %v8324_v47 }
 0x149   : > { %v8423_v60 = vpop.f32.mrb[50].mxu0 }
 0x14a   : > { %v6785_v63 = vpop.f32.mrb[51].mxu0  ;;  %v762_v47 = vadd.f32 %v8217_v35, %v726_v37 }
 0x14c   : > { %1649 = vrot.lane.b32.xlu1 %v1442_v28, %s8005_s22  ;;  %1766 = vrot.lane.b32.xlu0 %v8399_v40, %s8004_s21  ;;  %v8494_v5 = vmax.f32 %v762_v47, 0.0 }
 0x14d   : > { %v8439_v9 = vpop.f32.mrb[52].mxu0 }
 0x14e   : > { %v6788_v19 = vpop.f32.mrb[53].mxu0 }
 0x14f   : > { %v728_v19 = vmul.f32 0.003921569, %v8339_v59 }
 0x150   : > { %1854 = vrot.lane.b32.xlu1 %v8399_v40, %s8003_s20  ;;  %1968 = vrot.lane.b32.xlu0 %v1964_v46, %s8003_s20 }
 0x151   : > { %v764_v59 = vadd.f32 %v8217_v35, %v728_v19 }
 0x153   : > { %v8535_v47 = vmax.f32 %v764_v59, 0.0 }
 0x154   : > { %1658 = vrot.lane.b32.xlu1 %v1647_v50, %s8004_s21  ;;  %1651 = vrot.lane.b32.xlu0 %v1648_v52, %s8005_s22 }
 0x158   : > { %1758 = vrot.lane.b32.xlu1 %v1647_v50, %s8005_s22  ;;  %1856 = vrot.lane.b32.xlu0 %v8413_v31, %s8003_s20  ;;  %v703_v50 = vpop.f32.mrb[54].mxu0 }
 0x159   : > { %v739_v61 = vmul.f32 0.003921569, %v703_v50  ;;  %v729_v50 = vmul.f32 0.003921569, %v8346_v0 }
 0x15c   : > { %1966 = vrot.lane.b32.xlu1 %v1965_v1, %s8003_s20  ;;  %1660 = vrot.lane.b32.xlu0 %v1657_v3, %s8004_s21  ;;  %v1871_v1 = vsel %vm816_vm2, %v1861_v18, %v1870_v38 }
 0x160   : > { %1978 = vrot.lane.b32.xlu1 %v8413_v31, %s8004_s21  ;;  %1760 = vrot.lane.b32.xlu0 %v1657_v3, %s8005_s22  ;;  %v918_v8 = vpop.permute.xlu1 %917  ;;  %v727_v3 = vmul.f32 0.003921569, %v8332_v53 }
 0x162   : > { %v813_v36 = vpop.permute.xlu0 %812  ;;  %v763_v53 = vadd.f32 %v8217_v35, %v727_v3  ;;  %v765_v3 = vadd.f32 %v8217_v35, %v729_v50 }
 0x163   : > { %v830_v34 = vsel %vm829_vm4, %v777_v42, %v813_v36  ;;  %v6791_v42 = vpop.f32.mrb[55].mxu0 }
 0x164   : > { %1863 = vrot.lane.b32.xlu1 %v1656_v58, %s8005_s22  ;;  %1980 = vrot.lane.b32.xlu0 %v8434_v6, %s8004_s21  ;;  %v926_v58 = vsel %vm829_vm4, %v8244_v51, %v918_v8  ;;  %v708_v21 = vpop.f32.mrb[56].mxu0 }
 0x166   : > { %v8442_v13 = vpop.permute.xlu0 %1003  ;;  %v924_v16 = vpop.permute.xlu1 %923 }
 0x168   : > { %2068 = vrot.lane.b32.xlu1 %v8434_v6, %s8003_s20  ;;  %2172 = vrot.lane.b32.xlu0 %v2168_v17, %s8003_s20  ;;  %v8503_v17 = vadd.f32 %v8217_v35, %v739_v61 }
 0x16a   : > { %v8450_v23 = vpop.permute.xlu0 %1112  ;;  %v8452_v25 = vpop.permute.xlu1 %1005 }
 0x16b   : > { %v1028_v59 = vsel %vm829_vm4, %v8255_v57, %v8452_v25 }
 0x16c   : > { %1872 = vrot.lane.b32.xlu1 %v1861_v18, %s8004_s21  ;;  %1865 = vrot.lane.b32.xlu0 %v1862_v41, %s8005_s22  ;;  %v6794_v41 = vpop.f32.mrb[57].mxu0 }
 0x16e   : > { %v821_v28 = vpop.permute.xlu0 %820  ;;  %v8459_v32 = vpop.permute.xlu1 %1121 }
 0x16f   : > { %v831_v39 = vsel %vm414_vm1, %v830_v34, %v821_v28  ;;  %v804_v34 = vmax.f32 %v8503_v17, 0.0 }
 0x170   : > { %1972 = vrot.lane.b32.xlu1 %v1861_v18, %s8005_s22  ;;  %2070 = vrot.lane.b32.xlu0 %v8457_v26, %s8003_s20  ;;  %v2078_v18 = vrot.slane %v8494_v5, 7 }
 0x172   : > { %v8470_v27 = vpop.permute.xlu0 %1012  ;;  %v827_v46 = vpop.permute.xlu1 %826 }
 0x173   : > { %v833_v48 = vsel %vm832_vm5, %v831_v39, %v827_v46  ;;  %v8518_v39 = vmax.f32 %v763_v53, 0.0  ;;  %v2278_v53 = vrot.slane %v8535_v47, 7 }
 0x174   : > { %6804 = vmatmul.mubr.msk.f32.vlgmr.msra.gmra.mrb[0].mxu1 %vm840_vm6, %v833_v48  ;;  %2170 = vrot.lane.b32.xlu1 %v2169_v49, %s8003_s20 }
 0x175   : > { %7277 = vmatpush3.bf16.msra.mxu1 %v8229_v45  ;;  %2179 = vrot.lane.b32.xlu0 %v8457_v26, %s8004_s21  ;;  %v2273_v61 = vrot.slane %v8518_v39, 7  ;;  %v2542_v41 = vrot.slane %v8518_v39, 1 }
 0x176   : > { %v921_v52 = vpop.permute.xlu0 %920  ;;  %v8481_v55 = vpop.permute.xlu1 %1211  ;;  %7278 = vmatprep.subr.bf16.mxu1 %v8000_v2  ;;  %6814 = vmatprep.mubr.msk.f32.mxu1 %vm8001_vm0, %v8002_v4 }
 0x177   : > { %v927_v63 = vsel %vm414_vm1, %v926_v58, %v921_v52  ;;  %v2360_v52 = vrot.slane %v8457_v26, 1  ;;  %v2361_v58 = vrot.slane %v8494_v5, 1 }
 0x178   : > { %2074 = vrot.lane.b32.xlu1 %v1870_v38, %s8005_s22  ;;  %v928_v8 = vsel %vm832_vm5, %v927_v63, %v924_v16  ;;  %v740_v16 = vmul.f32 0.003921569, %v708_v21  ;;  %v8533_v38 = vrot.slane %v804_v34, 7  ;;  %v1027_v21 = vsel %vm829_vm4, %v8244_v51, %v8442_v13 }
 0x179   : > { %7280 = vmatpush3.bf16.msra.mxu1 %v8247_v54  ;;  %1874 = vrot.lane.b32.xlu0 %v1871_v1, %s8004_s21  ;;  %v730_v51 = vmul.f32 0.003921569, %v8352_v7  ;;  %v1127_v7 = vsel %vm829_vm4, %v8255_v57, %v8450_v23 }
 0x17a   : > { %v8496_v36 = vpop.permute.xlu0 %1123  ;;  %v8498_v12 = vpop.permute.xlu1 %1115  ;;  %7281 = vmatprep.subr.bf16.mxu1 %v8000_v2  ;;  %v776_v37 = vadd.f32 %v8217_v35, %v740_v16  ;;  %v8559_v16 = vmax.f32 %v765_v3, 0.0 }
 0x17b   : > { %v766_v3 = vadd.f32 %v8217_v35, %v730_v51 }
 0x17c   : > { %6815 = vmatmul.mubr.msk.f32.vlgmr.msra.gmra.mrb[2].mxu1 %vm840_vm6, %v928_v8  ;;  %2181 = vrot.lane.b32.xlu1 %v8494_v5, %s8004_s21  ;;  %v805_v46 = vmax.f32 %v776_v37, 0.0  ;;  %v2362_v8 = vsel %vm1320_vm3, %v2360_v52, %v2361_v58  ;;  %v1029_v37 = vsel %vm414_vm1, %v1027_v21, %v8470_v27  ;;  %v1128_v27 = vsel %vm829_vm4, %v8263_v62, %v8450_v23 }
 0x17d   : > { %1974 = vrot.lane.b32.xlu0 %v1871_v1, %s8005_s22  ;;  %7283 = vmatpush3.bf16.msra.mxu1 %v8229_v45  ;;  %v2454_v58 = vrot.slane %v8559_v16, 7 }
 0x17e   : > { %v1022_v28 = vpop.permute.xlu0 %1021  ;;  %v1015_v33 = vpop.permute.xlu1 %1014  ;;  %7284 = vmatprep.subr.bf16.mxu1 %v8000_v2  ;;  %6825 = vmatprep.mubr.msk.f32.mxu1 %vm8001_vm0, %v8002_v4  ;;  %v3492_v42 = vrot.slane %v805_v46, 7 }
 0x17f   : > { %v1031_v46 = vsel %vm832_vm5, %v1029_v37, %v1022_v28  ;;  %v1030_v50 = vsel %vm414_vm1, %v1028_v59, %v1015_v33  ;;  %v1129_v33 = vsel %vm414_vm1, %v1127_v7, %v8498_v12  ;;  %v2455_v57 = vsel %vm816_vm2, %v2278_v53, %v2454_v58 }
 0x180   : > { %2176 = vrot.lane.b32.xlu1 %v2078_v18, %s8005_s22  ;;  %v8545_v0 = vsel %vm816_vm2, %v8533_v38, %v3492_v42  ;;  %v1035_v25 = vrot.slane %v1031_v46, 7  ;;  %v1131_v23 = vsel %vm832_vm5, %v1129_v33, %v8459_v32  ;;  %v8605_v37 = vmax.f32 %v766_v3, 0.0 }
 0x181   : > { %2269 = vrot.lane.b32.xlu0 %v8494_v5, %s8003_s20  ;;  %7286 = vmatpush3.bf16.msra.mxu1 %v8247_v54  ;;  %v1135_v46 = vrot.slane %v1131_v23, 7  ;;  %v731_v32 = vmul.f32 0.003921569, %v8358_v10 }
 0x182   : > { %v8525_v48 = vpop.permute.xlu0 %1326  ;;  %v8527_v49 = vpop.permute.xlu1 %1324  ;;  %7287 = vmatprep.subr.bf16.mxu1 %v8000_v2 }
 0x184   : > { %2369 = vrot.lane.b32.xlu1 %v8518_v39, %s8004_s21 }
 0x185   : > { %2079 = vrot.lane.b32.xlu0 %v2078_v18, %s8004_s21 }
 0x186   : > { %v8547_v63 = vpop.permute.xlu1 %1336  ;;  %v8549_v1 = vpop.permute.xlu0 %1213 }
 0x187   : > { %v1236_v10 = vsel %vm829_vm4, %v8280_v15, %v8549_v1 }
 0x188   : > { %2274 = vrot.lane.b32.xlu1 %v2273_v61, %s8005_s22 }
 0x189   : > { %2363 = vrot.lane.b32.xlu0 %v2362_v8, %s8003_s20 }
 0x18a   : > { %v1221_v19 = vpop.permute.xlu1 %1220  ;;  %v1118_v18 = vpop.permute.xlu0 %1117 }
 0x18b   : > { %v1130_v28 = vsel %vm414_vm1, %v1128_v27, %v1118_v18  ;;  %v2737_v27 = vrot.slane %v8559_v16, 1 }
 0x18c   : > { %2279 = vrot.lane.b32.xlu1 %v2278_v53, %s8004_s21 }
 0x18d   : > { %2543 = vrot.lane.b32.xlu0 %v2542_v41, %s8003_s20  ;;  %v1132_v41 = vsel %vm832_vm5, %v1130_v28, %v8496_v36 }
 0x18e   : > { %v1024_v13 = vpop.permute.xlu1 %1023  ;;  %v8572_v42 = vpop.permute.xlu0 %1338  ;;  %v1136_v12 = vrot.slane %v1132_v41, 7 }
 0x18f   : > { %v1032_v52 = vsel %vm832_vm5, %v1030_v50, %v1024_v13  ;;  %v1235_v13 = vsel %vm829_vm4, %v8263_v62, %v8481_v55  ;;  %v767_v55 = vadd.f32 %v8217_v35, %v731_v32 }
 0x190   : > { %v1036_v61 = vrot.slane %v1032_v52, 7  ;;  %2549 = vrot.lane.b32.xlu1 %v8559_v16, %s8004_s21  ;;  %v8625_v52 = vrot.slane %v8605_v37, 7 }
 0x191   : > { %2450 = vrot.lane.b32.xlu0 %v8535_v47, %s8003_s20  ;;  %v8657_v41 = vmax.f32 %v767_v55, 0.0 }
 0x192   : > { %v8590_v8 = vpop.permute.xlu1 %1426  ;;  %v8592_v21 = vpop.permute.xlu0 %1540  ;;  %v1037_v18 = vsel %vm816_vm2, %v1035_v25, %v1036_v61  ;;  %v1237_v25 = vsel %vm414_vm1, %v1235_v13, %v1221_v19  ;;  %v2461_v1 = vsel %vm816_vm2, %v2454_v58, %v8625_v52  ;;  %v1343_v58 = vsel %vm829_vm4, %v8299_v29, %v8525_v48 }
 0x193   : > { %6826 = vmatmul.mubr.msk.f32.vlgmr.msra.gmra.mrb[4].mxu1 %vm840_vm6, %v1037_v18  ;;  %v1342_v18 = vsel %vm829_vm4, %v8280_v15, %v8527_v49  ;;  %v732_v49 = vmul.f32 0.003921569, %v8366_v14  ;;  %v2636_v14 = vrot.slane %v8657_v41, 7 }
 0x194   : > { %7289 = vmatpush3.bf16.msra.mxu1 %v8229_v45  ;;  %2456 = vrot.lane.b32.xlu1 %v2455_v57, %s8005_s22 }
 0x195   : > { %2366 = vrot.lane.b32.xlu0 %v2278_v53, %s8005_s22  ;;  %7290 = vmatprep.subr.bf16.mxu1 %v8000_v2  ;;  %v1137_v53 = vsel %vm816_vm2, %v1135_v46, %v1136_v12 }
 0x196   : > { %v1230_v59 = vpop.permute.xlu1 %1229  ;;  %v1223_v36 = vpop.permute.xlu0 %1222  ;;  %6836 = vmatprep.mubr.msk.f32.mxu1 %vm8001_vm0, %v8002_v4 }
 0x197   : > { %v1239_v62 = vsel %vm832_vm5, %v1237_v25, %v1230_v59  ;;  %v1238_v28 = vsel %vm414_vm1, %v1236_v10, %v1223_v36  ;;  %v2946_v25 = vrot.slane %v8657_v41, 1 }
 0x198   : > { %7292 = vmatpush3.bf16.msra.mxu1 %v8247_v54  ;;  %2631 = vrot.lane.b32.xlu1 %v8605_v37, %s8003_s20  ;;  %v1244_v33 = vrot.slane %v1239_v62, 6 }
 0x199   : > { %2629 = vrot.lane.b32.xlu0 %v8559_v16, %s8003_s20  ;;  %7293 = vmatprep.subr.bf16.mxu1 %v8000_v2 }
 0x19a   : > { %v1331_v50 = vpop.permute.xlu1 %1330  ;;  %v8617_v51 = vpop.permute.xlu0 %1428 }
 0x19b   : > { %6837 = vmatmul.mubr.msk.f32.vlgmr.msra.gmra.mrb[6].mxu1 %vm840_vm6, %v1137_v53  ;;  %v1344_v57 = vsel %vm414_vm1, %v1342_v18, %v1331_v50  ;;  %v768_v50 = vadd.f32 %v8217_v35, %v732_v49 }
 0x19c   : > { %7295 = vmatpush3.bf16.msra.mxu1 %v8229_v45  ;;  %2747 = vrot.lane.b32.xlu1 %v8605_v37, %s8004_s21  ;;  %v1346_v48 = vsel %vm832_vm5, %v1344_v57, %v8547_v63 }
 0x19d   : > { %2738 = vrot.lane.b32.xlu0 %v2737_v27, %s8003_s20  ;;  %7296 = vmatprep.subr.bf16.mxu1 %v8000_v2  ;;  %v8691_v10 = vmax.f32 %v768_v50, 0.0 }
 0x19e   : > { %v8639_v19 = vpop.permute.xlu1 %1538  ;;  %v1232_v61 = vpop.permute.xlu0 %1231  ;;  %6847 = vmatprep.mubr.msk.f32.mxu1 %vm8001_vm0, %v8002_v4 }
 0x19f   : > { %v1240_v7 = vsel %vm832_vm5, %v1238_v28, %v1232_v61  ;;  %v2637_v28 = vsel %vm816_vm2, %v8625_v52, %v2636_v14  ;;  %v2945_v61 = vrot.slane %v8605_v37, 1 }
 0x1a0   : > { %v1245_v3 = vrot.slane %v1240_v7, 6  ;;  %7298 = vmatpush3.bf16.msra.mxu1 %v8247_v54  ;;  %2462 = vrot.lane.b32.xlu1 %v2461_v1, %s8004_s21  ;;  %v2645_v7 = vrot.slane %v8691_v10, 7 }
 0x1a1   : > { %2638 = vrot.lane.b32.xlu0 %v8625_v52, %s8005_s22  ;;  %7299 = vmatprep.subr.bf16.mxu1 %v8000_v2  ;;  %v1450_v52 = vsel %vm829_vm4, %v8299_v29, %v8590_v8  ;;  %v2947_v18 = vsel %vm1320_vm3, %v2945_v61, %v2946_v25 }
 0x1a2   : > { %v8660_v23 = vpop.permute.xlu1 %1550  ;;  %v1333_v12 = vpop.permute.xlu0 %1332  ;;  %v1246_v59 = vsel %vm1243_vm7, %v1244_v33, %v1245_v3  ;;  %v733_v3 = vmul.f32 0.003921569, %v8374_v20  ;;  %v2646_v57 = vsel %vm816_vm2, %v2636_v14, %v2645_v7 }
 0x1a3   : > { %v1345_v15 = vsel %vm414_vm1, %v1343_v58, %v1333_v12  ;;  %6848 = vmatmul.mubr.msk.f32.vlgmr.msra.gmra.mrb[8].mxu1 %vm840_vm6, %v1246_v59  ;;  %v1451_v12 = vsel %vm829_vm4, %v8319_v43, %v8617_v51  ;;  %v1556_v51 = vsel %vm829_vm4, %v8319_v43, %v8639_v19  ;;  %v734_v43 = vmul.f32 0.003921569, %v8381_v24 }
 0x1a4   : > { %v1347_v36 = vsel %vm832_vm5, %v1345_v15, %v8572_v42  ;;  %7301 = vmatpush3.bf16.msra.mxu1 %v8229_v45  ;;  %2837 = vrot.lane.b32.xlu1 %v8657_v41, %s8003_s20  ;;  %v1350_v42 = vrot.slane %v1346_v48, 6  ;;  %v769_v15 = vadd.f32 %v8217_v35, %v733_v3 }
 0x1a5   : > { %2546 = vrot.lane.b32.xlu0 %v2461_v1, %s8005_s22  ;;  %7302 = vmatprep.subr.bf16.mxu1 %v8000_v2  ;;  %v1351_v46 = vrot.slane %v1347_v36, 6  ;;  %v770_v61 = vadd.f32 %v8217_v35, %v734_v43 }
 0x1a6   : > { %v1436_v32 = vpop.permute.xlu1 %1435  ;;  %v1553_v53 = vpop.permute.xlu0 %1552  ;;  %6858 = vmatprep.mubr.msk.f32.mxu1 %vm8001_vm0, %v8002_v4 }
 0x1a7   : > { %v1352_v63 = vsel %vm1243_vm7, %v1350_v42, %v1351_v46  ;;  %v1452_v58 = vsel %vm414_vm1, %v1450_v52, %v1436_v32  ;;  %v1557_v46 = vsel %vm829_vm4, %v8334_v56, %v8592_v21 }
 0x1a8   : > { %7304 = vmatpush3.bf16.msra.mxu1 %v8247_v54  ;;  %2647 = vrot.lane.b32.xlu1 %v2636_v14, %s8004_s21 }
 0x1a9   : > { %2749 = vrot.lane.b32.xlu0 %v8657_v41, %s8004_s21  ;;  %7305 = vmatprep.subr.bf16.mxu1 %v8000_v2 }
 0x1aa   : > { %v8685_v13 = vpop.permute.xlu1 %1640  ;;  %v8687_v27 = vpop.permute.xlu0 %1754 }
 0x1ab   : > { %6859 = vmatmul.mubr.msk.f32.vlgmr.msra.gmra.mrb[10].mxu1 %vm840_vm6, %v1352_v63  ;;  %v8741_v63 = vmax.f32 %v769_v15, 0.0  ;;  %v1664_v15 = vsel %vm829_vm4, %v8334_v56, %v8685_v13 }
 0x1ac   : > { %2741 = vrot.lane.b32.xlu1 %v2636_v14, %s8005_s22  ;;  %7307 = vmatpush3.bf16.msra.mxu1 %v8229_v45 }
 0x1ad   : > { %2950 = vrot.lane.b32.xlu0 %v2946_v25, %s8003_s20  ;;  %7308 = vmatprep.subr.bf16.mxu1 %v8000_v2  ;;  %v3159_v24 = vrot.slane %v8741_v63, 1 }
 0x1ae   : > { %v1445_v62 = vpop.permute.xlu1 %1444  ;;  %v1438_v55 = vpop.permute.xlu0 %1437  ;;  %6869 = vmatprep.mubr.msk.f32.mxu1 %vm8001_vm0, %v8002_v4 }
 0x1af   : > { %v1454_v59 = vsel %vm832_vm5, %v1452_v58, %v1445_v62  ;;  %v1453_v29 = vsel %vm414_vm1, %v1451_v12, %v1438_v55 }
 0x1b0   : > { %2640 = vrot.lane.b32.xlu1 %v2637_v28, %s8005_s22  ;;  %7310 = vmatpush3.bf16.msra.mxu1 %v8247_v54  ;;  %v1459_v36 = vrot.slane %v1454_v59, 5  ;;  %v3158_v59 = vrot.slane %v8691_v10, 1 }
 0x1b1   : > { %2839 = vrot.lane.b32.xlu0 %v8691_v10, %s8003_s20  ;;  %7311 = vmatprep.subr.bf16.mxu1 %v8000_v2 }
 0x1b2   : > { %v1545_v1 = vpop.permute.xlu1 %1544  ;;  %v8708_v33 = vpop.permute.xlu0 %1642 }
 0x1b3   : > { %v1558_v32 = vsel %vm414_vm1, %v1556_v51, %v1545_v1 }
 0x1b4   : > { %2948 = vrot.lane.b32.xlu1 %v2947_v18, %s8003_s20  ;;  %v1560_v21 = vsel %vm832_vm5, %v1558_v32, %v8660_v23  ;;  %v2844_v23 = vrot.slane %v8741_v63, 7  ;;  %v8770_v18 = vmax.f32 %v770_v61, 0.0 }
 0x1b5   : > { %2649 = vrot.lane.b32.xlu0 %v2646_v57, %s8004_s21 }
 0x1b6   : > { %v8724_v8 = vpop.permute.xlu1 %1752  ;;  %v1447_v20 = vpop.permute.xlu0 %1446  ;;  %v2845_v58 = vsel %vm816_vm2, %v2645_v7, %v2844_v23 }
 0x1b7   : > { %v1455_v49 = vsel %vm832_vm5, %v1453_v29, %v1447_v20  ;;  %v2853_v29 = vrot.slane %v8770_v18, 7 }
 0x1b8   : > { %v1460_v48 = vrot.slane %v1455_v49, 5  ;;  %2960 = vrot.lane.b32.xlu1 %v8691_v10, %s8004_s21  ;;  %v735_v49 = vmul.f32 0.003921569, %v8388_v30 }
 0x1b9   : > { %2743 = vrot.lane.b32.xlu0 %v2646_v57, %s8005_s22  ;;  %v2854_v51 = vsel %vm816_vm2, %v2844_v23, %v2853_v29 }
 0x1ba   : > { %v8738_v14 = vpop.permute.xlu1 %1764  ;;  %v1547_v42 = vpop.permute.xlu0 %1546  ;;  %v1461_v50 = vsel %vm1458_vm8, %v1459_v36, %v1460_v48  ;;  %v3160_v36 = vsel %vm1320_vm3, %v3158_v59, %v3159_v24 }
 0x1bb   : > { %v1559_v25 = vsel %vm414_vm1, %v1557_v46, %v1547_v42  ;;  %6870 = vmatmul.mubr.msk.f32.vlgmr.msra.gmra.mrb[12].mxu1 %vm840_vm6, %v1461_v50  ;;  %v1665_v46 = vsel %vm829_vm4, %v8360_v11, %v8708_v33  ;;  %v771_v42 = vadd.f32 %v8217_v35, %v735_v49  ;;  %v1770_v33 = vsel %vm829_vm4, %v8360_v11, %v8724_v8 }
 0x1bc   : > { %v1561_v19 = vsel %vm832_vm5, %v1559_v25, %v1553_v53  ;;  %7313 = vmatpush3.bf16.msra.mxu1 %v8229_v45  ;;  %2846 = vrot.lane.b32.xlu1 %v2645_v7, %s8005_s22  ;;  %v1564_v53 = vrot.slane %v1560_v21, 5  ;;  %v736_v11 = vmul.f32 0.003921569, %v8405_v44 }
 0x1bd   : > { %2962 = vrot.lane.b32.xlu0 %v8741_v63, %s8004_s21  ;;  %7314 = vmatprep.subr.bf16.mxu1 %v8000_v2  ;;  %v1565_v62 = vrot.slane %v1561_v19, 5  ;;  %v1771_v19 = vsel %vm829_vm4, %v8376_v22, %v8687_v27 }
 0x1be   : > { %v1650_v55 = vpop.permute.xlu1 %1649  ;;  %v1767_v28 = vpop.permute.xlu0 %1766  ;;  %6880 = vmatprep.mubr.msk.f32.mxu1 %vm8001_vm0, %v8002_v4 }
 0x1bf   : > { %v1566_v1 = vsel %vm1458_vm8, %v1564_v53, %v1565_v62  ;;  %v1666_v48 = vsel %vm414_vm1, %v1664_v15, %v1650_v55 }
 0x1c0   : > { %7316 = vmatpush3.bf16.msra.mxu1 %v8247_v54  ;;  %3050 = vrot.lane.b32.xlu1 %v8741_v63, %s8003_s20 }
 0x1c1   : > { %3163 = vrot.lane.b32.xlu0 %v3159_v24, %s8003_s20  ;;  %7317 = vmatprep.subr.bf16.mxu1 %v8000_v2  ;;  %v8819_v24 = vmax.f32 %v771_v42, 0.0 }
 0x1c2   : > { %v8765_v52 = vpop.permute.xlu1 %1854  ;;  %v8767_v3 = vpop.permute.xlu0 %1968 }
 0x1c3   : > { %6881 = vmatmul.mubr.msk.f32.vlgmr.msra.gmra.mrb[14].mxu1 %vm840_vm6, %v1566_v1  ;;  %v3372_v44 = vrot.slane %v8819_v24, 1 }
 0x1c4   : > { %2855 = vrot.lane.b32.xlu1 %v2844_v23, %s8004_s21  ;;  %7319 = vmatpush3.bf16.msra.mxu1 %v8229_v45 }
 0x1c5   : > { %2848 = vrot.lane.b32.xlu0 %v2845_v58, %s8005_s22  ;;  %7320 = vmatprep.subr.bf16.mxu1 %v8000_v2  ;;  %v7991_v58 = vld [vmem:[%s10742_s2] ss:$0 sm:$0xff] }
 0x1c6   : > { %v1659_v57 = vpop.permute.xlu1 %1658  ;;  %v1652_v12 = vpop.permute.xlu0 %1651  ;;  %6891 = vmatprep.mubr.msk.f32.mxu1 %vm8001_vm0, %v8002_v4 }
 0x1c7   : > { %v1668_v32 = vsel %vm832_vm5, %v1666_v48, %v1659_v57  ;;  %v1667_v56 = vsel %vm414_vm1, %v1665_v46, %v1652_v12  ;;  %v3057_v57 = vrot.slane %v8819_v24, 7 }
 0x1c8   : > { %2954 = vrot.lane.b32.xlu1 %v2844_v23, %s8005_s22  ;;  %7322 = vmatpush3.bf16.msra.mxu1 %v8247_v54  ;;  %v1673_v25 = vrot.slane %v1668_v32, 4 }
 0x1c9   : > { %3052 = vrot.lane.b32.xlu0 %v8770_v18, %s8003_s20  ;;  %7323 = vmatprep.subr.bf16.mxu1 %v8000_v2  ;;  %v3058_v49 = vsel %vm816_vm2, %v2853_v29, %v3057_v57 }
 0x1ca   : > { %v1759_v7 = vpop.permute.xlu1 %1758  ;;  %v8786_v20 = vpop.permute.xlu0 %1856 }
 0x1cb   : > { %v1772_v35 = vsel %vm414_vm1, %v1770_v33, %v1759_v7  ;;  %v1878_v33 = vsel %vm829_vm4, %v8376_v22, %v8765_v52  ;;  %v738_v22 = vmul.f32 0.003921569, %v8439_v9  ;;  %v1985_v9 = vsel %vm829_vm4, %v8413_v31, %v8767_v3 }
 0x1cc   : > { %3161 = vrot.lane.b32.xlu1 %v3160_v36, %s8003_s20  ;;  %v1774_v27 = vsel %vm832_vm5, %v1772_v35, %v8738_v14  ;;  %v772_v14 = vadd.f32 %v7991_v58, %v736_v11 }
 0x1cd   : > { %2857 = vrot.lane.b32.xlu0 %v2854_v51, %s8004_s21 }
 0x1ce   : > { %v8802_v13 = vpop.permute.xlu1 %1966  ;;  %v1661_v30 = vpop.permute.xlu0 %1660  ;;  %v8852_v15 = vmax.f32 %v772_v14, 0.0 }
 0x1cf   : > { %v1669_v50 = vsel %vm832_vm5, %v1667_v56, %v1661_v30  ;;  %v737_v56 = vmul.f32 0.003921569, %v8423_v60 }
 0x1d0   : > { %v1674_v43 = vrot.slane %v1669_v50, 4  ;;  %3173 = vrot.lane.b32.xlu1 %v8770_v18, %s8004_s21  ;;  %v3066_v46 = vrot.slane %v8852_v15, 7 }
 0x1d1   : > { %2956 = vrot.lane.b32.xlu0 %v2854_v51, %s8005_s22  ;;  %v3371_v51 = vrot.slane %v8770_v18, 1 }
 0x1d2   : > { %v8816_v21 = vpop.permute.xlu1 %1978  ;;  %v1761_v62 = vpop.permute.xlu0 %1760  ;;  %v1675_v55 = vsel %vm1672_vm9, %v1673_v25, %v1674_v43  ;;  %v3067_v42 = vsel %vm816_vm2, %v3057_v57, %v3066_v46  ;;  %v773_v25 = vadd.f32 %v7991_v58, %v737_v56 }
 0x1d3   : > { %v1773_v53 = vsel %vm414_vm1, %v1771_v19, %v1761_v62  ;;  %6892 = vmatmul.mubr.msk.f32.vlgmr.msra.gmra.mrb[16].mxu1 %vm840_vm6, %v1675_v55  ;;  %v3373_v30 = vsel %vm1320_vm3, %v3371_v51, %v3372_v44  ;;  %v1879_v19 = vsel %vm829_vm4, %v8399_v40, %v8786_v20  ;;  %v1984_v20 = vsel %vm829_vm4, %v8399_v40, %v8802_v13 }
 0x1d4   : > { %v1775_v8 = vsel %vm832_vm5, %v1773_v53, %v1767_v28  ;;  %7325 = vmatpush3.bf16.msra.mxu1 %v8229_v45  ;;  %3059 = vrot.lane.b32.xlu1 %v2853_v29, %s8005_s22  ;;  %v1778_v28 = vrot.slane %v1774_v27, 4  ;;  %v8888_v55 = vmax.f32 %v773_v25, 0.0 }
 0x1d5   : > { %3175 = vrot.lane.b32.xlu0 %v8819_v24, %s8004_s21  ;;  %7326 = vmatprep.subr.bf16.mxu1 %v8000_v2  ;;  %v1779_v61 = vrot.slane %v1775_v8, 4 }
 0x1d6   : > { %v1864_v23 = vpop.permute.xlu1 %1863  ;;  %v8832_v1 = vpop.permute.xlu0 %1980  ;;  %6902 = vmatprep.mubr.msk.f32.mxu1 %vm8001_vm0, %v8002_v4  ;;  %v3585_v14 = vrot.slane %v8888_v55, 1  ;;  %v3270_v40 = vrot.slane %v8888_v55, 7 }
 0x1d7   : > { %v1780_v12 = vsel %vm1672_vm9, %v1778_v28, %v1779_v61  ;;  %v1880_v60 = vsel %vm414_vm1, %v1878_v33, %v1864_v23  ;;  %v3584_v33 = vrot.slane %v8852_v15, 1 }
 0x1d8   : > { %7328 = vmatpush3.bf16.msra.mxu1 %v8247_v54  ;;  %3263 = vrot.lane.b32.xlu1 %v8819_v24, %s8003_s20 }
 0x1d9   : > { %3376 = vrot.lane.b32.xlu0 %v3372_v44, %s8003_s20  ;;  %7329 = vmatprep.subr.bf16.mxu1 %v8000_v2 }
 0x1da   : > { %v8847_v59 = vpop.permute.xlu1 %2068  ;;  %v8849_v7 = vpop.permute.xlu0 %2172 }
 0x1db   : > { %6903 = vmatmul.mubr.msk.f32.vlgmr.msra.gmra.mrb[18].mxu1 %vm840_vm6, %v1780_v12 }
 0x1dc   : > { %3068 = vrot.lane.b32.xlu1 %v3057_v57, %s8004_s21  ;;  %7331 = vmatpush3.bf16.msra.mxu1 %v8229_v45 }
 0x1dd   : > { %3061 = vrot.lane.b32.xlu0 %v3058_v49, %s8005_s22  ;;  %7332 = vmatprep.subr.bf16.mxu1 %v8000_v2 }
 0x1de   : > { %v1873_v36 = vpop.permute.xlu1 %1872  ;;  %v1866_v48 = vpop.permute.xlu0 %1865  ;;  %6913 = vmatprep.mubr.msk.f32.mxu1 %vm8001_vm0, %v8002_v4 }
 0x1df   : > { %v1882_v35 = vsel %vm832_vm5, %v1880_v60, %v1873_v36  ;;  %v1881_v53 = vsel %vm414_vm1, %v1879_v19, %v1866_v48 }
 0x1e0   : > { %3167 = vrot.lane.b32.xlu1 %v3057_v57, %s8005_s22  ;;  %7334 = vmatpush3.bf16.msra.mxu1 %v8247_v54  ;;  %v1887_v8 = vrot.slane %v1882_v35, 3  ;;  %v774_v57 = vadd.f32 %v7991_v58, %v738_v22 }
 0x1e1   : > { %3265 = vrot.lane.b32.xlu0 %v8852_v15, %s8003_s20  ;;  %7335 = vmatprep.subr.bf16.mxu1 %v8000_v2 }
 0x1e2   : > { %v1973_v29 = vpop.permute.xlu1 %1972  ;;  %v2071_v32 = vpop.permute.xlu0 %2070  ;;  %v8921_v48 = vmax.f32 %v774_v57, 0.0 }
 0x1e3   : > { %v1986_v23 = vsel %vm414_vm1, %v1984_v20, %v1973_v29  ;;  %v2083_v29 = vsel %vm829_vm4, %v8434_v6, %v2071_v32 }
 0x1e4   : > { %3374 = vrot.lane.b32.xlu1 %v3373_v30, %s8003_s20  ;;  %v1988_v13 = vsel %vm832_vm5, %v1986_v23, %v8816_v21  ;;  %v2082_v21 = vsel %vm829_vm4, %v8413_v31, %v8847_v59  ;;  %v3279_v32 = vrot.slane %v8921_v48, 7 }
 0x1e5   : > { %3070 = vrot.lane.b32.xlu0 %v3067_v42, %s8004_s21  ;;  %v1992_v51 = vrot.slane %v1988_v13, 3 }
 0x1e6   : > { %v8873_v50 = vpop.permute.xlu1 %2170 }
 0x1e7   : > { %v8875_v43 = vpop.permute.xlu0 %2179  ;;  %v2185_v22 = vsel %vm829_vm4, %v8434_v6, %v8873_v50 }
 0x1e8   : > { %3386 = vrot.lane.b32.xlu1 %v8852_v15, %s8004_s21 }
 0x1e9   : > { %3169 = vrot.lane.b32.xlu0 %v3067_v42, %s8005_s22 }
 0x1ea   : > { %v2075_v62 = vpop.permute.xlu1 %2074 }
 0x1eb   : > { %v1875_v11 = vpop.permute.xlu0 %1874  ;;  %v2084_v30 = vsel %vm414_vm1, %v2082_v21, %v2075_v62 }
 0x1ec   : > { %v1883_v52 = vsel %vm832_vm5, %v1881_v53, %v1875_v11  ;;  %3272 = vrot.lane.b32.xlu1 %v3066_v46, %s8005_s22  ;;  %v3586_v53 = vsel %vm1320_vm3, %v3584_v33, %v3585_v14  ;;  %v2186_v11 = vsel %vm829_vm4, %v8457_v26, %v8849_v7 }
 0x1ed   : > { %v1888_v27 = vrot.slane %v1883_v52, 3  ;;  %3388 = vrot.lane.b32.xlu0 %v8888_v55, %s8004_s21  ;;  %v3280_v52 = vsel %vm816_vm2, %v3270_v40, %v3279_v32 }
 0x1ee   : > { %v8899_v61 = vpop.permute.xlu1 %2181 }
 0x1ef   : > { %v1975_v44 = vpop.permute.xlu0 %1974  ;;  %v1889_v28 = vsel %vm1886_vm10, %v1887_v8, %v1888_v27 }
 0x1f0   : > { %v1987_v12 = vsel %vm414_vm1, %v1985_v9, %v1975_v44  ;;  %6914 = vmatmul.mubr.msk.f32.vlgmr.msra.gmra.mrb[20].mxu1 %vm840_vm6, %v1889_v28  ;;  %3476 = vrot.lane.b32.xlu1 %v8888_v55, %s8003_s20 }
 0x1f1   : > { %v1989_v3 = vsel %vm832_vm5, %v1987_v12, %v8832_v1  ;;  %7337 = vmatpush3.bf16.msra.mxu1 %v8229_v45  ;;  %3589 = vrot.lane.b32.xlu0 %v3585_v14, %s8003_s20  ;;  %v3271_v1 = vsel %vm816_vm2, %v3066_v46, %v3270_v40  ;;  %v2085_v46 = vsel %vm414_vm1, %v2083_v29, %v2075_v62 }
 0x1f2   : > { %7338 = vmatprep.subr.bf16.mxu1 %v8000_v2  ;;  %v2177_v58 = vpop.permute.xlu1 %2176  ;;  %6924 = vmatprep.mubr.msk.f32.mxu1 %vm8001_vm0, %v8002_v4  ;;  %v1993_v49 = vrot.slane %v1989_v3, 3 }
 0x1f3   : > { %v2270_v36 = vpop.permute.xlu0 %2269  ;;  %v2187_v27 = vsel %vm414_vm1, %v2185_v22, %v2177_v58  ;;  %v2188_v20 = vsel %vm414_vm1, %v2186_v11, %v2177_v58 }
 0x1f4   : > { %3281 = vrot.lane.b32.xlu1 %v3270_v40, %s8004_s21  ;;  %v1994_v42 = vsel %vm1886_vm10, %v1992_v51, %v1993_v49  ;;  %v2282_v8 = vsel %vm829_vm4, %v8457_v26, %v2270_v36  ;;  %v2189_v23 = vsel %vm832_vm5, %v2187_v27, %v8875_v43  ;;  %v2190_v44 = vsel %vm832_vm5, %v2188_v20, %v8899_v61 }
 0x1f5   : > { %7340 = vmatpush3.bf16.msra.mxu1 %v8247_v54  ;;  %3274 = vrot.lane.b32.xlu0 %v3271_v1, %s8005_s22  ;;  %v2193_v57 = vrot.slane %v2189_v23, 2  ;;  %v2194_v12 = vrot.slane %v2190_v44, 2  ;;  %v3484_v61 = vsel %vm816_vm2, %v3279_v32, %v8533_v38 }
 0x1f6   : > { %7341 = vmatprep.subr.bf16.mxu1 %v8000_v2  ;;  %v8933_v56 = vpop.permute.xlu1 %2369 }
 0x1f7   : > { %v2080_v25 = vpop.permute.xlu0 %2079  ;;  %v2195_v13 = vsel %vm2090_vm11, %v2193_v57, %v2194_v12 }
 0x1f8   : > { %6925 = vmatmul.mubr.msk.f32.vlgmr.msra.gmra.mrb[22].mxu1 %vm840_vm6, %v1994_v42  ;;  %v2086_v31 = vsel %vm832_vm5, %v2084_v30, %v2080_v25  ;;  %v2087_v59 = vsel %vm832_vm5, %v2085_v46, %v2080_v25  ;;  %3380 = vrot.lane.b32.xlu1 %v3270_v40, %s8005_s22 }
 0x1f9   : > { %7343 = vmatpush3.bf16.msra.mxu1 %v8229_v45  ;;  %3478 = vrot.lane.b32.xlu0 %v8921_v48, %s8003_s20  ;;  %v2091_v19 = vrot.slane %v2086_v31, 2  ;;  %v2092_v35 = vrot.slane %v2087_v59, 2 }
 0x1fa   : > { %7344 = vmatprep.subr.bf16.mxu1 %v8000_v2  ;;  %v2275_v60 = vpop.permute.xlu1 %2274  ;;  %6935 = vmatprep.mubr.msk.f32.mxu1 %vm8001_vm0, %v8002_v4 }
 0x1fb   : > { %v2364_v62 = vpop.permute.xlu0 %2363  ;;  %v2283_v7 = vsel %vm414_vm1, %v2282_v8, %v2275_v60  ;;  %v2093_v50 = vsel %vm2090_vm11, %v2091_v19, %v2092_v35 }
 0x1fc   : > { %3587 = vrot.lane.b32.xlu1 %v3586_v53, %s8003_s20  ;;  %v2372_v3 = vsel %vm829_vm4, %v8494_v5, %v2364_v62  ;;  %s382_s20 = scalar_lea.vmem %s10751_s11, %s10753_s18 }
 0x1fd   : > { %7346 = vmatpush3.bf16.msra.mxu1 %v8247_v54  ;;  %3283 = vrot.lane.b32.xlu0 %v3280_v52, %s8004_s21 }
 0x1fe   : > { %7347 = vmatprep.subr.bf16.mxu1 %v8000_v2  ;;  %v2280_v6 = vpop.permute.xlu1 %2279 }
 0x1ff   : > { %v8968_v9 = vpop.permute.xlu0 %2543  ;;  %v2284_v26 = vsel %vm832_vm5, %v2283_v7, %v2280_v6 }
 0x200   : > { %6936 = vmatmul.mubr.msk.f32.vlgmr.msra.gmra.mrb[24].mxu1 %vm840_vm6, %v2093_v50  ;;  %v2286_v28 = vrot.slane %v2284_v26, 1  ;;  %3485 = vrot.lane.b32.xlu1 %v3279_v32, %s8005_s22 }
 0x201   : > { %7349 = vmatpush3.bf16.msra.mxu1 %v8229_v45  ;;  %3382 = vrot.lane.b32.xlu0 %v3280_v52, %s8005_s22 }
 0x202   : > { %7350 = vmatprep.subr.bf16.mxu1 %v8000_v2  ;;  %6958 = vmatmul.mubr.msk.f32.vlgmr.msra.gmra.mrb[58].mxu0 %vm840_vm6, %v2286_v28  ;;  %v2550_v14 = vpop.permute.xlu1 %2549 }
 0x203   : > { %v2451_v43 = vpop.permute.xlu0 %2450  ;;  %6946 = vmatprep.mubr.msk.f32.mxu1 %vm8001_vm0, %v8002_v4  ;;  %7367 = vmatpush3.bf16.msra.mxu0 %v8229_v45 }
 0x204   : > { %3494 = vrot.lane.b32.xlu1 %v8533_v38, %s8004_s21  ;;  %7368 = vmatprep.subr.bf16.mxu0 %v8000_v2  ;;  %v2465_v29 = vsel %vm829_vm4, %v8518_v39, %v2451_v43 }
 0x205   : > { %7352 = vmatpush3.bf16.msra.mxu1 %v8247_v54  ;;  %3487 = vrot.lane.b32.xlu0 %v3484_v61, %s8005_s22 }
 0x206   : > { %7359 = vmatprep.subr.bf16.mxu1 %v8000_v2  ;;  %v2457_v40 = vpop.permute.xlu1 %2456  ;;  %6979 = vmatprep.mubr.msk.f32.mxu0 %vm8001_vm0, %v8002_v4 }
 0x207   : > { %v2367_v58 = vpop.permute.xlu0 %2366  ;;  %7370 = vmatpush3.bf16.msra.mxu0 %v8247_v54 }
 0x208   : > { %6947 = vmatmul.mubr.msk.f32.vlgmr.msra.gmra.mrb[26].mxu1 %vm840_vm6, %v2195_v13  ;;  %v2373_v49 = vsel %vm414_vm1, %v2372_v3, %v2367_v58  ;;  %3593 = vrot.lane.b32.xlu1 %v8533_v38, %s8005_s22 }
 0x209   : > { %7361 = vmatpush3.bf16.msra.mxu1 %v8229_v45  ;;  %3496 = vrot.lane.b32.xlu0 %v8545_v0, %s8004_s21  ;;  %v2374_v36 = vsel %vm832_vm5, %v2373_v49, %v8933_v56  ;;  %v2466_v56 = vsel %vm414_vm1, %v2465_v29, %v2457_v40 }
 0x20a   : > { %7362 = vmatprep.subr.bf16.mxu1 %v8000_v2  ;;  %v2632_v5 = vpop.permute.xlu1 %2631  ;;  %6968 = vmatprep.mubr.msk.f32.mxu1 %vm8001_vm0, %v8002_v4  ;;  %v2376_v38 = vrot.slane %v2374_v36, 1 }
 0x20b   : > { %v2630_v1 = vpop.permute.xlu0 %2629  ;;  %7377 = vmatprep.subr.bf16.mxu0 %v8000_v2  ;;  %v2654_v53 = vsel %vm829_vm4, %v8559_v16, %v2632_v5 }
 0x20c   : > { %3599 = vrot.lane.b32.xlu1 %v8921_v48, %s8004_s21  ;;  %v2653_v35 = vsel %vm829_vm4, %v8535_v47, %v2630_v1 }
 0x20d   : > { %7364 = vmatpush3.bf16.msra.mxu1 %v8247_v54  ;;  %3595 = vrot.lane.b32.xlu0 %v8545_v0, %s8005_s22 }
 0x20e   : > { %v2748_v51 = vpop.permute.xlu1 %2747  ;;  %7371 = vmatprep.subr.bf16.mxu1 %v8000_v2 }
 0x20f   : > { %v2739_v21 = vpop.permute.xlu0 %2738 }
 0x210   : > { %6969 = vmatmul.mubr.msk.f32.vlgmr.msra.gmra.mrb[28].mxu1 %vm840_vm6, %v2376_v38  ;;  %v2753_v52 = vsel %vm829_vm4, %v8559_v16, %v2739_v21 }
 0x211   : > { %3601 = vrot.lane.b32.xlu0 %v804_v34, %s8004_s21  ;;  %7373 = vmatpush3.bf16.msra.mxu1 %v8229_v45  ;;  %v2552_v34 = vsel %vm829_vm4, %v8535_v47, %v8968_v9  ;;  %v2754_v9 = vsel %vm829_vm4, %v8605_v37, %v2739_v21 }
 0x212   : > { %v2463_v30 = vpop.permute.xlu1 %2462  ;;  %7374 = vmatprep.subr.bf16.mxu1 %v8000_v2  ;;  %6990 = vmatprep.mubr.msk.f32.mxu1 %vm8001_vm0, %v8002_v4 }
 0x213   : > { %v2639_v0 = vpop.permute.xlu0 %2638  ;;  %v2467_v46 = vsel %vm832_vm5, %v2466_v56, %v2463_v30 }
 0x214   : > { %6980 = vmatmul.mubr.msk.f32.vlgmr.msra.gmra.mrb[60].mxu0 %vm840_vm6, %v2467_v46  ;;  %v2655_v62 = vsel %vm414_vm1, %v2653_v35, %v2639_v0 }
 0x215   : > { %7376 = vmatpush3.bf16.msra.mxu1 %v8247_v54  ;;  %7379 = vmatpush3.bf16.msra.mxu0 %v8229_v45 }
 0x216   : > { %v9032_v17 = vpop.permute.xlu1 %2837  ;;  %7380 = vmatprep.subr.bf16.mxu0 %v8000_v2  ;;  %7383 = vmatprep.subr.bf16.mxu1 %v8000_v2 }
 0x217   : > { %v2547_v39 = vpop.permute.xlu0 %2546  ;;  %7001 = vmatprep.mubr.msk.f32.mxu0 %vm8001_vm0, %v8002_v4  ;;  %v2861_v36 = vsel %vm829_vm4, %v8605_v37, %v9032_v17 }
 0x218   : > { %v2553_v42 = vsel %vm414_vm1, %v2552_v34, %v2547_v39 }
 0x219   : > { %v2554_v25 = vsel %vm832_vm5, %v2553_v42, %v2550_v14  ;;  %7382 = vmatpush3.bf16.msra.mxu0 %v8247_v54 }
 0x21a   : > { %6991 = vmatmul.mubr.msk.f32.vlgmr.msra.gmra.mrb[30].mxu1 %vm840_vm6, %v2554_v25  ;;  %v2648_v33 = vpop.permute.xlu1 %2647  ;;  %7389 = vmatprep.subr.bf16.mxu0 %v8000_v2 }
 0x21b   : > { %v2750_v31 = vpop.permute.xlu0 %2749  ;;  %7385 = vmatpush3.bf16.msra.mxu1 %v8229_v45  ;;  %7012 = vmatprep.mubr.msk.f32.mxu1 %vm8001_vm0, %v8002_v4  ;;  %v2657_v11 = vsel %vm832_vm5, %v2655_v62, %v2648_v33 }
 0x21c   : > { %7386 = vmatprep.subr.bf16.mxu1 %v8000_v2  ;;  %v2661_v6 = vrot.slane %v2657_v11, 7 }
 0x21e   : > { %v2742_v59 = vpop.permute.xlu1 %2741 }
 0x21f   : > { %v2951_v32 = vpop.permute.xlu0 %2950  ;;  %7388 = vmatpush3.bf16.msra.mxu1 %v8247_v54  ;;  %v2755_v20 = vsel %vm414_vm1, %v2753_v52, %v2742_v59 }
 0x220   : > { %7395 = vmatprep.subr.bf16.mxu1 %v8000_v2  ;;  %v2757_v26 = vsel %vm832_vm5, %v2755_v20, %v2748_v51  ;;  %v2967_v39 = vsel %vm829_vm4, %v8691_v10, %v2951_v32 }
 0x221   : > { %v2761_v14 = vrot.slane %v2757_v26, 7 }
 0x222   : > { %v2641_v60 = vpop.permute.xlu1 %2640 }
 0x223   : > { %v2840_v19 = vpop.permute.xlu0 %2839  ;;  %v2656_v8 = vsel %vm414_vm1, %v2654_v53, %v2641_v60 }
 0x224   : > { %v2862_v38 = vsel %vm829_vm4, %v8657_v41, %v2840_v19 }
 0x226   : > { %v2949_v22 = vpop.permute.xlu1 %2948 }
 0x227   : > { %v2650_v27 = vpop.permute.xlu0 %2649  ;;  %v2966_v29 = vsel %vm829_vm4, %v8657_v41, %v2949_v22 }
 0x228   : > { %v2658_v7 = vsel %vm832_vm5, %v2656_v8, %v2650_v27  ;;  %v9127_v8 = vld [vmem:[%s10744_s4] ss:$0 sm:$0xff] }
 0x229   : > { %v2662_v47 = vrot.slane %v2658_v7, 7 }
 0x22a   : > { %v2961_v50 = vpop.permute.xlu1 %2960 }
 0x22b   : > { %v2744_v23 = vpop.permute.xlu0 %2743  ;;  %v2663_v44 = vsel %vm816_vm2, %v2661_v6, %v2662_v47 }
 0x22c   : > { %v2756_v16 = vsel %vm414_vm1, %v2754_v9, %v2744_v23  ;;  %7002 = vmatmul.mubr.msk.f32.vlgmr.msra.gmra.mrb[62].mxu0 %vm840_vm6, %v2663_v44 }
 0x22d   : > { %v2758_v28 = vsel %vm832_vm5, %v2756_v16, %v2750_v31  ;;  %7391 = vmatpush3.bf16.msra.mxu0 %v8229_v45  ;;  %7023 = vmatprep.mubr.msk.f32.mxu0 %vm8001_vm0, %v8002_v4 }
 0x22e   : > { %v2762_v57 = vrot.slane %v2758_v28, 7  ;;  %v2847_v12 = vpop.permute.xlu1 %2846  ;;  %7392 = vmatprep.subr.bf16.mxu0 %v8000_v2 }
 0x22f   : > { %v2963_v43 = vpop.permute.xlu0 %2962  ;;  %v2863_v1 = vsel %vm414_vm1, %v2861_v36, %v2847_v12 }
 0x230   : > { %v2763_v61 = vsel %vm816_vm2, %v2761_v14, %v2762_v57 }
 0x231   : > { %7013 = vmatmul.mubr.msk.f32.vlgmr.msra.gmra.mrb[32].mxu1 %vm840_vm6, %v2763_v61  ;;  %7394 = vmatpush3.bf16.msra.mxu0 %v8247_v54 }
 0x232   : > { %v3051_v40 = vpop.permute.xlu1 %3050  ;;  %7397 = vmatpush3.bf16.msra.mxu1 %v8229_v45  ;;  %7034 = vmatprep.mubr.msk.f32.mxu1 %vm8001_vm0, %v8002_v4 }
 0x233   : > { %v9080_v3 = vpop.permute.xlu0 %3163  ;;  %7398 = vmatprep.subr.bf16.mxu1 %v8000_v2  ;;  %7401 = vmatprep.subr.bf16.mxu0 %v8000_v2  ;;  %v3074_v26 = vsel %vm829_vm4, %v8691_v10, %v3051_v40 }
 0x236   : > { %v2856_v13 = vpop.permute.xlu1 %2855  ;;  %7400 = vmatpush3.bf16.msra.mxu1 %v8247_v54 }
 0x237   : > { %v2849_v58 = vpop.permute.xlu0 %2848  ;;  %7407 = vmatprep.subr.bf16.mxu1 %v8000_v2  ;;  %v2865_v51 = vsel %vm832_vm5, %v2863_v1, %v2856_v13 }
 0x238   : > { %v2864_v56 = vsel %vm414_vm1, %v2862_v38, %v2849_v58  ;;  %v2869_v34 = vrot.slane %v2865_v51, 6  ;;  %v3180_v58 = vsel %vm829_vm4, %v8770_v18, %v9080_v3 }
 0x23a   : > { %v2955_v49 = vpop.permute.xlu1 %2954 }
 0x23b   : > { %v3053_v5 = vpop.permute.xlu0 %3052  ;;  %v2968_v0 = vsel %vm414_vm1, %v2966_v29, %v2955_v49 }
 0x23c   : > { %v2970_v42 = vsel %vm832_vm5, %v2968_v0, %v2961_v50  ;;  %v3075_v44 = vsel %vm829_vm4, %v8741_v63, %v3053_v5 }
 0x23d   : > { %v2974_v59 = vrot.slane %v2970_v42, 6 }
 0x23e   : > { %v3162_v21 = vpop.permute.xlu1 %3161 }
 0x23f   : > { %v2858_v30 = vpop.permute.xlu0 %2857  ;;  %v3179_v14 = vsel %vm829_vm4, %v8741_v63, %v3162_v21 }
 0x240   : > { %v2866_v46 = vsel %vm832_vm5, %v2864_v56, %v2858_v30 }
 0x241   : > { %v2870_v37 = vrot.slane %v2866_v46, 6 }
 0x242   : > { %v3174_v17 = vpop.permute.xlu1 %3173 }
 0x243   : > { %v2957_v25 = vpop.permute.xlu0 %2956  ;;  %v2871_v33 = vsel %vm1243_vm7, %v2869_v34, %v2870_v37 }
 0x244   : > { %v2969_v41 = vsel %vm414_vm1, %v2967_v39, %v2957_v25  ;;  %7024 = vmatmul.mubr.msk.f32.vlgmr.msra.gmra.mrb[64].mxu0 %vm840_vm6, %v2871_v33 }
 0x245   : > { %v2971_v31 = vsel %vm832_vm5, %v2969_v41, %v2963_v43  ;;  %7403 = vmatpush3.bf16.msra.mxu0 %v8229_v45  ;;  %7045 = vmatprep.mubr.msk.f32.mxu0 %vm8001_vm0, %v8002_v4 }
 0x246   : > { %v2975_v60 = vrot.slane %v2971_v31, 6  ;;  %v3060_v19 = vpop.permute.xlu1 %3059  ;;  %7404 = vmatprep.subr.bf16.mxu0 %v8000_v2 }
 0x247   : > { %v3176_v32 = vpop.permute.xlu0 %3175  ;;  %v9109_v35 = vpop.f32.mrb[0].mxu1  ;;  %v3076_v23 = vsel %vm414_vm1, %v3074_v26, %v3060_v19 }
 0x248   : > { %v6805_v62 = vpop.f32.mrb[1].mxu1  ;;  %v2976_v53 = vsel %vm1243_vm7, %v2974_v59, %v2975_v60 }
 0x249   : > { %7035 = vmatmul.mubr.msk.f32.vlgmr.msra.gmra.mrb[34].mxu1 %vm840_vm6, %v2976_v53  ;;  %7406 = vmatpush3.bf16.msra.mxu0 %v8247_v54 }
 0x24a   : > { %v9114_v11 = vpop.permute.xlu1 %3263  ;;  %7409 = vmatpush3.bf16.msra.mxu1 %v8229_v45  ;;  %7056 = vmatprep.mubr.msk.f32.mxu1 %vm8001_vm0, %v8002_v4 }
 0x24b   : > { %v9119_v22 = vpop.permute.xlu0 %3376  ;;  %7410 = vmatprep.subr.bf16.mxu1 %v8000_v2  ;;  %7413 = vmatprep.subr.bf16.mxu0 %v8000_v2  ;;  %v3287_v33 = vsel %vm829_vm4, %v8770_v18, %v9114_v11 }
 0x24e   : > { %v3069_v52 = vpop.permute.xlu1 %3068  ;;  %7412 = vmatpush3.bf16.msra.mxu1 %v8247_v54 }
 0x24f   : > { %v998_v27 = vpop.f32.mrb[2].mxu1  ;;  %v3062_v20 = vpop.permute.xlu0 %3061  ;;  %7419 = vmatprep.subr.bf16.mxu1 %v8000_v2  ;;  %v3078_v16 = vsel %vm832_vm5, %v3076_v23, %v3069_v52 }
 0x250   : > { %v999_v7 = vadd.f32 %v9127_v8, %v998_v27  ;;  %v6816_v6 = vpop.f32.mrb[3].mxu1  ;;  %v3077_v57 = vsel %vm414_vm1, %v3075_v44, %v3062_v20  ;;  %v3082_v61 = vrot.slane %v3078_v16, 5 }
 0x252   : > { %v1002_v47 = vmax.f32 %v999_v7, 0.0  ;;  %v3168_v50 = vpop.permute.xlu1 %3167 }
 0x253   : > { %v3266_v9 = vpop.permute.xlu0 %3265  ;;  %v3181_v43 = vsel %vm414_vm1, %v3179_v14, %v3168_v50  ;;  %v3393_v50 = vsel %vm829_vm4, %v8852_v15, %v9119_v22 }
 0x254   : > { %3699 = vrot.lane.b32.xlu1 %v1002_v47, %s8005_s22  ;;  %v3183_v49 = vsel %vm832_vm5, %v3181_v43, %v3174_v17  ;;  %v3288_v31 = vsel %vm829_vm4, %v8819_v24, %v3266_v9 }
 0x255   : > { %v3187_v38 = vrot.slane %v3183_v49, 5  ;;  %v3690_v49 = vld [vmem:[%s10745_s5 + $0x8] sm:$0xff] }
 0x256   : > { %v3375_v28 = vpop.permute.xlu1 %3374 }
 0x257   : > { %v3071_v12 = vpop.permute.xlu0 %3070 }
 0x258   : > { %v3079_v10 = vsel %vm832_vm5, %v3077_v57, %v3071_v12 }
 0x259   : > { %v3083_v40 = vrot.slane %v3079_v10, 5 }
 0x25a   : > { %v3387_v13 = vpop.permute.xlu1 %3386 }
 0x25b   : > { %v3170_v5 = vpop.permute.xlu0 %3169  ;;  %v3084_v36 = vsel %vm1458_vm8, %v3082_v61, %v3083_v40 }
 0x25c   : > { %v3182_v63 = vsel %vm414_vm1, %v3180_v58, %v3170_v5  ;;  %7046 = vmatmul.mubr.msk.f32.vlgmr.msra.gmra.mrb[66].mxu0 %vm840_vm6, %v3084_v36 }
 0x25d   : > { %v3184_v1 = vsel %vm832_vm5, %v3182_v63, %v3176_v32  ;;  %7415 = vmatpush3.bf16.msra.mxu0 %v8229_v45  ;;  %7067 = vmatprep.mubr.msk.f32.mxu0 %vm8001_vm0, %v8002_v4  ;;  %v3392_v32 = vsel %vm829_vm4, %v8819_v24, %v3375_v28 }
 0x25e   : > { %v3188_v51 = vrot.slane %v3184_v1, 5  ;;  %v3273_v21 = vpop.permute.xlu1 %3272  ;;  %7416 = vmatprep.subr.bf16.mxu0 %v8000_v2 }
 0x25f   : > { %v3389_v3 = vpop.permute.xlu0 %3388  ;;  %v3289_v41 = vsel %vm414_vm1, %v3287_v33, %v3273_v21  ;;  %v3694_v33 = vld [vmem:[%s10745_s5 + $0x28] sm:$0xff] }
 0x260   : > { %v3189_v29 = vsel %vm1458_vm8, %v3187_v38, %v3188_v51 }
 0x261   : > { %7057 = vmatmul.mubr.msk.f32.vlgmr.msra.gmra.mrb[36].mxu1 %vm840_vm6, %v3189_v29  ;;  %7418 = vmatpush3.bf16.msra.mxu0 %v8247_v54  ;;  %v3692_v29 = vld [vmem:[%s10745_s5 + $0x18] sm:$0xff] }
 0x262   : > { %v3477_v56 = vpop.permute.xlu1 %3476  ;;  %7421 = vmatpush3.bf16.msra.mxu1 %v8229_v45  ;;  %7078 = vmatprep.mubr.msk.f32.mxu1 %vm8001_vm0, %v8002_v4 }
 0x263   : > { %v9161_v30 = vpop.permute.xlu0 %3589  ;;  %7422 = vmatprep.subr.bf16.mxu1 %v8000_v2  ;;  %7425 = vmatprep.subr.bf16.mxu0 %v8000_v2  ;;  %v3500_v43 = vsel %vm829_vm4, %v8852_v15, %v3477_v56  ;;  %v3689_v15 = vld [vmem:[%s10745_s5] sm:$0xff] }
 0x264   : > { %v9219_v38 = vpack.c.bf16 %v3690_v49, %v3689_v15 }
 0x266   : > { %v1106_v0 = vpop.f32.mrb[4].mxu1  ;;  %v3282_v46 = vpop.permute.xlu1 %3281  ;;  %7424 = vmatpush3.bf16.msra.mxu1 %v8247_v54 }
 0x267   : > { %v1107_v34 = vadd.f32 %v9127_v8, %v1106_v0  ;;  %v3275_v37 = vpop.permute.xlu0 %3274  ;;  %v6827_v17 = vpop.f32.mrb[5].mxu1  ;;  %7431 = vmatprep.subr.bf16.mxu1 %v8000_v2  ;;  %v3291_v59 = vsel %vm832_vm5, %v3289_v41, %v3282_v46 }
 0x268   : > { %v3290_v62 = vsel %vm414_vm1, %v3288_v31, %v3275_v37  ;;  %v3295_v20 = vrot.slane %v3291_v59, 4 }
 0x269   : > { %v1110_v39 = vmax.f32 %v1107_v34, 0.0 }
 0x26a   : > { %v3381_v42 = vpop.permute.xlu1 %3380 }
 0x26b   : > { %v3479_v25 = vpop.permute.xlu0 %3478  ;;  %3703 = vrot.lane.b32.xlu0 %v1110_v39, %s8006_s27  ;;  %v3394_v18 = vsel %vm414_vm1, %v3392_v32, %v3381_v42  ;;  %v3606_v42 = vsel %vm829_vm4, %v8921_v48, %v9161_v30  ;;  %v3696_v32 = vld [vmem:[%s10745_s5 + $0x38] sm:$0xff] }
 0x26c   : > { %v3396_v24 = vsel %vm832_vm5, %v3394_v18, %v3387_v13  ;;  %v3501_v40 = vsel %vm829_vm4, %v8888_v55, %v3479_v25 }
 0x26d   : > { %v3400_v22 = vrot.slane %v3396_v24, 4 }
 0x26e   : > { %v1206_v60 = vpop.f32.mrb[6].mxu1  ;;  %v3588_v19 = vpop.permute.xlu1 %3587 }
 0x26f   : > { %v1207_v53 = vadd.f32 %v9127_v8, %v1206_v60  ;;  %v6838_v52 = vpop.f32.mrb[7].mxu1  ;;  %v3284_v27 = vpop.permute.xlu0 %3283  ;;  %v3605_v37 = vsel %vm829_vm4, %v8888_v55, %v3588_v19  ;;  %v3693_v55 = vld [vmem:[%s10745_s5 + $0x20] sm:$0xff]  ;;  %v3695_v19 = vld [vmem:[%s10745_s5 + $0x30] sm:$0xff] }
 0x270   : > { %v3292_v11 = vsel %vm832_vm5, %v3290_v62, %v3284_v27  ;;  %v9255_v60 = vpack.c.bf16 %v3694_v33, %v3693_v55 }
 0x271   : > { %v1210_v7 = vmax.f32 %v1207_v53, 0.0  ;;  %v3296_v6 = vrot.slane %v3292_v11, 4  ;;  %v9267_v53 = vpack.c.bf16 %v3696_v32, %v3695_v19 }
 0x272   : > { %v3486_v47 = vpop.permute.xlu1 %3485 }
 0x273   : > { %v3383_v9 = vpop.permute.xlu0 %3382  ;;  %3707 = vrot.lane.b32.xlu1 %v1210_v7, %s8007_s28  ;;  %v3297_v26 = vsel %vm1672_vm9, %v3295_v20, %v3296_v6  ;;  %v3502_v61 = vsel %vm414_vm1, %v3500_v43, %v3486_v47 }
 0x274   : > { %v3395_v23 = vsel %vm414_vm1, %v3393_v50, %v3383_v9  ;;  %7068 = vmatmul.mubr.msk.f32.vlgmr.msra.gmra.mrb[68].mxu0 %vm840_vm6, %v3297_v26 }
 0x275   : > { %v3397_v44 = vsel %vm832_vm5, %v3395_v23, %v3389_v3  ;;  %7427 = vmatpush3.bf16.msra.mxu0 %v8229_v45  ;;  %7089 = vmatprep.mubr.msk.f32.mxu0 %vm8001_vm0, %v8002_v4  ;;  %v3691_v3 = vld [vmem:[%s10745_s5 + $0x10] sm:$0xff] }
 0x276   : > { %v3401_v16 = vrot.slane %v3397_v44, 4  ;;  %v9194_v28 = vpop.f32.mrb[8].mxu1  ;;  %v3495_v14 = vpop.permute.xlu1 %3494  ;;  %7428 = vmatprep.subr.bf16.mxu0 %v8000_v2  ;;  %v9236_v39 = vpack.c.bf16 %v3692_v29, %v3691_v3 }
 0x277   : > { %v3488_v57 = vpop.permute.xlu0 %3487  ;;  %v6849_v12 = vpop.f32.mrb[9].mxu1  ;;  %v3504_v13 = vsel %vm832_vm5, %v3502_v61, %v3495_v14 }
 0x278   : > { %v3402_v10 = vsel %vm1672_vm9, %v3400_v22, %v3401_v16  ;;  %v3503_v5 = vsel %vm414_vm1, %v3501_v40, %v3488_v57  ;;  %v3508_v63 = vrot.slane %v3504_v13, 3 }
 0x279   : > { %7079 = vmatmul.mubr.msk.f32.vlgmr.msra.gmra.mrb[38].mxu1 %vm840_vm6, %v3402_v10  ;;  %7430 = vmatpush3.bf16.msra.mxu0 %v8247_v54 }
 0x27a   : > { %v3594_v58 = vpop.permute.xlu1 %3593  ;;  %7433 = vmatpush3.bf16.msra.mxu1 %v8229_v45  ;;  %7100 = vmatprep.mubr.msk.f32.mxu1 %vm8001_vm0, %v8002_v4 }
 0x27b   : > { %v3497_v36 = vpop.permute.xlu0 %3496  ;;  %7434 = vmatprep.subr.bf16.mxu1 %v8000_v2  ;;  %7437 = vmatprep.subr.bf16.mxu0 %v8000_v2 }
 0x27c   : > { %v3505_v45 = vsel %vm832_vm5, %v3503_v5, %v3497_v36 }
 0x27d   : > { %v3509_v1 = vrot.slane %v3505_v45, 3 }
 0x27e   : > { %v1421_v51 = vpop.f32.mrb[10].mxu1  ;;  %v3600_v21 = vpop.permute.xlu1 %3599  ;;  %7436 = vmatpush3.bf16.msra.mxu1 %v8247_v54  ;;  %v3607_v54 = vsel %vm414_vm1, %v3605_v37, %v3594_v58 }
 0x27f   : > { %v1422_v56 = vadd.f32 %v9127_v8, %v1421_v51  ;;  %v6860_v0 = vpop.f32.mrb[11].mxu1  ;;  %v3596_v46 = vpop.permute.xlu0 %3595  ;;  %v3510_v34 = vsel %vm1886_vm10, %v3508_v63, %v3509_v1  ;;  %7449 = vmatprep.subr.bf16.mxu1 %v8000_v2  ;;  %v3609_v25 = vsel %vm832_vm5, %v3607_v54, %v3600_v21  ;;  %v911_v1 = vadd.f32 %v9127_v8, %v9109_v35 }
 0x280   : > { %7090 = vmatmul.mubr.msk.f32.vlgmr.msra.gmra.mrb[70].mxu0 %vm840_vm6, %v3510_v34  ;;  %v3608_v41 = vsel %vm414_vm1, %v3606_v42, %v3596_v46  ;;  %v3613_v48 = vrot.slane %v3609_v25, 3 }
 0x281   : > { %v1425_v17 = vmax.f32 %v1422_v56, 0.0  ;;  %7439 = vmatpush3.bf16.msra.mxu0 %v9219_v38  ;;  %7119 = vmatprep.mubr.msk.f32.mxu0 %vm8001_vm0, %v8002_v4  ;;  %v914_v3 = vmax.f32 %v911_v1, 0.0 }
 0x282   : > { %7440 = vmatprep.subr.bf16.mxu0 %v8000_v2 }
 0x283   : > { %3796 = vrot.lane.b32.xlu0 %v1425_v17, %s8005_s22  ;;  %v3602_v31 = vpop.permute.xlu0 %3601 }
 0x284   : > { %v3610_v59 = vsel %vm832_vm5, %v3608_v41, %v3602_v31 }
 0x285   : > { %v3614_v30 = vrot.slane %v3610_v59, 3  ;;  %7442 = vmatpush3.bf16.msra.mxu0 %v9236_v39 }
 0x286   : > { %7443 = vmatprep.subr.bf16.mxu0 %v8000_v2 }
 0x287   : > { %v3615_v62 = vsel %vm1886_vm10, %v3613_v48, %v3614_v30 }
 0x288   : > { %7101 = vmatmul.mubr.msk.f32.vlgmr.msra.gmra.mrb[40].mxu1 %vm840_vm6, %v3615_v62 }
 0x289   : > { %7445 = vmatpush3.bf16.msra.mxu0 %v9255_v60  ;;  %7451 = vmatpush3.bf16.msra.mxu1 %v9219_v38 }
 0x28a   : > { %7446 = vmatprep.subr.bf16.mxu0 %v8000_v2  ;;  %7452 = vmatprep.subr.bf16.mxu1 %v8000_v2 }
 0x28b   : > { %7138 = vmatprep.mubr.msk.f32.mxu1 %vm8001_vm0, %v8002_v4 }
 0x28d   : > { %7448 = vmatpush3.bf16.msra.mxu0 %v9267_v53  ;;  %7454 = vmatpush3.bf16.msra.mxu1 %v9236_v39 }
 0x28e   : > { %v1530_v52 = vpop.f32.mrb[12].mxu1  ;;  %7455 = vmatprep.subr.bf16.mxu1 %v8000_v2  ;;  %7461 = vmatprep.subr.bf16.mxu0 %v8000_v2 }
 0x28f   : > { %v1531_v27 = vadd.f32 %v9127_v8, %v1530_v52  ;;  %v6871_v18 = vpop.f32.mrb[13].mxu1 }
 0x291   : > { %v1534_v11 = vmax.f32 %v1531_v27, 0.0  ;;  %7457 = vmatpush3.bf16.msra.mxu1 %v9255_v60  ;;  %v1316_v27 = vadd.f32 %v9127_v8, %v9194_v28 }
 0x292   : > { %7458 = vmatprep.subr.bf16.mxu1 %v8000_v2 }
 0x293   : > { %3800 = vrot.lane.b32.xlu1 %v1534_v11, %s8006_s27 }
 0x295   : > { %7460 = vmatpush3.bf16.msra.mxu1 %v9267_v53 }
 0x296   : > { %v1635_v20 = vpop.f32.mrb[14].mxu1  ;;  %7473 = vmatprep.subr.bf16.mxu1 %v8000_v2 }
 0x297   : > { %v1636_v7 = vadd.f32 %v9127_v8, %v1635_v20  ;;  %v6882_v6 = vpop.f32.mrb[15].mxu1  ;;  %v1319_v20 = vmax.f32 %v1316_v27, 0.0 }
 0x299   : > { %v1639_v47 = vmax.f32 %v1636_v7, 0.0 }
 0x29b   : > { %3804 = vrot.lane.b32.xlu0 %v1639_v47, %s8007_s28 }
 0x2a6   : > { %v9286_v50 = vpop.f32.mrb[16].mxu1 }
 0x2a7   : > { %v6893_v24 = vpop.f32.mrb[17].mxu1 }
 0x2ae   : > { %v1849_v9 = vpop.f32.mrb[18].mxu1 }
 0x2af   : > { %v1850_v26 = vadd.f32 %v9127_v8, %v1849_v9  ;;  %v6904_v23 = vpop.f32.mrb[19].mxu1 }
 0x2b1   : > { %v1853_v44 = vmax.f32 %v1850_v26, 0.0 }
 0x2b3   : > { %3885 = vrot.lane.b32.xlu1 %v1853_v44, %s8005_s22 }
 0x2c3   : > { %v1958_v22 = vpop.f32.mrb[20].mxu1 }
 0x2c4   : > { %v1959_v16 = vadd.f32 %v9127_v8, %v1958_v22  ;;  %v6915_v14 = vpop.f32.mrb[21].mxu1 }
 0x2c6   : > { %v1962_v57 = vmax.f32 %v1959_v16, 0.0  ;;  %v3700_v21 = vpop.permute.xlu1 %3699 }
 0x2c7   : > { %v3710_v0 = vsel %vm414_vm1, %v914_v3, %v3700_v21 }
 0x2c8   : > { %3889 = vrot.lane.b32.xlu0 %v1962_v57, %s8006_s27 }
 0x2cb   : > { %v2063_v12 = vpop.f32.mrb[22].mxu1 }
 0x2cc   : > { %v2064_v43 = vadd.f32 %v9127_v8, %v2063_v12  ;;  %v6926_v10 = vpop.f32.mrb[23].mxu1 }
 0x2ce   : > { %v2067_v61 = vmax.f32 %v2064_v43, 0.0 }
 0x2d0   : > { %3893 = vrot.lane.b32.xlu1 %v2067_v61, %s8007_s28 }
 0x2d3   : > { %v9294_v40 = vpop.f32.mrb[24].mxu1 }
 0x2d4   : > { %v6937_v13 = vpop.f32.mrb[25].mxu1 }
 0x2d5   : > { %v2355_v58 = vpop.f32.mrb[58].mxu0 }
 0x2d6   : > { %v2356_v15 = vadd.f32 %v9127_v8, %v2355_v58  ;;  %v6959_v49 = vpop.f32.mrb[59].mxu0 }
 0x2d8   : > { %v2359_v5 = vmax.f32 %v2356_v15, 0.0  ;;  %v1745_v15 = vadd.f32 %v9127_v8, %v9286_v50 }
 0x2da   : > { %3978 = vrot.lane.b32.xlu1 %v2359_v5, %s8006_s27  ;;  %v1748_v5 = vmax.f32 %v1745_v15, 0.0  ;;  %v4530_v15 = vld [vmem:[%s10747_s7 + $0x20] sm:$0xff] }
 0x2db   : > { %v2264_v36 = vpop.f32.mrb[26].mxu1 }
 0x2dc   : > { %v2265_v45 = vadd.f32 %v9127_v8, %v2264_v36  ;;  %v6948_v63 = vpop.f32.mrb[27].mxu1 }
 0x2dd   : > { %v3704_v29 = vpop.permute.xlu0 %3703 }
 0x2de   : > { %v2268_v51 = vmax.f32 %v2265_v45, 0.0  ;;  %v3711_v37 = vsel %vm840_vm6, %v3710_v0, %v3704_v29 }
 0x2e0   : > { %3974 = vrot.lane.b32.xlu0 %v2268_v51, %s8005_s22 }
 0x2e3   : > { %v2445_v56 = vpop.f32.mrb[28].mxu1 }
 0x2e4   : > { %v2446_v46 = vadd.f32 %v9127_v8, %v2445_v56  ;;  %v6970_v34 = vpop.f32.mrb[29].mxu1 }
 0x2e5   : > { %v3708_v54 = vpop.permute.xlu1 %3707 }
 0x2e6   : > { %v2449_v17 = vmax.f32 %v2446_v46, 0.0  ;;  %v3713_v35 = vsel %vm3712_vm12, %v3711_v37, %v3708_v54  ;;  %v2163_v46 = vadd.f32 %v9127_v8, %v9294_v40 }
 0x2e7   : > { %7120 = vmatmul.mubr.msk.f32.vlgmr.msra.gmra.mrb[72].mxu0 %vm3720_vm13, %v3713_v35  ;;  %v9307_v42 = vpop.f32.mrb[60].mxu0 }
 0x2e8   : > { %3982 = vrot.lane.b32.xlu0 %v2449_v17, %s8007_s28  ;;  %v6981_v25 = vpop.f32.mrb[61].mxu0  ;;  %7463 = vmatpush3.bf16.msra.mxu0 %v9219_v38  ;;  %v2166_v35 = vmax.f32 %v2163_v46, 0.0  ;;  %v4535_v46 = vld [vmem:[%s10747_s7 + $0x48] sm:$0xff] }
 0x2e9   : > { %7464 = vmatprep.subr.bf16.mxu0 %v8000_v2  ;;  %7157 = vmatprep.mubr.msk.f32.mxu0 %vm8001_vm0, %v8002_v4 }
 0x2ec   : > { %7466 = vmatpush3.bf16.msra.mxu0 %v9236_v39 }
 0x2ed   : > { %v2624_v55 = vpop.f32.mrb[30].mxu1  ;;  %7467 = vmatprep.subr.bf16.mxu0 %v8000_v2 }
 0x2ee   : > { %v2625_v33 = vadd.f32 %v9127_v8, %v2624_v55  ;;  %v6992_v41 = vpop.f32.mrb[31].mxu1 }
 0x2f0   : > { %v2628_v31 = vmax.f32 %v2625_v33, 0.0  ;;  %7469 = vmatpush3.bf16.msra.mxu0 %v9255_v60 }
 0x2f1   : > { %7470 = vmatprep.subr.bf16.mxu0 %v8000_v2 }
 0x2f2   : > { %4063 = vrot.lane.b32.xlu1 %v2628_v31, %s8005_s22 }
 0x2f4   : > { %7472 = vmatpush3.bf16.msra.mxu0 %v9267_v53 }
 0x2f5   : > { %7485 = vmatprep.subr.bf16.mxu0 %v8000_v2  ;;  %v3797_v11 = vpop.permute.xlu0 %3796 }
 0x2f6   : > { %v3807_v6 = vsel %vm414_vm1, %v1319_v20, %v3797_v11 }
 0x2ff   : > { %v2732_v59 = vpop.f32.mrb[62].mxu0 }
 0x300   : > { %v2733_v48 = vadd.f32 %v9127_v8, %v2732_v59  ;;  %v7003_v30 = vpop.f32.mrb[63].mxu0 }
 0x302   : > { %v2736_v19 = vmax.f32 %v2733_v48, 0.0 }
 0x304   : > { %v2832_v32 = vpop.f32.mrb[32].mxu1  ;;  %4067 = vrot.lane.b32.xlu0 %v2736_v19, %s8006_s27 }
 0x305   : > { %v2833_v62 = vadd.f32 %v9127_v8, %v2832_v32  ;;  %v7014_v52 = vpop.f32.mrb[33].mxu1  ;;  %v3801_v7 = vpop.permute.xlu1 %3800  ;;  %v2538_v32 = vadd.f32 %v9127_v8, %v9307_v42  ;;  %v4542_v42 = vld [vmem:[%s10747_s7 + $0x80] sm:$0xff] }
 0x306   : > { %v3808_v47 = vsel %vm840_vm6, %v3807_v6, %v3801_v7 }
 0x307   : > { %v2836_v18 = vmax.f32 %v2833_v62, 0.0  ;;  %v2541_v52 = vmax.f32 %v2538_v32, 0.0 }
 0x309   : > { %4071 = vrot.lane.b32.xlu1 %v2836_v18, %s8007_s28 }
 0x30d   : > { %v3805_v24 = vpop.permute.xlu0 %3804 }
 0x30e   : > { %v3809_v9 = vsel %vm3712_vm12, %v3808_v47, %v3805_v24 }
 0x30f   : > { %7139 = vmatmul.mubr.msk.f32.vlgmr.msra.gmra.mrb[42].mxu1 %vm3720_vm13, %v3809_v9 }
 0x310   : > { %7475 = vmatpush3.bf16.msra.mxu1 %v9219_v38  ;;  %7176 = vmatprep.mubr.msk.f32.mxu1 %vm8001_vm0, %v8002_v4 }
 0x311   : > { %7476 = vmatprep.subr.bf16.mxu1 %v8000_v2 }
 0x314   : > { %7478 = vmatpush3.bf16.msra.mxu1 %v9236_v39 }
 0x315   : > { %7479 = vmatprep.subr.bf16.mxu1 %v8000_v2 }
 0x317   : > { %v9338_v28 = vpop.f32.mrb[64].mxu0 }
 0x318   : > { %v7025_v26 = vpop.f32.mrb[65].mxu0  ;;  %7481 = vmatpush3.bf16.msra.mxu1 %v9255_v60 }
 0x319   : > { %7482 = vmatprep.subr.bf16.mxu1 %v8000_v2  ;;  %v4544_v26 = vld [vmem:[%s10747_s7 + $0x90] sm:$0xff] }
 0x31c   : > { %v3045_v23 = vpop.f32.mrb[34].mxu1  ;;  %7484 = vmatpush3.bf16.msra.mxu1 %v9267_v53 }
 0x31d   : > { %v3046_v44 = vadd.f32 %v9127_v8, %v3045_v23  ;;  %v7036_v22 = vpop.f32.mrb[35].mxu1  ;;  %7497 = vmatprep.subr.bf16.mxu1 %v8000_v2  ;;  %v4545_v23 = vld [vmem:[%s10747_s7 + $0x98] sm:$0xff] }
 0x31f   : > { %v3049_v16 = vmax.f32 %v3046_v44, 0.0 }
 0x321   : > { %4152 = vrot.lane.b32.xlu0 %v3049_v16, %s8005_s22 }
 0x325   : > { %v3886_v49 = vpop.permute.xlu1 %3885 }
 0x326   : > { %v3896_v45 = vsel %vm414_vm1, %v1748_v5, %v3886_v49  ;;  %v4531_v49 = vld [vmem:[%s10747_s7 + $0x28] sm:$0xff]  ;;  %v4548_v5 = vld [vmem:[%s10747_s7 + $0xb0] sm:$0xff] }
 0x32f   : > { %v3153_v14 = vpop.f32.mrb[66].mxu0 }
 0x330   : > { %v3154_v57 = vadd.f32 %v9127_v8, %v3153_v14  ;;  %v7047_v12 = vpop.f32.mrb[67].mxu0  ;;  %v7525_v14 = vpack.c.bf16 %v4545_v23, %v4544_v26 }
 0x331   : > { %v4529_v12 = vld [vmem:[%s10747_s7 + $0x18] sm:$0xff] }
 0x332   : > { %v3157_v43 = vmax.f32 %v3154_v57, 0.0  ;;  %v4528_v57 = vld [vmem:[%s10747_s7 + $0x10] sm:$0xff] }
 0x334   : > { %v3258_v10 = vpop.f32.mrb[36].mxu1  ;;  %4156 = vrot.lane.b32.xlu1 %v3157_v43, %s8006_s27 }
 0x335   : > { %v3259_v61 = vadd.f32 %v9127_v8, %v3258_v10  ;;  %v7058_v13 = vpop.f32.mrb[37].mxu1  ;;  %v4546_v10 = vld [vmem:[%s10747_s7 + $0xa0] sm:$0xff] }
 0x336   : > { %v7527_v13 = vpack.c.bf16 %v4529_v12, %v4528_v57  ;;  %v4576_v57 = vld [vmem:[%s10747_s7 + $0x190] sm:$0xff] }
 0x337   : > { %v3262_v58 = vmax.f32 %v3259_v61, 0.0  ;;  %v4547_v61 = vld [vmem:[%s10747_s7 + $0xa8] sm:$0xff] }
 0x339   : > { %4160 = vrot.lane.b32.xlu0 %v3262_v58, %s8007_s28  ;;  %v7529_v58 = vpack.c.bf16 %v4547_v61, %v4546_v10 }
 0x33a   : > { %v3890_v36 = vpop.permute.xlu0 %3889 }
 0x33b   : > { %v3897_v63 = vsel %vm840_vm6, %v3896_v45, %v3890_v36  ;;  %v4549_v36 = vld [vmem:[%s10747_s7 + $0xb8] sm:$0xff]  ;;  %v7531_v45 = vpack.c.bf16 %v4531_v49, %v4530_v15  ;;  %v4578_v49 = vld [vmem:[%s10747_s7 + $0x1a0] sm:$0xff] }
 0x342   : > { %v3894_v1 = vpop.permute.xlu1 %3893 }
 0x343   : > { %v3898_v51 = vsel %vm3712_vm12, %v3897_v63, %v3894_v1  ;;  %v7533_v63 = vpack.c.bf16 %v4549_v36, %v4548_v5  ;;  %v4532_v1 = vld [vmem:[%s10747_s7 + $0x30] sm:$0xff]  ;;  %v4579_v5 = vld [vmem:[%s10747_s7 + $0x1a8] sm:$0xff] }
 0x344   : > { %7158 = vmatmul.mubr.msk.f32.vlgmr.msra.gmra.mrb[74].mxu0 %vm3720_vm13, %v3898_v51  ;;  %v4533_v51 = vld [vmem:[%s10747_s7 + $0x38] sm:$0xff] }
 0x345   : > { %7487 = vmatpush3.bf16.msra.mxu0 %v9219_v38  ;;  %7195 = vmatprep.mubr.msk.f32.mxu0 %vm8001_vm0, %v8002_v4 }
 0x346   : > { %7488 = vmatprep.subr.bf16.mxu0 %v8000_v2 }
 0x347   : > { %v9360_v50 = vpop.f32.mrb[68].mxu0 }
 0x348   : > { %v7069_v21 = vpop.f32.mrb[69].mxu0  ;;  %v3367_v23 = vadd.f32 %v9127_v8, %v9360_v50 }
 0x349   : > { %7490 = vmatpush3.bf16.msra.mxu0 %v9236_v39  ;;  %v4550_v21 = vld [vmem:[%s10747_s7 + $0xc0] sm:$0xff] }
 0x34a   : > { %7491 = vmatprep.subr.bf16.mxu0 %v8000_v2 }
 0x34c   : > { %v3471_v3 = vpop.f32.mrb[38].mxu1  ;;  %v3979_v33 = vpop.permute.xlu1 %3978 }
 0x34d   : > { %v3472_v29 = vadd.f32 %v9127_v8, %v3471_v3  ;;  %v7080_v56 = vpop.f32.mrb[39].mxu1  ;;  %7493 = vmatpush3.bf16.msra.mxu0 %v9255_v60  ;;  %v4551_v3 = vld [vmem:[%s10747_s7 + $0xc8] sm:$0xff] }
 0x34e   : > { %7494 = vmatprep.subr.bf16.mxu0 %v8000_v2  ;;  %v7537_v56 = vpack.c.bf16 %v4551_v3, %v4550_v21  ;;  %v4581_v21 = vld [vmem:[%s10747_s7 + $0x1b8] sm:$0xff] }
 0x34f   : > { %v3475_v0 = vmax.f32 %v3472_v29, 0.0  ;;  %v7535_v29 = vpack.c.bf16 %v4533_v51, %v4532_v1  ;;  %v4563_v1 = vld [vmem:[%s10747_s7 + $0x128] sm:$0xff]  ;;  %v4580_v51 = vld [vmem:[%s10747_s7 + $0x1b0] sm:$0xff] }
 0x351   : > { %4241 = vrot.lane.b32.xlu1 %v3475_v0, %s8005_s22  ;;  %7496 = vmatpush3.bf16.msra.mxu0 %v9267_v53  ;;  %v4534_v0 = vld [vmem:[%s10747_s7 + $0x40] sm:$0xff] }
 0x352   : > { %7509 = vmatprep.subr.bf16.mxu0 %v8000_v2  ;;  %v3975_v37 = vpop.permute.xlu0 %3974 }
 0x353   : > { %v3579_v34 = vpop.f32.mrb[70].mxu0  ;;  %v3985_v55 = vsel %vm414_vm1, %v2166_v35, %v3975_v37  ;;  %v4552_v37 = vld [vmem:[%s10747_s7 + $0xd0] sm:$0xff]  ;;  %v7539_v35 = vpack.c.bf16 %v4535_v46, %v4534_v0  ;;  %v4565_v0 = vld [vmem:[%s10747_s7 + $0x138] sm:$0xff]  ;;  %v4582_v46 = vld [vmem:[%s10747_s7 + $0x1c0] sm:$0xff] }
 0x354   : > { %v3580_v54 = vadd.f32 %v9127_v8, %v3579_v34  ;;  %v7091_v17 = vpop.f32.mrb[71].mxu0  ;;  %v3986_v40 = vsel %vm840_vm6, %v3985_v55, %v3979_v33  ;;  %v9473_v34 = vld [vmem:[%s10746_s6] ss:$0 sm:$0xff]  ;;  %v4575_v55 = vld [vmem:[%s10747_s7 + $0x188] sm:$0xff] }
 0x356   : > { %v3583_v25 = vmax.f32 %v3580_v54, 0.0  ;;  %v4553_v54 = vld [vmem:[%s10747_s7 + $0xd8] sm:$0xff] }
 0x358   : > { %4245 = vrot.lane.b32.xlu0 %v3583_v25, %s8006_s27  ;;  %v4574_v25 = vld [vmem:[%s10747_s7 + $0x180] sm:$0xff] }
 0x35a   : > { %v3983_v41 = vpop.permute.xlu0 %3982 }
 0x35b   : > { %v3987_v31 = vsel %vm3712_vm12, %v3986_v40, %v3983_v41  ;;  %v3684_v59 = vpop.f32.mrb[40].mxu1  ;;  %v7541_v40 = vpack.c.bf16 %v4553_v54, %v4552_v37  ;;  %v4583_v37 = vld [vmem:[%s10747_s7 + $0x1c8] sm:$0xff] }
 0x35c   : > { %v3685_v48 = vadd.f32 %v9127_v8, %v3684_v59  ;;  %7177 = vmatmul.mubr.msk.f32.vlgmr.msra.gmra.mrb[44].mxu1 %vm3720_vm13, %v3987_v31  ;;  %v7102_v30 = vpop.f32.mrb[41].mxu1  ;;  %v4536_v31 = vld [vmem:[%s10747_s7 + $0x50] sm:$0xff]  ;;  %v4537_v59 = vld [vmem:[%s10747_s7 + $0x58] sm:$0xff] }
 0x35d   : > { %7499 = vmatpush3.bf16.msra.mxu1 %v9219_v38  ;;  %7214 = vmatprep.mubr.msk.f32.mxu1 %vm8001_vm0, %v8002_v4  ;;  %v4554_v30 = vld [vmem:[%s10747_s7 + $0xe0] sm:$0xff] }
 0x35e   : > { %v3688_v19 = vmax.f32 %v3685_v48, 0.0  ;;  %7500 = vmatprep.subr.bf16.mxu1 %v8000_v2  ;;  %v7553_v48 = vpack.c.bf16 %v4575_v55, %v4574_v25  ;;  %v4567_v25 = vld [vmem:[%s10747_s7 + $0x148] sm:$0xff]  ;;  %v4584_v55 = vld [vmem:[%s10747_s7 + $0x1d0] sm:$0xff] }
 0x360   : > { %4249 = vrot.lane.b32.xlu1 %v3688_v19, %s8007_s28  ;;  %v4555_v19 = vld [vmem:[%s10747_s7 + $0xe8] sm:$0xff] }
 0x361   : > { %7502 = vmatpush3.bf16.msra.mxu1 %v9236_v39 }
 0x362   : > { %7503 = vmatprep.subr.bf16.mxu1 %v8000_v2 }
 0x364   : > { %v4064_v62 = vpop.permute.xlu1 %4063 }
 0x365   : > { %7505 = vmatpush3.bf16.msra.mxu1 %v9255_v60  ;;  %v4074_v18 = vsel %vm414_vm1, %v2541_v52, %v4064_v62  ;;  %v7543_v62 = vpack.c.bf16 %v4537_v59, %v4536_v31  ;;  %v4568_v59 = vld [vmem:[%s10747_s7 + $0x150] sm:$0xff] }
 0x366   : > { %7506 = vmatprep.subr.bf16.mxu1 %v8000_v2 }
 0x369   : > { %7508 = vmatpush3.bf16.msra.mxu1 %v9267_v53 }
 0x376   : > { %v4068_v27 = vpop.permute.xlu0 %4067 }
 0x377   : > { %v4075_v11 = vsel %vm840_vm6, %v4074_v18, %v4068_v27  ;;  %v7545_v18 = vpack.c.bf16 %v4555_v19, %v4554_v30 }
 0x37b   : > { %v4072_v20 = vpop.permute.xlu1 %4071 }
 0x37c   : > { %v4076_v7 = vsel %vm3712_vm12, %v4075_v11, %v4072_v20  ;;  %v4538_v11 = vld [vmem:[%s10747_s7 + $0x60] sm:$0xff]  ;;  %v4539_v20 = vld [vmem:[%s10747_s7 + $0x68] sm:$0xff] }
 0x37d   : > { %7196 = vmatmul.mubr.msk.f32.vlgmr.msra.gmra.mrb[76].mxu0 %vm3720_vm13, %v4076_v7  ;;  %v4556_v7 = vld [vmem:[%s10747_s7 + $0xf0] sm:$0xff] }
 0x37e   : > { %7511 = vmatpush3.bf16.msra.mxu0 %v9219_v38  ;;  %7233 = vmatprep.mubr.msk.f32.mxu0 %vm8001_vm0, %v8002_v4  ;;  %v4543_v38 = vld [vmem:[%s10747_s7 + $0x88] sm:$0xff] }
 0x37f   : > { %7512 = vmatprep.subr.bf16.mxu0 %v8000_v2  ;;  %v7521_v6 = vpack.c.bf16 %v4543_v38, %v4542_v42  ;;  %v4557_v42 = vld [vmem:[%s10747_s7 + $0xf8] sm:$0xff] }
 0x381   : > { %7522 = vmatprep.subr.bf16.mxu1 %v7521_v6  ;;  %v7547_v6 = vpack.c.bf16 %v4539_v20, %v4538_v11 }
 0x382   : > { %7514 = vmatpush3.bf16.msra.mxu0 %v9236_v39  ;;  %v2941_v39 = vadd.f32 %v9127_v8, %v9338_v28  ;;  %v4577_v8 = vld [vmem:[%s10747_s7 + $0x198] sm:$0xff] }
 0x383   : > { %7515 = vmatprep.subr.bf16.mxu0 %v8000_v2  ;;  %v7557_v61 = vpack.c.bf16 %v4577_v8, %v4576_v57 }
 0x384   : > { %v2944_v24 = vmax.f32 %v2941_v39, 0.0  ;;  %v7549_v39 = vpack.c.bf16 %v4557_v42, %v4556_v7  ;;  %v4570_v7 = vld [vmem:[%s10747_s7 + $0x160] sm:$0xff]  ;;  %v4571_v42 = vld [vmem:[%s10747_s7 + $0x168] sm:$0xff] }
 0x386   : > { %7517 = vmatpush3.bf16.msra.mxu0 %v9255_v60  ;;  %v4526_v60 = vld [vmem:[%s10747_s7] sm:$0xff] }
 0x387   : > { %7518 = vmatprep.subr.bf16.mxu0 %v8000_v2 }
 0x38a   : > { %7520 = vmatpush3.bf16.msra.mxu0 %v9267_v53  ;;  %v4527_v53 = vld [vmem:[%s10747_s7 + $0x8] sm:$0xff] }
 0x38b   : > { %v7523_v44 = vpack.c.bf16 %v4527_v53, %v4526_v60  ;;  %7554 = vmatprep.subr.bf16.mxu0 %v7553_v48  ;;  %v4541_v60 = vld [vmem:[%s10747_s7 + $0x78] sm:$0xff]  ;;  %v4606_v53 = vld [vmem:[%s10747_s7 + $0x280] sm:$0xff] }
 0x38c   : > { %v4569_v48 = vld [vmem:[%s10747_s7 + $0x158] sm:$0xff] }
 0x38d   : > { %v7575_v11 = vpack.c.bf16 %v4569_v48, %v4568_v59  ;;  %v4594_v48 = vld [vmem:[%s10747_s7 + $0x220] sm:$0xff] }
 0x393   : > { %v4153_v47 = vpop.permute.xlu0 %4152 }
 0x394   : > { %v4163_v28 = vsel %vm414_vm1, %v2944_v24, %v4153_v47  ;;  %v4540_v47 = vld [vmem:[%s10747_s7 + $0x70] sm:$0xff]  ;;  %v4607_v24 = vld [vmem:[%s10747_s7 + $0x288] sm:$0xff] }
 0x395   : > { %v7585_v26 = vpack.c.bf16 %v4607_v24, %v4606_v53  ;;  %v7579_v24 = vpack.c.bf16 %v4571_v42, %v4570_v7  ;;  %v4614_v7 = vld [vmem:[%s10747_s7 + $0x2c0] sm:$0xff]  ;;  %v4615_v42 = vld [vmem:[%s10747_s7 + $0x2c8] sm:$0xff] }
 0x3a6   : > { %v4157_v9 = vpop.permute.xlu1 %4156 }
 0x3a7   : > { %v4164_v22 = vsel %vm840_vm6, %v4163_v28, %v4157_v9  ;;  %v7551_v9 = vpack.c.bf16 %v4541_v60, %v4540_v47  ;;  %v4588_v47 = vld [vmem:[%s10747_s7 + $0x1f0] sm:$0xff]  ;;  %v4589_v60 = vld [vmem:[%s10747_s7 + $0x1f8] sm:$0xff] }
 0x3ab   : > { %v4161_v16 = vpop.permute.xlu0 %4160 }
 0x3ac   : > { %v4165_v43 = vsel %vm3712_vm12, %v4164_v22, %v4161_v16  ;;  %v4559_v22 = vld [vmem:[%s10747_s7 + $0x108] sm:$0xff]  ;;  %v3370_v16 = vmax.f32 %v3367_v23, 0.0  ;;  %v4573_v23 = vld [vmem:[%s10747_s7 + $0x178] sm:$0xff] }
 0x3ad   : > { %7215 = vmatmul.mubr.msk.f32.vlgmr.msra.gmra.mrb[46].mxu1 %vm3720_vm13, %v4165_v43 }
 0x3ae   : > { %7524 = vmatpush3.bf16.msra.mxu1 %v7523_v44  ;;  %v4558_v44 = vld [vmem:[%s10747_s7 + $0x100] sm:$0xff] }
 0x3af   : > { %7526 = vmatprep.subr.bf16.mxu1 %v7525_v14  ;;  %v7555_v12 = vpack.c.bf16 %v4559_v22, %v4558_v44  ;;  %v4639_v44 = vld [vmem:[%s10747_s7 + $0x388] sm:$0xff] }
 0x3b2   : > { %7528 = vmatpush3.bf16.msra.mxu1 %v7527_v13  ;;  %v4560_v13 = vld [vmem:[%s10747_s7 + $0x110] sm:$0xff] }
 0x3b3   : > { %7530 = vmatprep.subr.bf16.mxu1 %v7529_v58  ;;  %v4561_v58 = vld [vmem:[%s10747_s7 + $0x118] sm:$0xff] }
 0x3b4   : > { %v7559_v36 = vpack.c.bf16 %v4561_v58, %v4560_v13 }
 0x3b6   : > { %7532 = vmatpush3.bf16.msra.mxu1 %v7531_v45  ;;  %v7561_v45 = vpack.c.bf16 %v4579_v5, %v4578_v49 }
 0x3b7   : > { %7534 = vmatprep.subr.bf16.mxu1 %v7533_v63  ;;  %v4562_v63 = vld [vmem:[%s10747_s7 + $0x120] sm:$0xff] }
 0x3b8   : > { %v7563_v3 = vpack.c.bf16 %v4563_v1, %v4562_v63  ;;  %v4590_v63 = vld [vmem:[%s10747_s7 + $0x200] sm:$0xff]  ;;  %v4591_v1 = vld [vmem:[%s10747_s7 + $0x208] sm:$0xff] }
 0x3ba   : > { %v3790_v17 = vpop.f32.mrb[72].mxu0  ;;  %7536 = vmatpush3.bf16.msra.mxu1 %v7535_v29  ;;  %v7565_v29 = vpack.c.bf16 %v4581_v21, %v4580_v51 }
 0x3bb   : > { %v3791_v33 = vadd.f32 %v9473_v34, %v3790_v17  ;;  %v7121_v41 = vpop.f32.mrb[73].mxu0  ;;  %7538 = vmatprep.subr.bf16.mxu1 %v7537_v56  ;;  %v4564_v56 = vld [vmem:[%s10747_s7 + $0x130] sm:$0xff]  ;;  %v7569_v17 = vpack.c.bf16 %v4583_v37, %v4582_v46 }
 0x3bc   : > { %v7567_v54 = vpack.c.bf16 %v4565_v0, %v4564_v56 }
 0x3bd   : > { %v9500_v32 = vmax.f32 %v3791_v33, 0.0  ;;  %v4585_v33 = vld [vmem:[%s10747_s7 + $0x1d8] sm:$0xff] }
 0x3be   : > { %7540 = vmatpush3.bf16.msra.mxu1 %v7539_v35  ;;  %v4566_v35 = vld [vmem:[%s10747_s7 + $0x140] sm:$0xff]  ;;  %v7573_v31 = vpack.c.bf16 %v4585_v33, %v4584_v55  ;;  %v4592_v55 = vld [vmem:[%s10747_s7 + $0x210] sm:$0xff]  ;;  %v4593_v33 = vld [vmem:[%s10747_s7 + $0x218] sm:$0xff] }
 0x3bf   : > { %v4330_v52 = vrot.slane %v9500_v32, 1  ;;  %v4336_v27 = vrot.slane %v9500_v32, 3  ;;  %7542 = vmatprep.subr.bf16.mxu1 %v7541_v40  ;;  %v7571_v41 = vpack.c.bf16 %v4567_v25, %v4566_v35  ;;  %v4334_v21 = vrot.slane %v9500_v32, 2 }
 0x3c1   : > { %v7941_v38 = vpack.i.bf16 %v4330_v52, %v4336_v27  ;;  %v4587_v52 = vld [vmem:[%s10747_s7 + $0x1e8] sm:$0xff] }
 0x3c2   : > { %7544 = vmatpush3.bf16.msra.mxu1 %v7543_v62  ;;  %v4586_v62 = vld [vmem:[%s10747_s7 + $0x1e0] sm:$0xff] }
 0x3c3   : > { %7942 = vrot.lane.b32.xlu0 %v7941_v38, %s8008_s29  ;;  %7546 = vmatprep.subr.bf16.mxu1 %v7545_v18  ;;  %v4242_v28 = vpop.permute.xlu1 %4241  ;;  %v4342_v18 = vrot.slane %v9500_v32, 5  ;;  %v7577_v20 = vpack.c.bf16 %v4587_v52, %v4586_v62  ;;  %v4613_v62 = vld [vmem:[%s10747_s7 + $0x2b8] sm:$0xff] }
 0x3c4   : > { %v4252_v50 = vsel %vm414_vm1, %v3370_v16, %v4242_v28  ;;  %v4638_v28 = vld [vmem:[%s10747_s7 + $0x380] sm:$0xff] }
 0x3c5   : > { %v7617_v16 = vpack.c.bf16 %v4639_v44, %v4638_v28  ;;  %v4618_v28 = vld [vmem:[%s10747_s7 + $0x2e0] sm:$0xff]  ;;  %v4619_v44 = vld [vmem:[%s10747_s7 + $0x2e8] sm:$0xff] }
 0x3c6   : > { %7548 = vmatpush3.bf16.msra.mxu1 %v7547_v6 }
 0x3c7   : > { %7550 = vmatprep.subr.bf16.mxu1 %v7549_v39 }
 0x3ca   : > { %7552 = vmatpush3.bf16.msra.mxu1 %v7551_v9  ;;  %v4246_v14 = vpop.permute.xlu0 %4245  ;;  %v7581_v9 = vpack.c.bf16 %v4589_v60, %v4588_v47  ;;  %v4599_v47 = vld [vmem:[%s10747_s7 + $0x248] sm:$0xff]  ;;  %v4616_v60 = vld [vmem:[%s10747_s7 + $0x2d0] sm:$0xff] }
 0x3cb   : > { %7586 = vmatprep.subr.bf16.mxu1 %v7585_v26  ;;  %v4253_v43 = vsel %vm840_vm6, %v4252_v50, %v4246_v14  ;;  %v4572_v26 = vld [vmem:[%s10747_s7 + $0x170] sm:$0xff] }
 0x3cc   : > { %v7583_v22 = vpack.c.bf16 %v4573_v23, %v4572_v26  ;;  %v4600_v26 = vld [vmem:[%s10747_s7 + $0x250] sm:$0xff]  ;;  %v4601_v23 = vld [vmem:[%s10747_s7 + $0x258] sm:$0xff] }
 0x3d2   : > { %v4250_v10 = vpop.permute.xlu1 %4249 }
 0x3d3   : > { %v4254_v15 = vsel %vm3712_vm12, %v4253_v43, %v4250_v10 }
 0x3d4   : > { %7234 = vmatmul.mubr.msk.f32.vlgmr.msra.gmra.mrb[78].mxu0 %vm3720_vm13, %v4254_v15 }
 0x3d5   : > { %7556 = vmatpush3.bf16.msra.mxu0 %v7555_v12 }
 0x3d6   : > { %7558 = vmatprep.subr.bf16.mxu0 %v7557_v61 }
 0x3d9   : > { %7560 = vmatpush3.bf16.msra.mxu0 %v7559_v36 }
 0x3da   : > { %7562 = vmatprep.subr.bf16.mxu0 %v7561_v45 }
 0x3dd   : > { %7564 = vmatpush3.bf16.msra.mxu0 %v7563_v3  ;;  %v4608_v3 = vld [vmem:[%s10747_s7 + $0x290] sm:$0xff] }
 0x3de   : > { %7566 = vmatprep.subr.bf16.mxu0 %v7565_v29  ;;  %v4609_v29 = vld [vmem:[%s10747_s7 + $0x298] sm:$0xff] }
 0x3df   : > { %v7589_v25 = vpack.c.bf16 %v4609_v29, %v4608_v3 }
 0x3e1   : > { %7568 = vmatpush3.bf16.msra.mxu0 %v7567_v54  ;;  %v7587_v54 = vpack.c.bf16 %v4591_v1, %v4590_v63 }
 0x3e2   : > { %v3879_v40 = vpop.f32.mrb[42].mxu1  ;;  %7570 = vmatprep.subr.bf16.mxu0 %v7569_v17 }
 0x3e3   : > { %v3880_v30 = vadd.f32 %v9473_v34, %v3879_v40  ;;  %v7140_v19 = vpop.f32.mrb[43].mxu1  ;;  %v4611_v40 = vld [vmem:[%s10747_s7 + $0x2a8] sm:$0xff] }
 0x3e4   : > { %v4612_v19 = vld [vmem:[%s10747_s7 + $0x2b0] sm:$0xff] }
 0x3e5   : > { %v9608_v27 = vmax.f32 %v3880_v30, 0.0  ;;  %7572 = vmatpush3.bf16.msra.mxu0 %v7571_v41  ;;  %v4610_v41 = vld [vmem:[%s10747_s7 + $0x2a0] sm:$0xff]  ;;  %v4595_v30 = vld [vmem:[%s10747_s7 + $0x228] sm:$0xff] }
 0x3e6   : > { %7574 = vmatprep.subr.bf16.mxu0 %v7573_v31  ;;  %v7591_v31 = vpack.c.bf16 %v4593_v33, %v4592_v55  ;;  %v7593_v59 = vpack.c.bf16 %v4611_v40, %v4610_v41  ;;  %v7595_v52 = vpack.c.bf16 %v4595_v30, %v4594_v48  ;;  %v4340_v55 = vrot.slane %v9500_v32, 4  ;;  %v4654_v33 = vld [vmem:[%s10747_s7 + $0x400] sm:$0xff]  ;;  %v4655_v41 = vld [vmem:[%s10747_s7 + $0x408] sm:$0xff] }
 0x3e7   : > { %v7946_v38 = vpack.i.bf16 %v4342_v18, %v9608_v27  ;;  %v4354_v6 = vrot.slane %v9608_v27, 2  ;;  %v4360_v39 = vrot.slane %v9608_v27, 4  ;;  %v4366_v43 = vrot.slane %v9608_v27, 6 }
 0x3e8   : > { %v7597_v18 = vpack.c.bf16 %v4613_v62, %v4612_v19  ;;  %v4672_v19 = vld [vmem:[%s10747_s7 + $0x490] sm:$0xff] }
 0x3e9   : > { %7947 = vrot.lane.b32.xlu1 %v7946_v38, %s8008_s29  ;;  %v7951_v53 = vpack.i.bf16 %v4354_v6, %v4360_v39  ;;  %7576 = vmatpush3.bf16.msra.mxu0 %v7575_v11  ;;  %v4596_v11 = vld [vmem:[%s10747_s7 + $0x230] sm:$0xff]  ;;  %v7601_v6 = vpack.c.bf16 %v4615_v42, %v4614_v7  ;;  %v4598_v39 = vld [vmem:[%s10747_s7 + $0x240] sm:$0xff]  ;;  %v4625_v7 = vld [vmem:[%s10747_s7 + $0x318] sm:$0xff]  ;;  %v7651_v42 = vpack.c.bf16 %v4655_v41, %v4654_v33 }
 0x3ea   : > { %7578 = vmatprep.subr.bf16.mxu0 %v7577_v20  ;;  %v4597_v20 = vld [vmem:[%s10747_s7 + $0x238] sm:$0xff]  ;;  %v4662_v33 = vld [vmem:[%s10747_s7 + $0x440] sm:$0xff]  ;;  %v4663_v41 = vld [vmem:[%s10747_s7 + $0x448] sm:$0xff] }
 0x3eb   : > { %7952 = vrot.lane.b32.xlu0 %v7951_v53, %s8008_s29  ;;  %v7599_v38 = vpack.c.bf16 %v4597_v20, %v4596_v11  ;;  %v4617_v53 = vld [vmem:[%s10747_s7 + $0x2d8] sm:$0xff]  ;;  %v4624_v20 = vld [vmem:[%s10747_s7 + $0x310] sm:$0xff] }
 0x3ed   : > { %7580 = vmatpush3.bf16.msra.mxu0 %v7579_v24  ;;  %v7603_v24 = vpack.c.bf16 %v4599_v47, %v4598_v39 }
 0x3ee   : > { %7582 = vmatprep.subr.bf16.mxu0 %v7581_v9  ;;  %v7605_v9 = vpack.c.bf16 %v4617_v53, %v4616_v60  ;;  %v4656_v53 = vld [vmem:[%s10747_s7 + $0x410] sm:$0xff] }
 0x3f1   : > { %7584 = vmatpush3.bf16.msra.mxu0 %v7583_v22  ;;  %v7607_v22 = vpack.c.bf16 %v4601_v23, %v4600_v26  ;;  %v4674_v26 = vld [vmem:[%s10747_s7 + $0x4a0] sm:$0xff]  ;;  %v4675_v23 = vld [vmem:[%s10747_s7 + $0x4a8] sm:$0xff] }
 0x3f2   : > { %7618 = vmatprep.subr.bf16.mxu0 %v7617_v16  ;;  %v7609_v16 = vpack.c.bf16 %v4619_v44, %v4618_v28  ;;  %v4626_v44 = vld [vmem:[%s10747_s7 + $0x320] sm:$0xff] }
 0x417   : > { %v3968_v14 = vpop.f32.mrb[74].mxu0 }
 0x418   : > { %v3969_v57 = vadd.f32 %v9473_v34, %v3968_v14  ;;  %v7159_v8 = vpop.f32.mrb[75].mxu0  ;;  %v4602_v14 = vld [vmem:[%s10747_s7 + $0x260] sm:$0xff] }
 0x419   : > { %v4620_v8 = vld [vmem:[%s10747_s7 + $0x2f0] sm:$0xff] }
 0x41a   : > { %v9641_v50 = vmax.f32 %v3969_v57, 0.0  ;;  %v4603_v57 = vld [vmem:[%s10747_s7 + $0x268] sm:$0xff] }
 0x41c   : > { %v4385_v12 = vrot.slane %v9641_v50, 3  ;;  %v4371_v10 = vrot.slane %v9641_v50, 1 }
 0x41e   : > { %4386 = vrot.lane.b32.xlu0 %v4385_v12, %s8008_s29  ;;  %v7956_v61 = vpack.i.bf16 %v4366_v43, %v4371_v10  ;;  %v4621_v12 = vld [vmem:[%s10747_s7 + $0x2f8] sm:$0xff]  ;;  %v7611_v43 = vpack.c.bf16 %v4603_v57, %v4602_v14  ;;  %v4644_v14 = vld [vmem:[%s10747_s7 + $0x3b0] sm:$0xff] }
 0x41f   : > { %v4645_v57 = vld [vmem:[%s10747_s7 + $0x3b8] sm:$0xff] }
 0x420   : > { %7957 = vrot.lane.b32.xlu1 %v7956_v61, %s8008_s29  ;;  %v7613_v61 = vpack.c.bf16 %v4621_v12, %v4620_v8  ;;  %v7657_v8 = vpack.c.bf16 %v4675_v23, %v4674_v26  ;;  %v4658_v12 = vld [vmem:[%s10747_s7 + $0x420] sm:$0xff]  ;;  %v4667_v23 = vld [vmem:[%s10747_s7 + $0x468] sm:$0xff] }
 0x421   : > { %v4666_v26 = vld [vmem:[%s10747_s7 + $0x460] sm:$0xff] }
 0x42f   : > { %v4057_v13 = vpop.f32.mrb[44].mxu1 }
 0x430   : > { %v4058_v58 = vadd.f32 %v9473_v34, %v4057_v13  ;;  %v7178_v15 = vpop.f32.mrb[45].mxu1  ;;  %v4604_v13 = vld [vmem:[%s10747_s7 + $0x270] sm:$0xff] }
 0x432   : > { %v9649_v49 = vmax.f32 %v4058_v58, 0.0  ;;  %v4605_v58 = vld [vmem:[%s10747_s7 + $0x278] sm:$0xff] }
 0x433   : > { %v7615_v1 = vpack.c.bf16 %v4605_v58, %v4604_v13  ;;  %v4677_v13 = vld [vmem:[%s10747_s7 + $0x4b8] sm:$0xff]  ;;  %v7629_v58 = vpack.c.bf16 %v4645_v57, %v4644_v14  ;;  %v4636_v14 = vld [vmem:[%s10747_s7 + $0x370] sm:$0xff] }
 0x434   : > { %v4403_v5 = vrot.slane %v9649_v49, 2  ;;  %v4409_v36 = vrot.slane %v9649_v49, 4  ;;  %v4392_v45 = vrot.slane %v9649_v49, 6  ;;  %v4637_v57 = vld [vmem:[%s10747_s7 + $0x378] sm:$0xff] }
 0x435   : > { %v7943_v51 = vpop.permute.xlu0 %7942 }
 0x436   : > { %v7945_v56 = vunpack.i.h.bf16 %v7943_v51  ;;  %v7944_v0 = vunpack.i.l.bf16 %v7943_v51  ;;  %v7966_v46 = vpack.i.bf16 %v4403_v5, %v4409_v36  ;;  %v7961_v37 = vpack.i.bf16 %v4392_v45, %v9649_v49  ;;  %v4670_v36 = vld [vmem:[%s10747_s7 + $0x480] sm:$0xff]  ;;  %v4671_v45 = vld [vmem:[%s10747_s7 + $0x488] sm:$0xff] }
 0x437   : > { %v7649_v51 = vpack.c.bf16 %v4671_v45, %v4670_v36  ;;  %v4646_v45 = vld [vmem:[%s10747_s7 + $0x3c0] sm:$0xff] }
 0x438   : > { %7967 = vrot.lane.b32.xlu0 %v7966_v46, %s8008_s29  ;;  %7962 = vrot.lane.b32.xlu1 %v7961_v37, %s8008_s29  ;;  %v4376_v17 = vsel %vm3720_vm13, %v4334_v21, %v7944_v0  ;;  %v4375_v35 = vsel %vm3720_vm13, %v9500_v32, %v7945_v56  ;;  %v4622_v56 = vld [vmem:[%s10747_s7 + $0x300] sm:$0xff]  ;;  %v4623_v0 = vld [vmem:[%s10747_s7 + $0x308] sm:$0xff] }
 0x439   : > { %4985 = vmatprep.mubr.f32.mxu1 %v4376_v17  ;;  %v4640_v46 = vld [vmem:[%s10747_s7 + $0x390] sm:$0xff]  ;;  %v4641_v37 = vld [vmem:[%s10747_s7 + $0x398] sm:$0xff]  ;;  %v7619_v48 = vpack.c.bf16 %v4623_v0, %v4622_v56  ;;  %v4678_v56 = vld [vmem:[%s10747_s7 + $0x4c0] sm:$0xff] }
 0x43a   : > { %4986 = vmatmul.mubr.f32.vlgmr.msra.gmra.mrb[48].mxu1 %v4375_v35  ;;  %v7621_v30 = vpack.c.bf16 %v4641_v37, %v4640_v46  ;;  %v4679_v0 = vld [vmem:[%s10747_s7 + $0x4c8] sm:$0xff]  ;;  %v4630_v37 = vld [vmem:[%s10747_s7 + $0x340] sm:$0xff] }
 0x43b   : > { %7588 = vmatpush3.bf16.msra.mxu1 %v7587_v54 }
 0x43c   : > { %7590 = vmatprep.subr.bf16.mxu1 %v7589_v25  ;;  %v4346_v25 = vrot.slane %v9500_v32, 6  ;;  %v4673_v32 = vld [vmem:[%s10747_s7 + $0x498] sm:$0xff] }
 0x43d   : > { %v7653_v60 = vpack.c.bf16 %v4673_v32, %v4672_v19  ;;  %v4633_v19 = vld [vmem:[%s10747_s7 + $0x358] sm:$0xff]  ;;  %v7667_v32 = vpack.c.bf16 %v4663_v41, %v4662_v33 }
 0x43f   : > { %7592 = vmatpush3.bf16.msra.mxu1 %v7591_v31  ;;  %v4358_v31 = vrot.slane %v9608_v27, 3 }
 0x440   : > { %7594 = vmatprep.subr.bf16.mxu1 %v7593_v59  ;;  %v4352_v59 = vrot.slane %v9608_v27, 1 }
 0x443   : > { %7596 = vmatpush3.bf16.msra.mxu1 %v7595_v52 }
 0x444   : > { %7598 = vmatprep.subr.bf16.mxu1 %v7597_v18 }
 0x447   : > { %7600 = vmatpush3.bf16.msra.mxu1 %v7599_v38  ;;  %v4642_v38 = vld [vmem:[%s10747_s7 + $0x3a0] sm:$0xff] }
 0x448   : > { %7602 = vmatprep.subr.bf16.mxu1 %v7601_v6  ;;  %v4643_v6 = vld [vmem:[%s10747_s7 + $0x3a8] sm:$0xff] }
 0x449   : > { %v7625_v28 = vpack.c.bf16 %v4643_v6, %v4642_v38  ;;  %v4683_v38 = vld [vmem:[%s10747_s7 + $0x4e8] sm:$0xff] }
 0x44b   : > { %7604 = vmatpush3.bf16.msra.mxu1 %v7603_v24  ;;  %v4657_v24 = vld [vmem:[%s10747_s7 + $0x418] sm:$0xff] }
 0x44c   : > { %7606 = vmatprep.subr.bf16.mxu1 %v7605_v9  ;;  %v7623_v9 = vpack.c.bf16 %v4625_v7, %v4624_v20  ;;  %v4665_v20 = vld [vmem:[%s10747_s7 + $0x458] sm:$0xff] }
 0x44f   : > { %7608 = vmatpush3.bf16.msra.mxu1 %v7607_v22  ;;  %v4627_v22 = vld [vmem:[%s10747_s7 + $0x328] sm:$0xff] }
 0x450   : > { %v4146_v10 = vpop.f32.mrb[76].mxu0  ;;  %7610 = vmatprep.subr.bf16.mxu1 %v7609_v16  ;;  %v7655_v16 = vpack.c.bf16 %v4657_v24, %v4656_v53  ;;  %v4652_v53 = vld [vmem:[%s10747_s7 + $0x3f0] sm:$0xff]  ;;  %v4653_v24 = vld [vmem:[%s10747_s7 + $0x3f8] sm:$0xff] }
 0x451   : > { %v4147_v15 = vadd.f32 %v9473_v34, %v4146_v10  ;;  %v7197_v5 = vpop.f32.mrb[77].mxu0  ;;  %v7627_v10 = vpack.c.bf16 %v4627_v22, %v4626_v44  ;;  %v4684_v44 = vld [vmem:[%s10747_s7 + $0x4f0] sm:$0xff]  ;;  %v4685_v22 = vld [vmem:[%s10747_s7 + $0x4f8] sm:$0xff] }
 0x452   : > { %v4629_v5 = vld [vmem:[%s10747_s7 + $0x338] sm:$0xff] }
 0x453   : > { %v9758_v63 = vmax.f32 %v4147_v15, 0.0  ;;  %7612 = vmatpush3.bf16.msra.mxu1 %v7611_v43  ;;  %v4659_v43 = vld [vmem:[%s10747_s7 + $0x428] sm:$0xff]  ;;  %v4628_v15 = vld [vmem:[%s10747_s7 + $0x330] sm:$0xff] }
 0x454   : > { %7614 = vmatprep.subr.bf16.mxu1 %v7613_v61  ;;  %v4676_v61 = vld [vmem:[%s10747_s7 + $0x4b0] sm:$0xff]  ;;  %v7659_v36 = vpack.c.bf16 %v4659_v43, %v4658_v12  ;;  %v4702_v12 = vld [vmem:[%s10747_s7 + $0x580] sm:$0xff]  ;;  %v4703_v43 = vld [vmem:[%s10747_s7 + $0x588] sm:$0xff] }
 0x455   : > { %v4416_v21 = vrot.slane %v9758_v63, 7  ;;  %v4420_v3 = vrot.slane %v9758_v63, 1 }
 0x457   : > { %v7971_v29 = vpack.i.bf16 %v4416_v21, %v4420_v3  ;;  %7616 = vmatpush3.bf16.msra.mxu1 %v7615_v1  ;;  %v4647_v1 = vld [vmem:[%s10747_s7 + $0x3c8] sm:$0xff]  ;;  %v4660_v21 = vld [vmem:[%s10747_s7 + $0x430] sm:$0xff]  ;;  %v4661_v3 = vld [vmem:[%s10747_s7 + $0x438] sm:$0xff] }
 0x458   : > { %7650 = vmatprep.subr.bf16.mxu1 %v7649_v51  ;;  %v7661_v51 = vpack.c.bf16 %v4677_v13, %v4676_v61  ;;  %v7633_v46 = vpack.c.bf16 %v4647_v1, %v4646_v45  ;;  %v4668_v61 = vld [vmem:[%s10747_s7 + $0x470] sm:$0xff]  ;;  %v4669_v13 = vld [vmem:[%s10747_s7 + $0x478] sm:$0xff] }
 0x459   : > { %7972 = vrot.lane.b32.xlu1 %v7971_v29, %s8008_s29  ;;  %v7631_v29 = vpack.c.bf16 %v4629_v5, %v4628_v15  ;;  %v4734_v15 = vld [vmem:[%s10747_s7 + $0x680] sm:$0xff]  ;;  %v4735_v5 = vld [vmem:[%s10747_s7 + $0x688] sm:$0xff]  ;;  %v7679_v45 = vpack.c.bf16 %v4669_v13, %v4668_v61 }
 0x45a   : > { %v7713_v1 = vpack.c.bf16 %v4735_v5, %v4734_v15  ;;  %v4692_v15 = vld [vmem:[%s10747_s7 + $0x530] sm:$0xff]  ;;  %v4693_v5 = vld [vmem:[%s10747_s7 + $0x538] sm:$0xff] }
 0x45b   : > { %v7948_v54 = vpop.permute.xlu1 %7947 }
 0x45c   : > { %v7950_v17 = vunpack.i.h.bf16 %v7948_v54  ;;  %v7949_v35 = vunpack.i.l.bf16 %v7948_v54  ;;  %v4631_v54 = vld [vmem:[%s10747_s7 + $0x348] sm:$0xff] }
 0x45d   : > { %v7953_v40 = vpop.permute.xlu0 %7952 }
 0x45e   : > { %v7955_v62 = vunpack.i.h.bf16 %v7953_v40  ;;  %v7954_v52 = vunpack.i.l.bf16 %v7953_v40  ;;  %v4378_v18 = vsel %vm3720_vm13, %v4346_v25, %v7949_v35  ;;  %v4377_v11 = vsel %vm3720_vm13, %v4340_v55, %v7950_v17  ;;  %v4648_v35 = vld [vmem:[%s10747_s7 + $0x3d0] sm:$0xff]  ;;  %v4649_v25 = vld [vmem:[%s10747_s7 + $0x3d8] sm:$0xff] }
 0x45f   : > { %5055 = vmatprep.mubr.f32.mxu0 %v4378_v18  ;;  %v7663_v17 = vpack.c.bf16 %v4661_v3, %v4660_v21  ;;  %v7665_v55 = vpack.c.bf16 %v4679_v0, %v4678_v56  ;;  %v7635_v40 = vpack.c.bf16 %v4631_v54, %v4630_v37  ;;  %v4383_v37 = vrot.slane %v9641_v50, 2 }
 0x460   : > { %5056 = vmatmul.mubr.f32.vlgmr.msra.gmra.mrb[80].mxu0 %v4377_v11  ;;  %v4380_v39 = vsel %vm3720_vm13, %v4358_v31, %v7954_v52  ;;  %v4379_v47 = vsel %vm3720_vm13, %v4352_v59, %v7955_v62  ;;  %v4680_v31 = vld [vmem:[%s10747_s7 + $0x4d0] sm:$0xff]  ;;  %v4681_v59 = vld [vmem:[%s10747_s7 + $0x4d8] sm:$0xff]  ;;  %v4650_v62 = vld [vmem:[%s10747_s7 + $0x3e0] sm:$0xff] }
 0x461   : > { %5125 = vmatprep.mubr.f32.mxu1 %v4380_v39  ;;  %7620 = vmatpush3.bf16.msra.mxu0 %v7619_v48  ;;  %v7637_v48 = vpack.c.bf16 %v4649_v25, %v4648_v35  ;;  %v4651_v52 = vld [vmem:[%s10747_s7 + $0x3e8] sm:$0xff]  ;;  %v7669_v18 = vpack.c.bf16 %v4681_v59, %v4680_v31  ;;  %v4664_v11 = vld [vmem:[%s10747_s7 + $0x450] sm:$0xff]  ;;  %v4634_v39 = vld [vmem:[%s10747_s7 + $0x360] sm:$0xff] }
 0x462   : > { %5126 = vmatmul.mubr.f32.vlgmr.msra.gmra.mrb[50].mxu1 %v4379_v47  ;;  %7622 = vmatprep.subr.bf16.mxu0 %v7621_v30  ;;  %v4632_v30 = vld [vmem:[%s10747_s7 + $0x350] sm:$0xff]  ;;  %v7641_v6 = vpack.c.bf16 %v4651_v52, %v4650_v62  ;;  %v4635_v47 = vld [vmem:[%s10747_s7 + $0x368] sm:$0xff]  ;;  %v4686_v35 = vld [vmem:[%s10747_s7 + $0x500] sm:$0xff] }
 0x463   : > { %7652 = vmatpush3.bf16.msra.mxu1 %v7651_v42  ;;  %v7639_v7 = vpack.c.bf16 %v4633_v19, %v4632_v30  ;;  %v4682_v42 = vld [vmem:[%s10747_s7 + $0x4e0] sm:$0xff]  ;;  %v4687_v25 = vld [vmem:[%s10747_s7 + $0x508] sm:$0xff]  ;;  %v4704_v31 = vld [vmem:[%s10747_s7 + $0x590] sm:$0xff]  ;;  %v4364_v19 = vrot.slane %v9608_v27, 5 }
 0x464   : > { %7654 = vmatprep.subr.bf16.mxu1 %v7653_v60  ;;  %v7671_v60 = vpack.c.bf16 %v4665_v20, %v4664_v11  ;;  %v4705_v59 = vld [vmem:[%s10747_s7 + $0x598] sm:$0xff]  ;;  %v7683_v52 = vpack.c.bf16 %v4687_v25, %v4686_v35  ;;  %v4688_v27 = vld [vmem:[%s10747_s7 + $0x510] sm:$0xff]  ;;  %v4726_v35 = vld [vmem:[%s10747_s7 + $0x640] sm:$0xff] }
 0x465   : > { %7624 = vmatpush3.bf16.msra.mxu0 %v7623_v9  ;;  %v7673_v9 = vpack.c.bf16 %v4683_v38, %v4682_v42  ;;  %v4737_v62 = vld [vmem:[%s10747_s7 + $0x698] sm:$0xff]  ;;  %v4720_v38 = vld [vmem:[%s10747_s7 + $0x610] sm:$0xff] }
 0x466   : > { %7626 = vmatprep.subr.bf16.mxu0 %v7625_v28  ;;  %v7643_v28 = vpack.c.bf16 %v4635_v47, %v4634_v39  ;;  %v4689_v42 = vld [vmem:[%s10747_s7 + $0x518] sm:$0xff] }
 0x467   : > { %7656 = vmatpush3.bf16.msra.mxu1 %v7655_v16  ;;  %v7645_v16 = vpack.c.bf16 %v4653_v24, %v4652_v53  ;;  %v4721_v47 = vld [vmem:[%s10747_s7 + $0x618] sm:$0xff]  ;;  %v4707_v53 = vld [vmem:[%s10747_s7 + $0x5a8] sm:$0xff]  ;;  %v4738_v24 = vld [vmem:[%s10747_s7 + $0x6a0] sm:$0xff] }
 0x468   : > { %7658 = vmatprep.subr.bf16.mxu1 %v7657_v8  ;;  %v7675_v8 = vpack.c.bf16 %v4667_v23, %v4666_v26  ;;  %v7687_v26 = vpack.c.bf16 %v4689_v42, %v4688_v27  ;;  %v7719_v23 = vpack.c.bf16 %v4721_v47, %v4720_v38  ;;  %v4746_v27 = vld [vmem:[%s10747_s7 + $0x6e0] sm:$0xff]  ;;  %v4747_v42 = vld [vmem:[%s10747_s7 + $0x6e8] sm:$0xff] }
 0x469   : > { %7628 = vmatpush3.bf16.msra.mxu0 %v7627_v10  ;;  %v7677_v10 = vpack.c.bf16 %v4685_v22, %v4684_v44  ;;  %v4690_v44 = vld [vmem:[%s10747_s7 + $0x520] sm:$0xff]  ;;  %v4691_v22 = vld [vmem:[%s10747_s7 + $0x528] sm:$0xff] }
 0x46a   : > { %7630 = vmatprep.subr.bf16.mxu0 %v7629_v58  ;;  %v7647_v58 = vpack.c.bf16 %v4637_v57, %v4636_v14  ;;  %v4723_v57 = vld [vmem:[%s10747_s7 + $0x628] sm:$0xff]  ;;  %v7691_v61 = vpack.c.bf16 %v4691_v22, %v4690_v44  ;;  %v4698_v47 = vld [vmem:[%s10747_s7 + $0x560] sm:$0xff]  ;;  %v4716_v22 = vld [vmem:[%s10747_s7 + $0x5f0] sm:$0xff] }
 0x46b   : > { %7660 = vmatpush3.bf16.msra.mxu1 %v7659_v36  ;;  %v7681_v36 = vpack.c.bf16 %v4703_v43, %v4702_v12  ;;  %v4709_v12 = vld [vmem:[%s10747_s7 + $0x5b8] sm:$0xff]  ;;  %v4740_v43 = vld [vmem:[%s10747_s7 + $0x6b0] sm:$0xff]  ;;  %v4731_v44 = vld [vmem:[%s10747_s7 + $0x668] sm:$0xff] }
 0x46c   : > { %7662 = vmatprep.subr.bf16.mxu1 %v7661_v51 }
 0x46d   : > { %7632 = vmatpush3.bf16.msra.mxu0 %v7631_v29 }
 0x46e   : > { %7634 = vmatprep.subr.bf16.mxu0 %v7633_v46 }
 0x46f   : > { %7664 = vmatpush3.bf16.msra.mxu1 %v7663_v17 }
 0x470   : > { %7666 = vmatprep.subr.bf16.mxu1 %v7665_v55  ;;  %v4718_v55 = vld [vmem:[%s10747_s7 + $0x600] sm:$0xff] }
 0x471   : > { %7636 = vmatpush3.bf16.msra.mxu0 %v7635_v40  ;;  %v4719_v40 = vld [vmem:[%s10747_s7 + $0x608] sm:$0xff] }
 0x472   : > { %7638 = vmatprep.subr.bf16.mxu0 %v7637_v48  ;;  %v7715_v20 = vpack.c.bf16 %v4719_v40, %v4718_v55  ;;  %v4727_v55 = vld [vmem:[%s10747_s7 + $0x648] sm:$0xff]  ;;  %v4744_v40 = vld [vmem:[%s10747_s7 + $0x6d0] sm:$0xff] }
 0x473   : > { %7668 = vmatpush3.bf16.msra.mxu1 %v7667_v32  ;;  %v4736_v32 = vld [vmem:[%s10747_s7 + $0x690] sm:$0xff] }
 0x474   : > { %7670 = vmatprep.subr.bf16.mxu1 %v7669_v18  ;;  %v7717_v39 = vpack.c.bf16 %v4737_v62, %v4736_v32  ;;  %v4697_v32 = vld [vmem:[%s10747_s7 + $0x558] sm:$0xff]  ;;  %v4728_v62 = vld [vmem:[%s10747_s7 + $0x650] sm:$0xff] }
 0x475   : > { %7640 = vmatpush3.bf16.msra.mxu0 %v7639_v7  ;;  %v7685_v7 = vpack.c.bf16 %v4705_v59, %v4704_v31  ;;  %v4745_v31 = vld [vmem:[%s10747_s7 + $0x6d8] sm:$0xff] }
 0x476   : > { %7642 = vmatprep.subr.bf16.mxu0 %v7641_v6 }
 0x477   : > { %7672 = vmatpush3.bf16.msra.mxu1 %v7671_v60  ;;  %v4706_v60 = vld [vmem:[%s10747_s7 + $0x5a0] sm:$0xff] }
 0x478   : > { %7674 = vmatprep.subr.bf16.mxu1 %v7673_v9  ;;  %v4739_v9 = vld [vmem:[%s10747_s7 + $0x6a8] sm:$0xff] }
 0x479   : > { %7644 = vmatpush3.bf16.msra.mxu0 %v7643_v28  ;;  %v7689_v28 = vpack.c.bf16 %v4707_v53, %v4706_v60  ;;  %v7721_v14 = vpack.c.bf16 %v4739_v9, %v4738_v24  ;;  %v4699_v60 = vld [vmem:[%s10747_s7 + $0x568] sm:$0xff]  ;;  %v4730_v9 = vld [vmem:[%s10747_s7 + $0x660] sm:$0xff] }
 0x47a   : > { %7646 = vmatprep.subr.bf16.mxu0 %v7645_v16  ;;  %v4722_v16 = vld [vmem:[%s10747_s7 + $0x620] sm:$0xff] }
 0x47b   : > { %7676 = vmatpush3.bf16.msra.mxu1 %v7675_v8  ;;  %v4708_v8 = vld [vmem:[%s10747_s7 + $0x5b0] sm:$0xff]  ;;  %v7723_v13 = vpack.c.bf16 %v4723_v57, %v4722_v16  ;;  %v4717_v16 = vld [vmem:[%s10747_s7 + $0x5f8] sm:$0xff] }
 0x47c   : > { %7678 = vmatprep.subr.bf16.mxu1 %v7677_v10  ;;  %v4741_v10 = vld [vmem:[%s10747_s7 + $0x6b8] sm:$0xff] }
 0x47d   : > { %7648 = vmatpush3.bf16.msra.mxu0 %v7647_v58  ;;  %v7693_v58 = vpack.c.bf16 %v4709_v12, %v4708_v8  ;;  %v7707_v8 = vpack.c.bf16 %v4699_v60, %v4698_v47  ;;  %v4396_v12 = vrot.slane %v9649_v49, 7  ;;  %v4752_v60 = vld [vmem:[%s10747_s7 + $0x710] sm:$0xff] }
 0x47e   : > { %7682 = vmatprep.subr.bf16.mxu0 %v7681_v36  ;;  %v4724_v36 = vld [vmem:[%s10747_s7 + $0x630] sm:$0xff] }
 0x47f   : > { %7680 = vmatpush3.bf16.msra.mxu1 %v7679_v45  ;;  %v7725_v45 = vpack.c.bf16 %v4741_v10, %v4740_v43  ;;  %v4748_v43 = vld [vmem:[%s10747_s7 + $0x6f0] sm:$0xff]  ;;  %v4749_v10 = vld [vmem:[%s10747_s7 + $0x6f8] sm:$0xff] }
 0x480   : > { %v4235_v51 = vpop.f32.mrb[46].mxu1  ;;  %7714 = vmatprep.subr.bf16.mxu1 %v7713_v1  ;;  %v4725_v1 = vld [vmem:[%s10747_s7 + $0x638] sm:$0xff] }
 0x481   : > { %v4236_v21 = vadd.f32 %v9473_v34, %v4235_v51  ;;  %v7216_v3 = vpop.f32.mrb[47].mxu1  ;;  %v4710_v51 = vld [vmem:[%s10747_s7 + $0x5c0] sm:$0xff] }
 0x482   : > { %v4742_v3 = vld [vmem:[%s10747_s7 + $0x6c0] sm:$0xff] }
 0x483   : > { %v9964_v29 = vmax.f32 %v4236_v21, 0.0  ;;  %v4711_v21 = vld [vmem:[%s10747_s7 + $0x5c8] sm:$0xff] }
 0x485   : > { %v4434_v56 = vrot.slane %v9964_v29, 4  ;;  %v4440_v0 = vrot.slane %v9964_v29, 6 }
 0x487   : > { %4435 = vrot.lane.b32.xlu0 %v4434_v56, %s8008_s29  ;;  %v7976_v46 = vpack.i.bf16 %v4440_v0, %v9964_v29  ;;  %v4743_v56 = vld [vmem:[%s10747_s7 + $0x6c8] sm:$0xff]  ;;  %v7695_v0 = vpack.c.bf16 %v4693_v5, %v4692_v15 }
 0x488   : > { %v7729_v25 = vpack.c.bf16 %v4743_v56, %v4742_v3  ;;  %v4732_v3 = vld [vmem:[%s10747_s7 + $0x670] sm:$0xff] }
 0x489   : > { %7977 = vrot.lane.b32.xlu1 %v7976_v46, %s8008_s29  ;;  %v7727_v46 = vpack.c.bf16 %v4725_v1, %v4724_v36  ;;  %v7739_v36 = vpack.c.bf16 %v4731_v44, %v4730_v9  ;;  %v7709_v1 = vpack.c.bf16 %v4717_v16, %v4716_v22  ;;  %v4784_v44 = vld [vmem:[%s10747_s7 + $0x810] sm:$0xff]  ;;  %v4785_v22 = vld [vmem:[%s10747_s7 + $0x818] sm:$0xff]  ;;  %v4802_v16 = vld [vmem:[%s10747_s7 + $0x8a0] sm:$0xff] }
 0x490   : > { %v4387_v54 = vpop.permute.xlu0 %4386 }
 0x491   : > { %v4424_v17 = vsel %vm3720_vm13, %v4383_v37, %v4387_v54  ;;  %v7697_v37 = vpack.c.bf16 %v4711_v21, %v4710_v51  ;;  %v4694_v54 = vld [vmem:[%s10747_s7 + $0x540] sm:$0xff]  ;;  %v4700_v51 = vld [vmem:[%s10747_s7 + $0x570] sm:$0xff]  ;;  %v4701_v21 = vld [vmem:[%s10747_s7 + $0x578] sm:$0xff] }
 0x492   : > { %v4488_v33 = vrot.slane %v4424_v17, 2  ;;  %v7958_v41 = vpop.permute.xlu1 %7957  ;;  %v4695_v17 = vld [vmem:[%s10747_s7 + $0x548] sm:$0xff] }
 0x493   : > { %v7960_v48 = vunpack.i.h.bf16 %v7958_v41  ;;  %v7959_v30 = vunpack.i.l.bf16 %v7958_v41  ;;  %v4713_v41 = vld [vmem:[%s10747_s7 + $0x5d8] sm:$0xff]  ;;  %v7699_v59 = vpack.c.bf16 %v4695_v17, %v4694_v54  ;;  %v4766_v17 = vld [vmem:[%s10747_s7 + $0x780] sm:$0xff] }
 0x494   : > { %5265 = vmatprep.mubr.f32.mxu1 %v4488_v33  ;;  %v4712_v33 = vld [vmem:[%s10747_s7 + $0x5d0] sm:$0xff]  ;;  %v4733_v54 = vld [vmem:[%s10747_s7 + $0x678] sm:$0xff] }
 0x495   : > { %v4382_v18 = vsel %vm3720_vm13, %v9641_v50, %v7959_v30  ;;  %v4381_v11 = vsel %vm3720_vm13, %v4364_v19, %v7960_v48  ;;  %v7731_v48 = vpack.c.bf16 %v4727_v55, %v4726_v35  ;;  %v7701_v30 = vpack.c.bf16 %v4713_v41, %v4712_v33  ;;  %v4696_v19 = vld [vmem:[%s10747_s7 + $0x550] sm:$0xff]  ;;  %v4767_v35 = vld [vmem:[%s10747_s7 + $0x788] sm:$0xff] }
 0x496   : > { %v4487_v6 = vrot.slane %v4382_v18, 2  ;;  %5195 = vmatprep.mubr.f32.mxu0 %v4382_v18  ;;  %v4729_v18 = vld [vmem:[%s10747_s7 + $0x658] sm:$0xff] }
 0x497   : > { %5196 = vmatmul.mubr.f32.vlgmr.msra.gmra.mrb[82].mxu0 %v4381_v11  ;;  %v4714_v11 = vld [vmem:[%s10747_s7 + $0x5e0] sm:$0xff]  ;;  %v7735_v53 = vpack.c.bf16 %v4729_v18, %v4728_v62  ;;  %v7745_v62 = vpack.c.bf16 %v4767_v35, %v4766_v17  ;;  %v4769_v18 = vld [vmem:[%s10747_s7 + $0x798] sm:$0xff] }
 0x498   : > { %7684 = vmatpush3.bf16.msra.mxu0 %v7683_v52  ;;  %5266 = vmatmul.mubr.f32.vlgmr.msra.gmra.mrb[52].mxu1 %v4487_v6  ;;  %v7733_v52 = vpack.c.bf16 %v4745_v31, %v4744_v40  ;;  %v4798_v40 = vld [vmem:[%s10747_s7 + $0x880] sm:$0xff]  ;;  %v4799_v31 = vld [vmem:[%s10747_s7 + $0x888] sm:$0xff]  ;;  %v4789_v17 = vld [vmem:[%s10747_s7 + $0x838] sm:$0xff] }
 0x499   : > { %7716 = vmatpush3.bf16.msra.mxu1 %v7715_v20  ;;  %7686 = vmatprep.subr.bf16.mxu0 %v7685_v7  ;;  %v4715_v20 = vld [vmem:[%s10747_s7 + $0x5e8] sm:$0xff]  ;;  %v4806_v35 = vld [vmem:[%s10747_s7 + $0x8c0] sm:$0xff] }
 0x49a   : > { %7718 = vmatprep.subr.bf16.mxu1 %v7717_v39  ;;  %v7703_v39 = vpack.c.bf16 %v4697_v32, %v4696_v19  ;;  %v7705_v24 = vpack.c.bf16 %v4715_v20, %v4714_v11  ;;  %v4401_v19 = vrot.slane %v9649_v49, 1  ;;  %v7743_v32 = vpack.c.bf16 %v4733_v54, %v4732_v3  ;;  %v4782_v20 = vld [vmem:[%s10747_s7 + $0x800] sm:$0xff]  ;;  %v4757_v3 = vld [vmem:[%s10747_s7 + $0x738] sm:$0xff]  ;;  %v4788_v54 = vld [vmem:[%s10747_s7 + $0x830] sm:$0xff] }
 0x49c   : > { %7688 = vmatpush3.bf16.msra.mxu0 %v7687_v26 }
 0x49d   : > { %7720 = vmatpush3.bf16.msra.mxu1 %v7719_v23  ;;  %7690 = vmatprep.subr.bf16.mxu0 %v7689_v28  ;;  %v7737_v28 = vpack.c.bf16 %v4747_v42, %v4746_v27  ;;  %v4800_v42 = vld [vmem:[%s10747_s7 + $0x890] sm:$0xff] }
 0x49e   : > { %7722 = vmatprep.subr.bf16.mxu1 %v7721_v14 }
 0x4a0   : > { %7692 = vmatpush3.bf16.msra.mxu0 %v7691_v61  ;;  %v4407_v61 = vrot.slane %v9649_v49, 3  ;;  %v7777_v49 = vpack.c.bf16 %v4799_v31, %v4798_v40  ;;  %v4759_v40 = vld [vmem:[%s10747_s7 + $0x748] sm:$0xff]  ;;  %v4776_v31 = vld [vmem:[%s10747_s7 + $0x7d0] sm:$0xff] }
 0x4a1   : > { %7724 = vmatpush3.bf16.msra.mxu1 %v7723_v13  ;;  %7694 = vmatprep.subr.bf16.mxu0 %v7693_v58 }
 0x4a2   : > { %7726 = vmatprep.subr.bf16.mxu1 %v7725_v45  ;;  %v4451_v45 = vrot.slane %v9964_v29, 2 }
 0x4a4   : > { %7696 = vmatpush3.bf16.msra.mxu0 %v7695_v0 }
 0x4a5   : > { %7728 = vmatpush3.bf16.msra.mxu1 %v7727_v46  ;;  %7698 = vmatprep.subr.bf16.mxu0 %v7697_v37  ;;  %v7741_v37 = vpack.c.bf16 %v4749_v10, %v4748_v43  ;;  %v4755_v43 = vld [vmem:[%s10747_s7 + $0x728] sm:$0xff]  ;;  %v4772_v10 = vld [vmem:[%s10747_s7 + $0x7b0] sm:$0xff] }
 0x4a6   : > { %7730 = vmatprep.subr.bf16.mxu1 %v7729_v25 }
 0x4a7   : > { %v4324_v7 = vpop.f32.mrb[78].mxu0 }
 0x4a8   : > { %7700 = vmatpush3.bf16.msra.mxu0 %v7699_v59  ;;  %v4325_v38 = vadd.f32 %v9473_v34, %v4324_v7  ;;  %v7235_v6 = vpop.f32.mrb[79].mxu0  ;;  %v4389_v59 = vrot.slane %v9641_v50, 4  ;;  %v4768_v50 = vld [vmem:[%s10747_s7 + $0x790] sm:$0xff]  ;;  %v4783_v7 = vld [vmem:[%s10747_s7 + $0x808] sm:$0xff] }
 0x4a9   : > { %7732 = vmatpush3.bf16.msra.mxu1 %v7731_v48  ;;  %7702 = vmatprep.subr.bf16.mxu0 %v7701_v30  ;;  %v7711_v48 = vpack.c.bf16 %v4701_v21, %v4700_v51  ;;  %v4750_v30 = vld [vmem:[%s10747_s7 + $0x700] sm:$0xff]  ;;  %v7749_v47 = vpack.c.bf16 %v4769_v18, %v4768_v50  ;;  %v7779_v9 = vpack.c.bf16 %v4783_v7, %v4782_v20  ;;  %v4756_v21 = vld [vmem:[%s10747_s7 + $0x730] sm:$0xff] }
 0x4aa   : > { %v10131_v26 = vmax.f32 %v4325_v38, 0.0  ;;  %v7968_v34 = vpop.permute.xlu0 %7967  ;;  %v7963_v23 = vpop.permute.xlu1 %7962  ;;  %7734 = vmatprep.subr.bf16.mxu1 %v7733_v52  ;;  %v4751_v52 = vld [vmem:[%s10747_s7 + $0x708] sm:$0xff]  ;;  %v4801_v38 = vld [vmem:[%s10747_s7 + $0x898] sm:$0xff]  ;;  %v4778_v20 = vld [vmem:[%s10747_s7 + $0x7e0] sm:$0xff] }
 0x4ab   : > { %v7969_v14 = vunpack.i.l.bf16 %v7968_v34  ;;  %v7964_v57 = vunpack.i.l.bf16 %v7963_v23  ;;  %v7965_v56 = vunpack.i.h.bf16 %v7963_v23  ;;  %v7970_v25 = vunpack.i.h.bf16 %v7968_v34  ;;  %v4771_v23 = vld [vmem:[%s10747_s7 + $0x7a8] sm:$0xff] }
 0x4ac   : > { %7704 = vmatpush3.bf16.msra.mxu0 %v7703_v39  ;;  %v4464_v13 = vrot.slane %v10131_v26, 7  ;;  %v4468_v58 = vrot.slane %v10131_v26, 1  ;;  %v4458_v15 = vrot.slane %v10131_v26, 5  ;;  %v7747_v6 = vpack.c.bf16 %v4751_v52, %v4750_v30  ;;  %v4809_v52 = vld [vmem:[%s10747_s7 + $0x8d8] sm:$0xff] }
 0x4ad   : > { %7736 = vmatpush3.bf16.msra.mxu1 %v7735_v53  ;;  %7706 = vmatprep.subr.bf16.mxu0 %v7705_v24  ;;  %v4426_v5 = vsel %vm3720_vm13, %v4396_v12, %v7964_v57  ;;  %v4428_v46 = vsel %vm3720_vm13, %v4407_v61, %v7969_v14  ;;  %v4425_v11 = vsel %vm3720_vm13, %v4389_v59, %v7965_v56  ;;  %v4753_v53 = vld [vmem:[%s10747_s7 + $0x718] sm:$0xff]  ;;  %v4770_v24 = vld [vmem:[%s10747_s7 + $0x7a0] sm:$0xff]  ;;  %v4803_v14 = vld [vmem:[%s10747_s7 + $0x8a8] sm:$0xff] }
 0x4ae   : > { %7738 = vmatprep.subr.bf16.mxu1 %v7737_v28  ;;  %v4490_v0 = vrot.slane %v4426_v5, 2  ;;  %v4492_v55 = vrot.slane %v4428_v46, 2  ;;  %v7986_v33 = vpack.i.bf16 %v4464_v13, %v4468_v58  ;;  %v7981_v41 = vpack.i.bf16 %v4451_v45, %v4458_v15  ;;  %v4754_v12 = vld [vmem:[%s10747_s7 + $0x720] sm:$0xff]  ;;  %v4773_v13 = vld [vmem:[%s10747_s7 + $0x7b8] sm:$0xff]  ;;  %v4787_v5 = vld [vmem:[%s10747_s7 + $0x828] sm:$0xff] }
 0x4af   : > { %v4427_v27 = vsel %vm3720_vm13, %v4401_v19, %v7970_v25  ;;  %v4489_v39 = vrot.slane %v4425_v11, 2  ;;  %v7781_v28 = vpack.c.bf16 %v4801_v38, %v4800_v42  ;;  %v7751_v57 = vpack.c.bf16 %v4753_v53, %v4752_v60  ;;  %v4786_v15 = vld [vmem:[%s10747_s7 + $0x820] sm:$0xff]  ;;  %v4805_v45 = vld [vmem:[%s10747_s7 + $0x8b8] sm:$0xff]  ;;  %v4775_v46 = vld [vmem:[%s10747_s7 + $0x7c8] sm:$0xff] }
 0x4b0   : > { %7708 = vmatpush3.bf16.msra.mxu0 %v7707_v8  ;;  %5335 = vmatprep.mubr.f32.mxu0 %v4490_v0  ;;  %v4491_v34 = vrot.slane %v4427_v27, 2  ;;  %v7753_v8 = vpack.c.bf16 %v4771_v23, %v4770_v24  ;;  %v7783_v61 = vpack.c.bf16 %v4785_v22, %v4784_v44  ;;  %v7785_v58 = vpack.c.bf16 %v4803_v14, %v4802_v16  ;;  %v4774_v56 = vld [vmem:[%s10747_s7 + $0x7c0] sm:$0xff]  ;;  %v4807_v25 = vld [vmem:[%s10747_s7 + $0x8c8] sm:$0xff]  ;;  %v4760_v11 = vld [vmem:[%s10747_s7 + $0x750] sm:$0xff] }
 0x4b1   : > { %7740 = vmatpush3.bf16.msra.mxu1 %v7739_v36  ;;  %5405 = vmatprep.mubr.f32.mxu1 %v4492_v55  ;;  %v4804_v36 = vld [vmem:[%s10747_s7 + $0x8b0] sm:$0xff]  ;;  %v7757_v51 = vpack.c.bf16 %v4773_v13, %v4772_v10  ;;  %v7787_v0 = vpack.c.bf16 %v4787_v5, %v4786_v15  ;;  %v7759_v55 = vpack.c.bf16 %v4757_v3, %v4756_v21  ;;  %v4790_v19 = vld [vmem:[%s10747_s7 + $0x840] sm:$0xff]  ;;  %v4779_v27 = vld [vmem:[%s10747_s7 + $0x7e8] sm:$0xff] }
 0x4b2   : > { %7987 = vrot.lane.b32.xlu1 %v7986_v33, %s8008_s29  ;;  %7982 = vrot.lane.b32.xlu0 %v7981_v41, %s8008_s29  ;;  %v7761_v33 = vpack.c.bf16 %v4775_v46, %v4774_v56  ;;  %v4758_v41 = vld [vmem:[%s10747_s7 + $0x740] sm:$0xff]  ;;  %v7791_v59 = vpack.c.bf16 %v4789_v17, %v4788_v54  ;;  %v7793_v30 = vpack.c.bf16 %v4807_v25, %v4806_v35  ;;  %v4792_v38 = vld [vmem:[%s10747_s7 + $0x850] sm:$0xff]  ;;  %v4414_v56 = vrot.slane %v9758_v63, 6 }
 0x4b3   : > { %7710 = vmatprep.subr.bf16.mxu0 %v7709_v1  ;;  %7742 = vmatprep.subr.bf16.mxu1 %v7741_v37  ;;  %v7755_v1 = vpack.c.bf16 %v4755_v43, %v4754_v12  ;;  %v7789_v37 = vpack.c.bf16 %v4805_v45, %v4804_v36  ;;  %v7763_v50 = vpack.c.bf16 %v4759_v40, %v4758_v41  ;;  %v4762_v24 = vld [vmem:[%s10747_s7 + $0x760] sm:$0xff]  ;;  %v4780_v23 = vld [vmem:[%s10747_s7 + $0x7f0] sm:$0xff]  ;;  %v4795_v14 = vld [vmem:[%s10747_s7 + $0x868] sm:$0xff] }
 0x4b4   : > { %7712 = vmatpush3.bf16.msra.mxu0 %v7711_v48  ;;  %v4777_v48 = vld [vmem:[%s10747_s7 + $0x7d8] sm:$0xff]  ;;  %v7769_v53 = vpack.c.bf16 %v4779_v27, %v4778_v20  ;;  %v4794_v16 = vld [vmem:[%s10747_s7 + $0x860] sm:$0xff]  ;;  %v4812_v12 = vld [vmem:[%s10747_s7 + $0x8f0] sm:$0xff] }
 0x4b5   : > { %7744 = vmatpush3.bf16.msra.mxu1 %v7743_v32  ;;  %7746 = vmatprep.subr.bf16.mxu0 %v7745_v62  ;;  %v4791_v32 = vld [vmem:[%s10747_s7 + $0x848] sm:$0xff]  ;;  %v4808_v62 = vld [vmem:[%s10747_s7 + $0x8d0] sm:$0xff]  ;;  %v7765_v18 = vpack.c.bf16 %v4777_v48, %v4776_v31  ;;  %v4813_v43 = vld [vmem:[%s10747_s7 + $0x8f8] sm:$0xff]  ;;  %v7803_v45 = vpack.c.bf16 %v4795_v14, %v4794_v16 }
 0x4b6   : > { %7778 = vmatprep.subr.bf16.mxu1 %v7777_v49  ;;  %v4761_v49 = vld [vmem:[%s10747_s7 + $0x758] sm:$0xff]  ;;  %v7795_v7 = vpack.c.bf16 %v4791_v32, %v4790_v19  ;;  %v7797_v42 = vpack.c.bf16 %v4809_v52, %v4808_v62  ;;  %v4830_v5 = vld [vmem:[%s10747_s7 + $0x980] sm:$0xff]  ;;  %v4831_v36 = vld [vmem:[%s10747_s7 + $0x988] sm:$0xff] }
 0x4b7   : > { %5336 = vmatmul.mubr.f32.vlgmr.msra.gmra.mrb[84].mxu0 %v4489_v39  ;;  %v4810_v39 = vld [vmem:[%s10747_s7 + $0x8e0] sm:$0xff]  ;;  %v7767_v60 = vpack.c.bf16 %v4761_v49, %v4760_v11  ;;  %v4765_v13 = vld [vmem:[%s10747_s7 + $0x778] sm:$0xff]  ;;  %v4796_v21 = vld [vmem:[%s10747_s7 + $0x870] sm:$0xff]  ;;  %v7809_v54 = vpack.c.bf16 %v4831_v36, %v4830_v5 }
 0x4b8   : > { %5406 = vmatmul.mubr.f32.vlgmr.msra.gmra.mrb[54].mxu1 %v4491_v34  ;;  %7748 = vmatpush3.bf16.msra.mxu0 %v7747_v6  ;;  %v4793_v6 = vld [vmem:[%s10747_s7 + $0x858] sm:$0xff]  ;;  %v4862_v46 = vld [vmem:[%s10747_s7 + $0xa80] sm:$0xff]  ;;  %v4815_v35 = vld [vmem:[%s10747_s7 + $0x908] sm:$0xff] }
 0x4b9   : > { %7750 = vmatprep.subr.bf16.mxu0 %v7749_v47  ;;  %7780 = vmatpush3.bf16.msra.mxu1 %v7779_v9  ;;  %v4811_v47 = vld [vmem:[%s10747_s7 + $0x8e8] sm:$0xff]  ;;  %v7799_v34 = vpack.c.bf16 %v4793_v6, %v4792_v38  ;;  %v4797_v3 = vld [vmem:[%s10747_s7 + $0x878] sm:$0xff]  ;;  %v4814_v17 = vld [vmem:[%s10747_s7 + $0x900] sm:$0xff] }
 0x4ba   : > { %7782 = vmatprep.subr.bf16.mxu1 %v7781_v28  ;;  %v4763_v9 = vld [vmem:[%s10747_s7 + $0x768] sm:$0xff]  ;;  %v4781_v28 = vld [vmem:[%s10747_s7 + $0x7f8] sm:$0xff]  ;;  %v7801_v44 = vpack.c.bf16 %v4811_v47, %v4810_v39  ;;  %v7807_v41 = vpack.c.bf16 %v4797_v3, %v4796_v21  ;;  %v7811_v31 = vpack.c.bf16 %v4815_v35, %v4814_v17  ;;  %v4834_v32 = vld [vmem:[%s10747_s7 + $0x9a0] sm:$0xff]  ;;  %v4431_v3 = vrot.slane %v9758_v63, 2 }
 0x4bb   : > { %v7773_v10 = vpack.c.bf16 %v4781_v28, %v4780_v23  ;;  %v4817_v19 = vld [vmem:[%s10747_s7 + $0x918] sm:$0xff]  ;;  %v4835_v62 = vld [vmem:[%s10747_s7 + $0x9a8] sm:$0xff]  ;;  %v4836_v49 = vld [vmem:[%s10747_s7 + $0x9b0] sm:$0xff]  ;;  %v4438_v35 = vrot.slane %v9964_v29, 5 }
 0x4bc   : > { %7752 = vmatpush3.bf16.msra.mxu0 %v7751_v57  ;;  %v4819_v11 = vld [vmem:[%s10747_s7 + $0x928] sm:$0xff]  ;;  %v4837_v20 = vld [vmem:[%s10747_s7 + $0x9b8] sm:$0xff]  ;;  %v4838_v6 = vld [vmem:[%s10747_s7 + $0x9c0] sm:$0xff] }
 0x4bd   : > { %7754 = vmatprep.subr.bf16.mxu0 %v7753_v8  ;;  %7784 = vmatpush3.bf16.msra.mxu1 %v7783_v61  ;;  %v7771_v8 = vpack.c.bf16 %v4763_v9, %v4762_v24  ;;  %v4764_v61 = vld [vmem:[%s10747_s7 + $0x770] sm:$0xff]  ;;  %v7821_v27 = vpack.c.bf16 %v4837_v20, %v4836_v49  ;;  %v4821_v38 = vld [vmem:[%s10747_s7 + $0x938] sm:$0xff]  ;;  %v4839_v39 = vld [vmem:[%s10747_s7 + $0x9c8] sm:$0xff] }
 0x4be   : > { %7786 = vmatprep.subr.bf16.mxu1 %v7785_v58  ;;  %v4823_v24 = vld [vmem:[%s10747_s7 + $0x948] sm:$0xff]  ;;  %v4840_v9 = vld [vmem:[%s10747_s7 + $0x9d0] sm:$0xff]  ;;  %v4842_v16 = vld [vmem:[%s10747_s7 + $0x9e0] sm:$0xff] }
 0x4bf   : > { %v4843_v14 = vld [vmem:[%s10747_s7 + $0x9e8] sm:$0xff]  ;;  %v4828_v5 = vld [vmem:[%s10747_s7 + $0x970] sm:$0xff]  ;;  %v4829_v36 = vld [vmem:[%s10747_s7 + $0x978] sm:$0xff] }
 0x4c0   : > { %7756 = vmatpush3.bf16.msra.mxu0 %v7755_v1 }
 0x4c1   : > { %7758 = vmatprep.subr.bf16.mxu0 %v7757_v51  ;;  %7788 = vmatpush3.bf16.msra.mxu1 %v7787_v0  ;;  %v7805_v51 = vpack.c.bf16 %v4813_v43, %v4812_v12  ;;  %v7775_v0 = vpack.c.bf16 %v4765_v13, %v4764_v61  ;;  %v4826_v12 = vld [vmem:[%s10747_s7 + $0x960] sm:$0xff]  ;;  %v4827_v43 = vld [vmem:[%s10747_s7 + $0x968] sm:$0xff]  ;;  %v4845_v61 = vld [vmem:[%s10747_s7 + $0x9f8] sm:$0xff] }
 0x4c2   : > { %7790 = vmatprep.subr.bf16.mxu1 %v7789_v37  ;;  %v4863_v37 = vld [vmem:[%s10747_s7 + $0xa88] sm:$0xff]  ;;  %v7835_v13 = vpack.c.bf16 %v4827_v43, %v4826_v12  ;;  %v4900_v12 = vld [vmem:[%s10747_s7 + $0xbb0] sm:$0xff]  ;;  %v4901_v43 = vld [vmem:[%s10747_s7 + $0xbb8] sm:$0xff] }
 0x4c3   : > { %v7841_v40 = vpack.c.bf16 %v4863_v37, %v4862_v46  ;;  %v4864_v37 = vld [vmem:[%s10747_s7 + $0xa90] sm:$0xff] }
 0x4c4   : > { %7760 = vmatpush3.bf16.msra.mxu0 %v7759_v55  ;;  %v4832_v55 = vld [vmem:[%s10747_s7 + $0x990] sm:$0xff] }
 0x4c5   : > { %7762 = vmatprep.subr.bf16.mxu0 %v7761_v33  ;;  %7792 = vmatpush3.bf16.msra.mxu1 %v7791_v59  ;;  %v4833_v33 = vld [vmem:[%s10747_s7 + $0x998] sm:$0xff] }
 0x4c6   : > { %7794 = vmatprep.subr.bf16.mxu1 %v7793_v30  ;;  %v7813_v48 = vpack.c.bf16 %v4833_v33, %v4832_v55  ;;  %v4816_v30 = vld [vmem:[%s10747_s7 + $0x910] sm:$0xff]  ;;  %v4444_v55 = vrot.slane %v9964_v29, 7 }
 0x4c7   : > { %v7815_v52 = vpack.c.bf16 %v4817_v19, %v4816_v30  ;;  %v4848_v19 = vld [vmem:[%s10747_s7 + $0xa10] sm:$0xff] }
 0x4c8   : > { %7764 = vmatpush3.bf16.msra.mxu0 %v7763_v50  ;;  %v7817_v50 = vpack.c.bf16 %v4835_v62, %v4834_v32  ;;  %v4849_v32 = vld [vmem:[%s10747_s7 + $0xa18] sm:$0xff]  ;;  %v4896_v62 = vld [vmem:[%s10747_s7 + $0xb90] sm:$0xff] }
 0x4c9   : > { %7766 = vmatprep.subr.bf16.mxu0 %v7765_v18  ;;  %7796 = vmatpush3.bf16.msra.mxu1 %v7795_v7  ;;  %v4818_v18 = vld [vmem:[%s10747_s7 + $0x920] sm:$0xff] }
 0x4ca   : > { %7798 = vmatprep.subr.bf16.mxu1 %v7797_v42  ;;  %v7819_v7 = vpack.c.bf16 %v4819_v11, %v4818_v18  ;;  %v4820_v42 = vld [vmem:[%s10747_s7 + $0x930] sm:$0xff] }
 0x4cb   : > { %v7973_v22 = vpop.permute.xlu1 %7972  ;;  %v7823_v47 = vpack.c.bf16 %v4821_v38, %v4820_v42  ;;  %v4880_v42 = vld [vmem:[%s10747_s7 + $0xb10] sm:$0xff]  ;;  %v4881_v38 = vld [vmem:[%s10747_s7 + $0xb18] sm:$0xff] }
 0x4cc   : > { %7768 = vmatpush3.bf16.msra.mxu0 %v7767_v60  ;;  %v7974_v57 = vunpack.i.l.bf16 %v7973_v22  ;;  %v7975_v58 = vunpack.i.h.bf16 %v7973_v22  ;;  %v7825_v60 = vpack.c.bf16 %v4839_v39, %v4838_v6  ;;  %v4825_v22 = vld [vmem:[%s10747_s7 + $0x958] sm:$0xff] }
 0x4cd   : > { %7770 = vmatprep.subr.bf16.mxu0 %v7769_v53  ;;  %7800 = vmatpush3.bf16.msra.mxu1 %v7799_v34  ;;  %v4822_v53 = vld [vmem:[%s10747_s7 + $0x940] sm:$0xff]  ;;  %v4841_v34 = vld [vmem:[%s10747_s7 + $0x9d8] sm:$0xff] }
 0x4ce   : > { %v10362_v15 = vsel %vm3720_vm13, %v9758_v63, %v7974_v57  ;;  %7802 = vmatprep.subr.bf16.mxu1 %v7801_v44  ;;  %v4429_v25 = vsel %vm3720_vm13, %v4414_v56, %v7975_v58  ;;  %v7827_v23 = vpack.c.bf16 %v4823_v24, %v4822_v53  ;;  %v7829_v28 = vpack.c.bf16 %v4841_v34, %v4840_v9  ;;  %v4824_v44 = vld [vmem:[%s10747_s7 + $0x950] sm:$0xff]  ;;  %v4846_v56 = vld [vmem:[%s10747_s7 + $0xa00] sm:$0xff]  ;;  %v4899_v24 = vld [vmem:[%s10747_s7 + $0xba8] sm:$0xff] }
 0x4cf   : > { %v4494_v1 = vrot.slane %v10362_v15, 2  ;;  %v4493_v59 = vrot.slane %v4429_v25, 2  ;;  %v7831_v57 = vpack.c.bf16 %v4825_v22, %v4824_v44  ;;  %v4898_v53 = vld [vmem:[%s10747_s7 + $0xba0] sm:$0xff]  ;;  %v4868_v9 = vld [vmem:[%s10747_s7 + $0xab0] sm:$0xff]  ;;  %v4869_v34 = vld [vmem:[%s10747_s7 + $0xab8] sm:$0xff] }
 0x4d0   : > { %7772 = vmatpush3.bf16.msra.mxu0 %v7771_v8  ;;  %v7833_v8 = vpack.c.bf16 %v4843_v14, %v4842_v16  ;;  %v4882_v44 = vld [vmem:[%s10747_s7 + $0xb20] sm:$0xff]  ;;  %v4883_v22 = vld [vmem:[%s10747_s7 + $0xb28] sm:$0xff]  ;;  %v7881_v16 = vpack.c.bf16 %v4899_v24, %v4898_v53  ;;  %v7853_v14 = vpack.c.bf16 %v4869_v34, %v4868_v9  ;;  %v4860_v24 = vld [vmem:[%s10747_s7 + $0xa70] sm:$0xff] }
 0x4d1   : > { %7774 = vmatprep.subr.bf16.mxu0 %v7773_v10  ;;  %5475 = vmatprep.mubr.f32.mxu0 %v4494_v1  ;;  %v4844_v10 = vld [vmem:[%s10747_s7 + $0x9f0] sm:$0xff]  ;;  %v4895_v1 = vld [vmem:[%s10747_s7 + $0xb88] sm:$0xff]  ;;  %v4861_v9 = vld [vmem:[%s10747_s7 + $0xa78] sm:$0xff] }
 0x4d2   : > { %7804 = vmatpush3.bf16.msra.mxu1 %v7803_v45  ;;  %v7837_v58 = vpack.c.bf16 %v4845_v61, %v4844_v10  ;;  %v4894_v45 = vld [vmem:[%s10747_s7 + $0xb80] sm:$0xff]  ;;  %v4871_v61 = vld [vmem:[%s10747_s7 + $0xac8] sm:$0xff]  ;;  %v4908_v34 = vld [vmem:[%s10747_s7 + $0xbf0] sm:$0xff] }
 0x4d3   : > { %7806 = vmatprep.subr.bf16.mxu1 %v7805_v51  ;;  %v7839_v51 = vpack.c.bf16 %v4829_v36, %v4828_v5  ;;  %v7873_v21 = vpack.c.bf16 %v4895_v1, %v4894_v45  ;;  %v4870_v10 = vld [vmem:[%s10747_s7 + $0xac0] sm:$0xff]  ;;  %v4884_v5 = vld [vmem:[%s10747_s7 + $0xb30] sm:$0xff]  ;;  %v4885_v36 = vld [vmem:[%s10747_s7 + $0xb38] sm:$0xff]  ;;  %v7885_v45 = vpack.c.bf16 %v4901_v43, %v4900_v12 }
 0x4d4   : > { %7776 = vmatpush3.bf16.msra.mxu0 %v7775_v0  ;;  %v4847_v0 = vld [vmem:[%s10747_s7 + $0xa08] sm:$0xff]  ;;  %v7857_v1 = vpack.c.bf16 %v4871_v61, %v4870_v10  ;;  %v4462_v10 = vrot.slane %v10131_v26, 6  ;;  %v4449_v61 = vrot.slane %v9964_v29, 1 }
 0x4d5   : > { %7810 = vmatprep.subr.bf16.mxu0 %v7809_v54  ;;  %v4865_v54 = vld [vmem:[%s10747_s7 + $0xa98] sm:$0xff]  ;;  %v7843_v33 = vpack.c.bf16 %v4847_v0, %v4846_v56  ;;  %v4903_v56 = vld [vmem:[%s10747_s7 + $0xbc8] sm:$0xff]  ;;  %v4872_v0 = vld [vmem:[%s10747_s7 + $0xad0] sm:$0xff] }
 0x4d6   : > { %7808 = vmatpush3.bf16.msra.mxu1 %v7807_v41  ;;  %v4878_v41 = vld [vmem:[%s10747_s7 + $0xb00] sm:$0xff]  ;;  %v7845_v30 = vpack.c.bf16 %v4865_v54, %v4864_v37  ;;  %v7887_v37 = vpack.c.bf16 %v4885_v36, %v4884_v5  ;;  %v4911_v12 = vld [vmem:[%s10747_s7 + $0xc08] sm:$0xff] }
 0x4d7   : > { %5476 = vmatmul.mubr.f32.vlgmr.msra.gmra.mrb[86].mxu0 %v4493_v59  ;;  %7842 = vmatprep.subr.bf16.mxu1 %v7841_v40  ;;  %v4879_v40 = vld [vmem:[%s10747_s7 + $0xb08] sm:$0xff] }
 0x4d8   : > { %7812 = vmatpush3.bf16.msra.mxu0 %v7811_v31  ;;  %v4510_v31 = vrot.slane %v10362_v15, 4  ;;  %v4897_v15 = vld [vmem:[%s10747_s7 + $0xb98] sm:$0xff] }
 0x4d9   : > { %7814 = vmatprep.subr.bf16.mxu0 %v7813_v48  ;;  %v7877_v6 = vpack.c.bf16 %v4897_v15, %v4896_v62  ;;  %v4888_v15 = vld [vmem:[%s10747_s7 + $0xb50] sm:$0xff] }
 0x4dc   : > { %7816 = vmatpush3.bf16.msra.mxu0 %v7815_v52  ;;  %v4866_v52 = vld [vmem:[%s10747_s7 + $0xaa0] sm:$0xff] }
 0x4dd   : > { %7818 = vmatprep.subr.bf16.mxu0 %v7817_v50  ;;  %v4867_v50 = vld [vmem:[%s10747_s7 + $0xaa8] sm:$0xff] }
 0x4de   : > { %v7849_v39 = vpack.c.bf16 %v4867_v50, %v4866_v52  ;;  %v4889_v52 = vld [vmem:[%s10747_s7 + $0xb58] sm:$0xff] }
 0x4e0   : > { %7820 = vmatpush3.bf16.msra.mxu0 %v7819_v7  ;;  %v7875_v7 = vpack.c.bf16 %v4879_v40, %v4878_v41  ;;  %v4904_v41 = vld [vmem:[%s10747_s7 + $0xbd0] sm:$0xff] }
 0x4e1   : > { %7822 = vmatprep.subr.bf16.mxu0 %v7821_v27  ;;  %v7847_v27 = vpack.c.bf16 %v4849_v32, %v4848_v19 }
 0x4e4   : > { %7824 = vmatpush3.bf16.msra.mxu0 %v7823_v47  ;;  %v4850_v47 = vld [vmem:[%s10747_s7 + $0xa20] sm:$0xff] }
 0x4e5   : > { %7826 = vmatprep.subr.bf16.mxu0 %v7825_v60  ;;  %v4851_v60 = vld [vmem:[%s10747_s7 + $0xa28] sm:$0xff] }
 0x4e8   : > { %7828 = vmatpush3.bf16.msra.mxu0 %v7827_v23  ;;  %v7879_v23 = vpack.c.bf16 %v4881_v38, %v4880_v42  ;;  %v4877_v42 = vld [vmem:[%s10747_s7 + $0xaf8] sm:$0xff]  ;;  %v7895_v38 = vpack.c.bf16 %v4889_v52, %v4888_v15 }
 0x4e9   : > { %7830 = vmatprep.subr.bf16.mxu0 %v7829_v28  ;;  %v7851_v28 = vpack.c.bf16 %v4851_v60, %v4850_v47  ;;  %v4891_v60 = vld [vmem:[%s10747_s7 + $0xb68] sm:$0xff] }
 0x4ec   : > { %7832 = vmatpush3.bf16.msra.mxu0 %v7831_v57  ;;  %v4852_v57 = vld [vmem:[%s10747_s7 + $0xa30] sm:$0xff] }
 0x4ed   : > { %7834 = vmatprep.subr.bf16.mxu0 %v7833_v8  ;;  %v4853_v8 = vld [vmem:[%s10747_s7 + $0xa38] sm:$0xff] }
 0x4f0   : > { %7836 = vmatpush3.bf16.msra.mxu0 %v7835_v13  ;;  %v7883_v13 = vpack.c.bf16 %v4883_v22, %v4882_v44  ;;  %v7871_v44 = vpack.c.bf16 %v4861_v9, %v4860_v24 }
 0x4f1   : > { %7838 = vmatprep.subr.bf16.mxu0 %v7837_v58  ;;  %v7855_v58 = vpack.c.bf16 %v4853_v8, %v4852_v57  ;;  %v4910_v8 = vld [vmem:[%s10747_s7 + $0xc00] sm:$0xff] }
 0x4f4   : > { %7840 = vmatpush3.bf16.msra.mxu0 %v7839_v51  ;;  %v4854_v51 = vld [vmem:[%s10747_s7 + $0xa40] sm:$0xff] }
 0x4f5   : > { %7874 = vmatprep.subr.bf16.mxu0 %v7873_v21  ;;  %v4855_v21 = vld [vmem:[%s10747_s7 + $0xa48] sm:$0xff] }
 0x4f6   : > { %v7859_v54 = vpack.c.bf16 %v4855_v21, %v4854_v51  ;;  %v7906_v51 = vpack.c.bf16 %v4911_v12, %v4910_v8 }
 0x4f9   : > { %v4436_v46 = vpop.permute.xlu0 %4435 }
 0x4fa   : > { %v4472_v17 = vsel %vm3720_vm13, %v4431_v3, %v4436_v46  ;;  %v4902_v3 = vld [vmem:[%s10747_s7 + $0xbc0] sm:$0xff]  ;;  %v4873_v46 = vld [vmem:[%s10747_s7 + $0xad8] sm:$0xff] }
 0x4fb   : > { %v4511_v63 = vrot.slane %v4472_v17, 4  ;;  %v7978_v25 = vpop.permute.xlu1 %7977  ;;  %v4886_v17 = vld [vmem:[%s10747_s7 + $0xb40] sm:$0xff] }
 0x4fc   : > { %v7980_v59 = vunpack.i.h.bf16 %v7978_v25  ;;  %v7979_v48 = vunpack.i.l.bf16 %v7978_v25  ;;  %v7861_v25 = vpack.c.bf16 %v4873_v46, %v4872_v0 }
 0x4fd   : > { %5545 = vmatprep.mubr.f32.mxu1 %v4511_v63  ;;  %v4887_v63 = vld [vmem:[%s10747_s7 + $0xb48] sm:$0xff] }
 0x4fe   : > { %v4473_v18 = vsel %vm3720_vm13, %v4438_v35, %v7980_v59  ;;  %5546 = vmatmul.mubr.f32.vlgmr.msra.gmra.mrb[56].mxu1 %v4510_v31  ;;  %v4474_v11 = vsel %vm3720_vm13, %v4444_v55, %v7979_v48  ;;  %v7889_v35 = vpack.c.bf16 %v4903_v56, %v4902_v3  ;;  %v4856_v55 = vld [vmem:[%s10747_s7 + $0xa50] sm:$0xff]  ;;  %v4905_v31 = vld [vmem:[%s10747_s7 + $0xbd8] sm:$0xff]  ;;  %v4874_v59 = vld [vmem:[%s10747_s7 + $0xae0] sm:$0xff]  ;;  %v7891_v32 = vpack.c.bf16 %v4887_v63, %v4886_v17 }
 0x4ff   : > { %v4512_v49 = vrot.slane %v4473_v18, 4  ;;  %v4513_v20 = vrot.slane %v4474_v11, 4  ;;  %7844 = vmatpush3.bf16.msra.mxu1 %v7843_v33  ;;  %v4857_v33 = vld [vmem:[%s10747_s7 + $0xa58] sm:$0xff]  ;;  %v4875_v48 = vld [vmem:[%s10747_s7 + $0xae8] sm:$0xff]  ;;  %v7893_v50 = vpack.c.bf16 %v4905_v31, %v4904_v41  ;;  %v4858_v11 = vld [vmem:[%s10747_s7 + $0xa60] sm:$0xff] }
 0x500   : > { %7846 = vmatprep.subr.bf16.mxu1 %v7845_v30  ;;  %v7863_v62 = vpack.c.bf16 %v4857_v33, %v4856_v55  ;;  %v7865_v18 = vpack.c.bf16 %v4875_v48, %v4874_v59  ;;  %v4912_v17 = vld [vmem:[%s10747_s7 + $0xc10] sm:$0xff]  ;;  %v4913_v63 = vld [vmem:[%s10747_s7 + $0xc18] sm:$0xff] }
 0x501   : > { %5615 = vmatprep.mubr.f32.mxu0 %v4513_v20  ;;  %v4906_v20 = vld [vmem:[%s10747_s7 + $0xbe0] sm:$0xff]  ;;  %v4916_v33 = vld [vmem:[%s10747_s7 + $0xc30] sm:$0xff]  ;;  %v4917_v41 = vld [vmem:[%s10747_s7 + $0xc38] sm:$0xff] }
 0x502   : > { %5616 = vmatmul.mubr.f32.vlgmr.msra.gmra.mrb[88].mxu0 %v4512_v49  ;;  %v4859_v49 = vld [vmem:[%s10747_s7 + $0xa68] sm:$0xff] }
 0x503   : > { %7876 = vmatpush3.bf16.msra.mxu0 %v7875_v7  ;;  %7848 = vmatpush3.bf16.msra.mxu1 %v7847_v27  ;;  %v4907_v7 = vld [vmem:[%s10747_s7 + $0xbe8] sm:$0xff]  ;;  %v4876_v27 = vld [vmem:[%s10747_s7 + $0xaf0] sm:$0xff] }
 0x504   : > { %7878 = vmatprep.subr.bf16.mxu0 %v7877_v6  ;;  %7850 = vmatprep.subr.bf16.mxu1 %v7849_v39  ;;  %v7867_v6 = vpack.c.bf16 %v4859_v49, %v4858_v11  ;;  %v4890_v39 = vld [vmem:[%s10747_s7 + $0xb60] sm:$0xff]  ;;  %v7897_v47 = vpack.c.bf16 %v4907_v7, %v4906_v20  ;;  %v7869_v53 = vpack.c.bf16 %v4877_v42, %v4876_v27 }
 0x507   : > { %7880 = vmatpush3.bf16.msra.mxu0 %v7879_v23  ;;  %7852 = vmatpush3.bf16.msra.mxu1 %v7851_v28  ;;  %v4909_v23 = vld [vmem:[%s10747_s7 + $0xbf8] sm:$0xff]  ;;  %v7899_v28 = vpack.c.bf16 %v4891_v60, %v4890_v39 }
 0x508   : > { %7882 = vmatprep.subr.bf16.mxu0 %v7881_v16  ;;  %7854 = vmatprep.subr.bf16.mxu1 %v7853_v14  ;;  %v7901_v22 = vpack.c.bf16 %v4909_v23, %v4908_v34  ;;  %v4892_v16 = vld [vmem:[%s10747_s7 + $0xb70] sm:$0xff]  ;;  %v4893_v14 = vld [vmem:[%s10747_s7 + $0xb78] sm:$0xff] }
 0x509   : > { %v7903_v57 = vpack.c.bf16 %v4893_v14, %v4892_v16  ;;  %v5834_v23 = vld [vmem:[%s10749_s9 + $0x10] sm:$0xff] }
 0x50b   : > { %7884 = vmatpush3.bf16.msra.mxu0 %v7883_v13  ;;  %7856 = vmatpush3.bf16.msra.mxu1 %v7855_v58  ;;  %v4456_v58 = vrot.slane %v10131_v26, 4 }
 0x50c   : > { %7886 = vmatprep.subr.bf16.mxu0 %v7885_v45  ;;  %7858 = vmatprep.subr.bf16.mxu1 %v7857_v1 }
 0x50d   : > { %v6302_v40 = vpop.f32.mrb[48].mxu1 }
 0x50e   : > { %v6303_v30 = vpop.f32.mrb[49].mxu1 }
 0x50f   : > { %v10620_v19 = vadd.f32 %v6303_v30, %v6302_v40  ;;  %7888 = vmatpush3.bf16.msra.mxu0 %v7887_v37  ;;  %7860 = vmatpush3.bf16.msra.mxu1 %v7859_v54  ;;  %v4918_v40 = vld [vmem:[%s10748_s8] sm:$0x1] }
 0x510   : > { %7890 = vmatprep.subr.bf16.mxu0 %v7889_v35  ;;  %7862 = vmatprep.subr.bf16.mxu1 %v7861_v25  ;;  %v7909_v35 = vpack.c.bf16 %v4913_v63, %v4912_v17  ;;  %v4915_v25 = vld [vmem:[%s10747_s7 + $0xc28] sm:$0xff]  ;;  %v5836_v63 = vld [vmem:[%s10750_s10] sm:$0x1] }
 0x511   : > { %v4988_v48 = vadd.f32 %v10620_v19, %v4918_v40  ;;  %v5832_v19 = vld [vmem:[%s10749_s9] sm:$0xff] }
 0x513   : > { %7892 = vmatpush3.bf16.msra.mxu0 %v7891_v32  ;;  %7864 = vmatpush3.bf16.msra.mxu1 %v7863_v62 }
 0x514   : > { %7894 = vmatprep.subr.bf16.mxu0 %v7893_v50  ;;  %7866 = vmatprep.subr.bf16.mxu1 %v7865_v18 }
 0x517   : > { %7896 = vmatpush3.bf16.msra.mxu0 %v7895_v38  ;;  %7868 = vmatpush3.bf16.msra.mxu1 %v7867_v6  ;;  %v5833_v6 = vld [vmem:[%s10749_s9 + $0x8] sm:$0xff] }
 0x518   : > { %7898 = vmatprep.subr.bf16.mxu0 %v7897_v47  ;;  %7870 = vmatprep.subr.bf16.mxu1 %v7869_v53  ;;  %v7918_v39 = vpack.c.bf16 %v5833_v6, %v5832_v19 }
 0x51b   : > { %7900 = vmatpush3.bf16.msra.mxu0 %v7899_v28  ;;  %7872 = vmatpush3.bf16.msra.mxu1 %v7871_v44  ;;  %v5835_v28 = vld [vmem:[%s10749_s9 + $0x18] sm:$0xff] }
 0x51c   : > { %7902 = vmatprep.subr.bf16.mxu0 %v7901_v22  ;;  %7905 = vmatprep.subr.bf16.mxu1 %v8000_v2  ;;  %v7921_v22 = vpack.c.bf16 %v5835_v28, %v5834_v23 }
 0x51f   : > { %7904 = vmatpush3.bf16.msra.mxu0 %v7903_v57 }
 0x520   : > { %7917 = vmatprep.subr.bf16.mxu0 %v8000_v2 }
 0x524   : > { %v7988_v43 = vpop.permute.xlu1 %7987  ;;  %v7983_v13 = vpop.permute.xlu0 %7982 }
 0x525   : > { %v7990_v5 = vunpack.i.h.bf16 %v7988_v43  ;;  %v7989_v36 = vunpack.i.l.bf16 %v7988_v43  ;;  %v7985_v45 = vunpack.i.h.bf16 %v7983_v13  ;;  %v7984_v1 = vunpack.i.l.bf16 %v7983_v13 }
 0x527   : > { %v4477_v21 = vsel %vm3720_vm13, %v4462_v10, %v7990_v5  ;;  %v4475_v3 = vsel %vm3720_vm13, %v4449_v61, %v7985_v45  ;;  %v4476_v56 = vsel %vm3720_vm13, %v4456_v58, %v7984_v1  ;;  %v4478_v0 = vsel %vm3720_vm13, %v10131_v26, %v7989_v36  ;;  %v4914_v26 = vld [vmem:[%s10747_s7 + $0xc20] sm:$0xff] }
 0x528   : > { %v4516_v46 = vrot.slane %v4477_v21, 4  ;;  %v4514_v37 = vrot.slane %v4475_v3, 4  ;;  %v4515_v29 = vrot.slane %v4476_v56, 4  ;;  %v4517_v54 = vrot.slane %v4478_v0, 4 }
 0x529   : > { %v7912_v55 = vpack.c.bf16 %v4915_v25, %v4914_v26 }
 0x52a   : > { %5685 = vmatprep.mubr.f32.mxu1 %v4515_v29  ;;  %5755 = vmatprep.mubr.f32.mxu0 %v4517_v54 }
 0x52b   : > { %5686 = vmatmul.mubr.f32.vlgmr.msra.gmra.mrb[58].mxu1 %v4514_v37  ;;  %5756 = vmatmul.mubr.f32.vlgmr.msra.gmra.mrb[90].mxu0 %v4516_v46 }
 0x52c   : > { %7907 = vmatpush3.bf16.msra.mxu1 %v7906_v51  ;;  %7252 = vmatprep.mubr.msk.f32.mxu1 %vm8001_vm0, %v8002_v4 }
 0x52d   : > { %7908 = vmatprep.subr.bf16.mxu1 %v8000_v2  ;;  %7263 = vmatprep.mubr.msk.f32.mxu0 %vm8001_vm0, %v8002_v4  ;;  %v7915_v4 = vpack.c.bf16 %v4917_v41, %v4916_v33 }
 0x52e   : > { %7919 = vmatpush3.bf16.msra.mxu0 %v7918_v39 }
 0x52f   : > { %7920 = vmatprep.subr.bf16.mxu0 %v8000_v2 }
 0x530   : > { %7910 = vmatpush3.bf16.msra.mxu1 %v7909_v35 }
 0x531   : > { %7911 = vmatprep.subr.bf16.mxu1 %v8000_v2 }
 0x532   : > { %7922 = vmatpush3.bf16.msra.mxu0 %v7921_v22 }
 0x533   : > { %v6337_v31 = vpop.f32.mrb[80].mxu0 }
 0x534   : > { %7913 = vmatpush3.bf16.msra.mxu1 %v7912_v55  ;;  %v6338_v59 = vpop.f32.mrb[81].mxu0 }
 0x535   : > { %v6339_v30 = vadd.f32 %v6338_v59, %v6337_v31  ;;  %7914 = vmatprep.subr.bf16.mxu1 %v8000_v2  ;;  %v6372_v32 = vpop.f32.mrb[50].mxu1 }
 0x536   : > { %v6373_v62 = vpop.f32.mrb[51].mxu1 }
 0x537   : > { %v5058_v15 = vadd.f32 %v6339_v30, %v4988_v48  ;;  %v6374_v52 = vadd.f32 %v6373_v62, %v6372_v32 }
 0x538   : > { %7916 = vmatpush3.bf16.msra.mxu1 %v7915_v4 }
 0x539   : > { %v5128_v50 = vadd.f32 %v6374_v52, %v5058_v15 }
 0x53b   : > { %7253 = vmatmul.mubr.msk.f32.vlgmr.msra.gmra.mrb[60].mxu1 %vm3720_vm13, %v4462_v10 }
 0x56a   : > { %v6407_v18 = vpop.f32.mrb[82].mxu0 }
 0x56b   : > { %v6408_v11 = vpop.f32.mrb[83].mxu0  ;;  %v6442_v49 = vpop.f32.mrb[52].mxu1 }
 0x56c   : > { %v6409_v20 = vadd.f32 %v6408_v11, %v6407_v18  ;;  %v6443_v7 = vpop.f32.mrb[53].mxu1 }
 0x56d   : > { %v6444_v27 = vadd.f32 %v6443_v7, %v6442_v49 }
 0x56e   : > { %v5198_v42 = vadd.f32 %v6409_v20, %v5128_v50 }
 0x570   : > { %v5268_v38 = vadd.f32 %v6444_v27, %v5198_v42 }
 0x58a   : > { %v6477_v47 = vpop.f32.mrb[84].mxu0 }
 0x58b   : > { %v6478_v60 = vpop.f32.mrb[85].mxu0  ;;  %v6512_v53 = vpop.f32.mrb[54].mxu1 }
 0x58c   : > { %v6479_v24 = vadd.f32 %v6478_v60, %v6477_v47  ;;  %v6513_v9 = vpop.f32.mrb[55].mxu1 }
 0x58d   : > { %v6514_v34 = vadd.f32 %v6513_v9, %v6512_v53 }
 0x58e   : > { %v5338_v44 = vadd.f32 %v6479_v24, %v5268_v38 }
 0x590   : > { %v5408_v16 = vadd.f32 %v6514_v34, %v5338_v44 }
 0x5aa   : > { %v6547_v14 = vpop.f32.mrb[86].mxu0 }
 0x5ab   : > { %v6548_v2 = vpop.f32.mrb[87].mxu0 }
 0x5ac   : > { %v6549_v57 = vadd.f32 %v6548_v2, %v6547_v14 }
 0x5ae   : > { %v5478_v8 = vadd.f32 %v6549_v57, %v5408_v16 }
 0x5d1   : > { %v6582_v12 = vpop.f32.mrb[56].mxu1 }
 0x5d2   : > { %v6583_v43 = vpop.f32.mrb[57].mxu1 }
 0x5d3   : > { %v6584_v10 = vadd.f32 %v6583_v43, %v6582_v12 }
 0x5d5   : > { %v5548_v61 = vadd.f32 %v6584_v10, %v5478_v8  ;;  %v6617_v13 = vpop.f32.mrb[88].mxu0 }
 0x5d6   : > { %v6618_v58 = vpop.f32.mrb[89].mxu0 }
 0x5d7   : > { %v6619_v5 = vadd.f32 %v6618_v58, %v6617_v13 }
 0x5d9   : > { %v5618_v36 = vadd.f32 %v6619_v5, %v5548_v61 }
 0x5fe   : > { %v6652_v45 = vpop.f32.mrb[58].mxu1  ;;  %v6687_v1 = vpop.f32.mrb[90].mxu0 }
 0x5ff   : > { %v6653_v51 = vpop.f32.mrb[59].mxu1  ;;  %v6688_v21 = vpop.f32.mrb[91].mxu0 }
 0x600   : > { %v6654_v3 = vadd.f32 %v6653_v51, %v6652_v45  ;;  %v6689_v56 = vadd.f32 %v6688_v21, %v6687_v1 }
 0x602   : > { %v5688_v0 = vadd.f32 %v6654_v3, %v5618_v36 }
 0x604   : > { %v5758_v46 = vadd.f32 %v6689_v56, %v5688_v0 }
 0x60e   : > { %v5827_v37 = vpop.f32.mrb[60].mxu1 }
 0x60f   : > { %v5828_v29 = vadd.f32 %v5827_v37, %v5758_v46  ;;  %v7254_v54 = vpop.f32.mrb[61].mxu1 }
 0x611   : > { %v5831_v17 = vmax.f32 %v5828_v29, 0.0 }
 0x613   : > { %7264 = vmatmul.mubr.msk.f32.vlgmr.msra.gmra.mrb[92].mxu0 %vm840_vm6, %v5831_v17 }
 0x6e6   : > { %v5906_v35 = vpop.f32.mrb[92].mxu0 }
 0x6e7   : > { %v5907_v26 = vadd.f32 %v5906_v35, %v5836_v63  ;;  %v7265_v25 = vpop.f32.mrb[93].mxu0 }
 0x6e9   : > { %5911 = vst.msk [vmem:[%s382_s20] sm:$0x1] %vm5910_vm14, %v5907_v26 }
 0x6ea PF: > { %s21_s17 = sadd.s32 1, %s7998_s17  }
 0x6eb   : > { %p18_p4 = scmp.ge.s32.totalorder %s21_s17, 4  }
 0x6ed   :  { %20 = sbr.rel (!%p18_p4) target bundleno = 1 (0x1), region = 94 }

</bundles_post_ra>
